<compile_context>
chip_gen: v6e
topology: v6e:2x2x1
jax: 0.10.0
libtpu: 0.0.40
codegen_flags: <defaults>
</compile_context>

<pallas_src>
import functools

import numpy as np
import jax
import jax.numpy as jnp
from jax.experimental import pallas as pl
from jax.experimental.pallas import tpu as pltpu

_BN_EPS = 1e-5

_CompilerParams = getattr(pltpu, "CompilerParams", None) or getattr(
    pltpu, "TPUCompilerParams")


def _vmem_limit_bytes():
    # Per-generation scoped-VMEM limit: ~3/4 of physical, capped at 96 MiB
    # (128 MiB parts -> 96 MiB; 64 MiB parts such as v7x -> 48 MiB).
    try:
        cap = int(pltpu.get_tpu_info().vmem_capacity_bytes)
    except Exception:
        cap = 64 * 1024 * 1024
    return max(32 * 1024 * 1024, min((cap * 3) // 4, 96 * 1024 * 1024))


_VMEM_LIMIT = _vmem_limit_bytes()


# ----------------------------- Pallas kernels ------------------------------

def _conv_pass1_kernel(*args, n_phases, tap_list, rows, use_mask):
    """Per-image tap-accumulating conv GEMM + per-image BN partial statistics.

    args = (phase_refs..., w_ref, mask_ref, raw_ref, sum_ref, sq_ref)
      phase refs : [1, L_p, C]  bf16 flattened stride-phase of the padded input
      w_ref      : [T, C, OC]   bf16, one [C, OC] matrix per tap
      mask_ref   : [R, 1]       f32, 1.0 on valid rows, 0.0 on junk columns
      raw_ref    : [1, R, OC]   bf16 raw conv output for this image
      sum_ref/sq_ref : [1, 1, OC] f32 per-image channel sum / sum-of-squares
    """
    ph_refs = args[:n_phases]
    w_ref, mask_ref = args[n_phases:n_phases + 2]
    raw_ref, sum_ref, sq_ref = args[n_phases + 2:]

    acc = None  # f32 value-chain accumulation; raw is stored exactly once.
    for t, (p_idx, off) in enumerate(tap_list):
        lhs = ph_refs[p_idx][0, off:off + rows, :]          # bf16, contiguous rows
        contrib = jnp.dot(lhs, w_ref[t], preferred_element_type=jnp.float32)
        acc = contrib if acc is None else acc + contrib

    stats_src = acc * mask_ref[...] if use_mask else acc
    sum_ref[0] = jnp.sum(stats_src, axis=0, keepdims=True)
    sq_ref[0] = jnp.sum(stats_src * stats_src, axis=0, keepdims=True)
    raw_ref[0] = acc.astype(raw_ref.dtype)


def _bn_act_kernel(raw_ref, sums_ref, sqs_ref, g_ref, b_ref, *rest,
                   count, ow, relu, has_identity):
    """Normalize one image; optionally fuse residual add + ReLU."""
    if has_identity:
        id_ref, out_ref = rest
    else:
        (out_ref,) = rest
    inv_n = 1.0 / count
    mean = jnp.sum(sums_ref[...], axis=0) * inv_n                 # [1, OC]
    var = jnp.sum(sqs_ref[...], axis=0) * inv_n - mean * mean     # biased (train BN)
    var = jnp.maximum(var, 0.0)                                   # cancellation guard
    scale = g_ref[...] * jax.lax.rsqrt(var + _BN_EPS)
    shift = b_ref[...] - mean * scale
    raw = raw_ref[0].astype(jnp.float32)                          # [OH, PW, OC]
    y = raw[:, :ow, :] * scale + shift                            # trim junk columns
    if has_identity:
        y = y + id_ref[0].astype(jnp.float32)
    if relu:
        y = jnp.maximum(y, 0.0)
    out_ref[0] = y.astype(out_ref.dtype)


def _maxpool_kernel(p00_ref, p01_ref, p10_ref, p11_ref, o_ref, *, oh, ow):
    """3x3 stride-2 max-pool over 4 stride-phase views (9 shifted slices)."""
    phase = ((p00_ref, p01_ref), (p10_ref, p11_ref))
    m = None
    for i in range(3):
        for j in range(3):
            r = phase[i % 2][j % 2]
            v = r[0, i // 2:i // 2 + oh, j // 2:j // 2 + ow, :]
            m = v if m is None else jnp.maximum(m, v)
    o_ref[0] = m


def _head_kernel(x_ref, w_ref, b_ref, o_ref):
    """Fused global average pool (over the spatial axis) + FC GEMM."""
    pooled = jnp.mean(x_ref[...].astype(jnp.float32), axis=1)     # [N, C]
    o_ref[...] = jnp.dot(pooled.astype(jnp.bfloat16), w_ref[...],
                         preferred_element_type=jnp.float32) + b_ref[...]


# --------------------------- fused conv + BN (+res +ReLU) -------------------

def conv_bn(x, w, gamma, beta, *, stride, pad, relu, identity=None):
    """Conv2d(bias=False) + BatchNorm2d(train mode) [+ residual add] [+ ReLU].

    x: [N, H, W, C] (NHWC, any float dtype);  w: PyTorch layout [OC, IC, KH, KW].
    Returns [N, OH, OW, OC] bf16.
    """
    OC, IC, KH, KW = w.shape
    N, H, W, C = x.shape
    assert IC == C
    cpad = (-C) % 8                                   # stem has C=3 -> pad to 8
    s = stride
    OH = (H + 2 * pad - KH) // s + 1
    OW = (W + 2 * pad - KW) // s + 1
    extra_w = (-(W + 2 * pad)) % s                    # padded width divisible by s
    # Single pad: spatial + channel, cast to bf16 once (halves phase DMA bytes).
    xp = jnp.pad(x.astype(jnp.bfloat16),
                 ((0, 0), (pad, pad + s), (pad, pad + extra_w), (0, cpad)))
    if cpad:
        w = jnp.pad(w, ((0, 0), (0, cpad), (0, 0), (0, 0)))
        C += cpad
    PW = (W + 2 * pad + extra_w) // s                 # per-phase row pitch
    R = OH * PW                                       # rows incl. junk columns

    # Stride-phase views: one strided slice per phase (~1x input bytes; no im2col).
    keys = sorted({(i % s, j % s) for i in range(KH) for j in range(KW)})
    phases = [xp[:, ri::s, ci::s, :].reshape(N, -1, C) for (ri, ci) in keys]
    tap_list = tuple((keys.index((i % s, j % s)), (i // s) * PW + (j // s))
                     for i in range(KH) for j in range(KW))

    wm = jnp.transpose(w, (2, 3, 1, 0)).reshape(KH * KW, C, OC).astype(jnp.bfloat16)
    use_mask = PW != OW
    mask = jnp.asarray(np.arange(R) % PW < OW, dtype=jnp.float32).reshape(R, 1)

    # ---- pass 1: conv GEMM + per-image BN partials (batch axis fully parallel)
    kern1 = functools.partial(_conv_pass1_kernel, n_phases=len(phases),
                              tap_list=tap_list, rows=R, use_mask=use_mask)
    in_specs1 = [pl.BlockSpec((1,) + p.shape[1:], lambda n: (n, 0, 0)) for p in phases]
    in_specs1 += [pl.BlockSpec(wm.shape, lambda n: (0, 0, 0)),
                  pl.BlockSpec(mask.shape, lambda n: (0, 0))]
    raw, csum, csq = pl.pallas_call(
        kern1,
        grid=(N,),
        in_specs=in_specs1,
        out_specs=(pl.BlockSpec((1, R, OC), lambda n: (n, 0, 0)),
                   pl.BlockSpec((1, 1, OC), lambda n: (n, 0, 0)),
                   pl.BlockSpec((1, 1, OC), lambda n: (n, 0, 0))),
        out_shape=(jax.ShapeDtypeStruct((N, R, OC), jnp.bfloat16),
                   jax.ShapeDtypeStruct((N, 1, OC), jnp.float32),
                   jax.ShapeDtypeStruct((N, 1, OC), jnp.float32)),
        compiler_params=_CompilerParams(dimension_semantics=("parallel",),
                                        vmem_limit_bytes=_VMEM_LIMIT),
    )(*phases, wm, mask)

    # ---- pass 2: normalize (+ residual + ReLU), one image per grid step
    raw4 = raw.reshape(N, OH, PW, OC)                 # free (leading-dim split)
    has_id = identity is not None
    kern2 = functools.partial(_bn_act_kernel, count=float(N * OH * OW), ow=OW,
                              relu=relu, has_identity=has_id)
    in_specs2 = [pl.BlockSpec((1, OH, PW, OC), lambda n: (n, 0, 0, 0)),
                 pl.BlockSpec((N, 1, OC), lambda n: (0, 0, 0)),
                 pl.BlockSpec((N, 1, OC), lambda n: (0, 0, 0)),
                 pl.BlockSpec((1, OC), lambda n: (0, 0)),
                 pl.BlockSpec((1, OC), lambda n: (0, 0))]
    args2 = [raw4, csum, csq,
             gamma.reshape(1, OC).astype(jnp.float32),
             beta.reshape(1, OC).astype(jnp.float32)]
    if has_id:
        in_specs2.append(pl.BlockSpec((1, OH, OW, OC), lambda n: (n, 0, 0, 0)))
        args2.append(identity.astype(jnp.bfloat16))
    out = pl.pallas_call(
        kern2,
        grid=(N,),
        in_specs=in_specs2,
        out_specs=pl.BlockSpec((1, OH, OW, OC), lambda n: (n, 0, 0, 0)),
        out_shape=jax.ShapeDtypeStruct((N, OH, OW, OC), jnp.bfloat16),
        compiler_params=_CompilerParams(dimension_semantics=("parallel",),
                                        vmem_limit_bytes=_VMEM_LIMIT),
    )(*args2)
    return out


# ------------------------------ pooling / fc --------------------------------

def maxpool_3x3_s2_p1(x):
    N, H, W, C = x.shape
    OH = (H + 2 - 3) // 2 + 1
    OW = (W + 2 - 3) // 2 + 1
    xp = jnp.pad(x, ((0, 0), (1, 2), (1, 2), (0, 0)), constant_values=-jnp.inf)
    phases = [xp[:, ri::2, ci::2, :] for ri in range(2) for ci in range(2)]
    kern = functools.partial(_maxpool_kernel, oh=OH, ow=OW)
    in_specs = [pl.BlockSpec((1,) + p.shape[1:], lambda n: (n, 0, 0, 0)) for p in phases]
    return pl.pallas_call(
        kern,
        grid=(N,),
        in_specs=in_specs,
        out_specs=pl.BlockSpec((1, OH, OW, C), lambda n: (n, 0, 0, 0)),
        out_shape=jax.ShapeDtypeStruct((N, OH, OW, C), x.dtype),
        compiler_params=_CompilerParams(dimension_semantics=("parallel",),
                                        vmem_limit_bytes=_VMEM_LIMIT),
    )(*phases)


def avgpool_fc(x, w, b, num_classes):
    """AdaptiveAvgPool2d((1,1)) + flatten + Linear, fused into one kernel."""
    N, H, W, C = x.shape
    ocp = ((num_classes + 127) // 128) * 128          # lane-dense FC output
    wt = jnp.zeros((C, ocp), jnp.bfloat16).at[:, :num_classes].set(
        jnp.transpose(w).astype(jnp.bfloat16))
    bp = jnp.zeros((1, ocp), jnp.float32).at[:, :num_classes].set(b.reshape(1, -1))
    out = pl.pallas_call(
        _head_kernel,
        out_shape=jax.ShapeDtypeStruct((N, ocp), jnp.float32),
        compiler_params=_CompilerParams(vmem_limit_bytes=_VMEM_LIMIT),
    )(x.reshape(N, H * W, C), wt, bp)
    return out[:, :num_classes]


# --------------------------------- model ------------------------------------

def basic_block(x, p):
    stride = p['stride']
    out = conv_bn(x, p['conv1_w'], p['bn1_g'], p['bn1_b'],
                  stride=stride, pad=1, relu=True)
    if 'down_w' in p:
        identity = conv_bn(x, p['down_w'], p['down_g'], p['down_b'],
                           stride=stride, pad=0, relu=False)
    else:
        identity = x
    # conv2 + BN + residual add + ReLU: add/ReLU fused into pass 2.
    return conv_bn(out, p['conv2_w'], p['bn2_g'], p['bn2_b'],
                   stride=1, pad=1, relu=True, identity=identity)


def resnet_forward(params, x_nchw):
    x = jnp.transpose(x_nchw, (0, 2, 3, 1))                      # NCHW -> NHWC
    x = conv_bn(x, params['conv1_w'], params['bn1_g'], params['bn1_b'],
                stride=2, pad=3, relu=True)
    x = maxpool_3x3_s2_p1(x)
    for stage in params['layers']:
        for bp in stage:
            x = basic_block(x, bp)
    return avgpool_fc(x, params['fc_w'], params['fc_b'],
                      num_classes=params['fc_w'].shape[0])


# --------------------------- parameter initialization -----------------------

def init_resnet_params(key, layers=(1, 1, 1, 1), num_classes=10):
    keys = iter(jax.random.split(key, 256))

    def nrm(shape, scale):
        return scale * jax.random.normal(next(keys), shape, jnp.float32)

    def conv_w(oc, ic, k):
        return nrm((oc, ic, k, k), 1.0 / np.sqrt(ic * k * k))

    def bn(c):
        return 1.0 + nrm((c,), 0.1), nrm((c,), 0.1)

    params = {'conv1_w': conv_w(64, 3, 7)}
    params['bn1_g'], params['bn1_b'] = bn(64)
    in_c = 64
    stages = []
    for oc, s, nb in zip((64, 128, 256, 512), (1, 2, 2, 2), layers):
        blocks = []
        for bi in range(nb):
            stride = s if bi == 0 else 1
            bp = {'stride': stride,
                  'conv1_w': conv_w(oc, in_c, 3),
                  'conv2_w': conv_w(oc, oc, 3)}
            bp['bn1_g'], bp['bn1_b'] = bn(oc)
            bp['bn2_g'], bp['bn2_b'] = bn(oc)
            if stride != 1 or in_c != oc:            # downsample path (1x1 conv + BN)
                bp['down_w'] = conv_w(oc, in_c, 1)
                bp['down_g'], bp['down_b'] = bn(oc)
            blocks.append(bp)
            in_c = oc
        stages.append(blocks)
    params['layers'] = stages
    params['fc_w'] = nrm((num_classes, 512), 0.05)   # 512 * BasicBlock.expansion
    params['fc_b'] = nrm((num_classes,), 0.01)
    return params


if __name__ == "__main__":
    key = jax.random.PRNGKey(0)
    pkey, xkey = jax.random.split(key)
    params = init_resnet_params(pkey, layers=(1, 1, 1, 1), num_classes=10)
    x = jax.random.normal(xkey, (2, 3, 16, 16), jnp.float32)  # NCHW, like PyTorch
    logits = resnet_forward(params, x)
    jax.block_until_ready(logits)
    assert logits.shape == (2, 10), logits.shape
    assert bool(jnp.all(jnp.isfinite(logits))), "non-finite logits"
    print("KERNEL_OK")
</pallas_src>

<mosaic_0001>
module attributes {stable_mosaic.version = 11 : i64} {
  func.func @_conv_pass1_kernel(%arg0: i32, %arg1: memref<1x132x8xbf16, #tpu.memory_space<vmem>>, %arg2: memref<1x132x8xbf16, #tpu.memory_space<vmem>>, %arg3: memref<1x132x8xbf16, #tpu.memory_space<vmem>>, %arg4: memref<1x132x8xbf16, #tpu.memory_space<vmem>>, %arg5: memref<49x8x64xbf16, #tpu.memory_space<vmem>>, %arg6: memref<88x1xf32, #tpu.memory_space<vmem>>, %arg7: memref<1x88x64xbf16, #tpu.memory_space<vmem>>, %arg8: memref<1x1x64xf32, #tpu.memory_space<vmem>>, %arg9: memref<1x1x64xf32, #tpu.memory_space<vmem>>) attributes {dimension_semantics = [#tpu.dimension_semantics<parallel>], iteration_bounds = array<i64: 2>, scalar_prefetch = 0 : i64, scratch_operands = 0 : i64, tpu.core_type = #tpu.core_type<tc>, window_params = [{transform_indices = @transform_0, window_bounds = array<i64: 1, 132, 8>}, {transform_indices = @transform_1, window_bounds = array<i64: 1, 132, 8>}, {transform_indices = @transform_2, window_bounds = array<i64: 1, 132, 8>}, {transform_indices = @transform_3, window_bounds = array<i64: 1, 132, 8>}, {pipeline_mode = #tpu.pipeline_mode<synchronous>, transform_indices = @transform_4, window_bounds = array<i64: 49, 8, 64>}, {pipeline_mode = #tpu.pipeline_mode<synchronous>, transform_indices = @transform_5, window_bounds = array<i64: 88, 1>}, {transform_indices = @transform_6, window_bounds = array<i64: 1, 88, 64>}, {transform_indices = @transform_7, window_bounds = array<i64: 1, 1, 64>}, {transform_indices = @transform_8, window_bounds = array<i64: 1, 1, 64>}]} {
    %c0 = arith.constant 0 : index
    %c0_0 = arith.constant 0 : index
    %c0_1 = arith.constant 0 : index
    %0 = vector.load %arg1[%c0, %c0_0, %c0_1] : memref<1x132x8xbf16, #tpu.memory_space<vmem>>, vector<1x88x8xbf16>
    %1 = vector.shape_cast %0 : vector<1x88x8xbf16> to vector<88x8xbf16>
    %c0_2 = arith.constant 0 : index
    %c0_3 = arith.constant 0 : index
    %c0_4 = arith.constant 0 : index
    %2 = vector.load %arg5[%c0_2, %c0_3, %c0_4] : memref<49x8x64xbf16, #tpu.memory_space<vmem>>, vector<1x8x64xbf16>
    %3 = vector.shape_cast %2 : vector<1x8x64xbf16> to vector<8x64xbf16>
    %cst = arith.constant dense<0.000000e+00> : vector<88x64xf32>
    %4 = tpu.matmul %1, %3, %cst {dimension_numbers = #tpu.dot_dimension_numbers<[1], [0], [0], [1], [0, 0, 1, 1], [], []>} : vector<88x8xbf16>, vector<8x64xbf16>, vector<88x64xf32> -> vector<88x64xf32>
    %c0_5 = arith.constant 0 : index
    %c0_6 = arith.constant 0 : index
    %c0_7 = arith.constant 0 : index
    %5 = vector.load %arg2[%c0_5, %c0_6, %c0_7] : memref<1x132x8xbf16, #tpu.memory_space<vmem>>, vector<1x88x8xbf16>
    %6 = vector.shape_cast %5 : vector<1x88x8xbf16> to vector<88x8xbf16>
    %c1 = arith.constant 1 : index
    %c0_8 = arith.constant 0 : index
    %c0_9 = arith.constant 0 : index
    %7 = vector.load %arg5[%c1, %c0_8, %c0_9] : memref<49x8x64xbf16, #tpu.memory_space<vmem>>, vector<1x8x64xbf16>
    %8 = vector.shape_cast %7 : vector<1x8x64xbf16> to vector<8x64xbf16>
    %cst_10 = arith.constant dense<0.000000e+00> : vector<88x64xf32>
    %9 = tpu.matmul %6, %8, %cst_10 {dimension_numbers = #tpu.dot_dimension_numbers<[1], [0], [0], [1], [0, 0, 1, 1], [], []>} : vector<88x8xbf16>, vector<8x64xbf16>, vector<88x64xf32> -> vector<88x64xf32>
    %10 = arith.addf %4, %9 : vector<88x64xf32>
    %c0_11 = arith.constant 0 : index
    %c1_12 = arith.constant 1 : index
    %c0_13 = arith.constant 0 : index
    %11 = vector.load %arg1[%c0_11, %c1_12, %c0_13] : memref<1x132x8xbf16, #tpu.memory_space<vmem>>, vector<1x88x8xbf16>
    %12 = vector.shape_cast %11 : vector<1x88x8xbf16> to vector<88x8xbf16>
    %c2 = arith.constant 2 : index
    %c0_14 = arith.constant 0 : index
    %c0_15 = arith.constant 0 : index
    %13 = vector.load %arg5[%c2, %c0_14, %c0_15] : memref<49x8x64xbf16, #tpu.memory_space<vmem>>, vector<1x8x64xbf16>
    %14 = vector.shape_cast %13 : vector<1x8x64xbf16> to vector<8x64xbf16>
    %cst_16 = arith.constant dense<0.000000e+00> : vector<88x64xf32>
    %15 = tpu.matmul %12, %14, %cst_16 {dimension_numbers = #tpu.dot_dimension_numbers<[1], [0], [0], [1], [0, 0, 1, 1], [], []>} : vector<88x8xbf16>, vector<8x64xbf16>, vector<88x64xf32> -> vector<88x64xf32>
    %16 = arith.addf %10, %15 : vector<88x64xf32>
    %c0_17 = arith.constant 0 : index
    %c1_18 = arith.constant 1 : index
    %c0_19 = arith.constant 0 : index
    %17 = vector.load %arg2[%c0_17, %c1_18, %c0_19] : memref<1x132x8xbf16, #tpu.memory_space<vmem>>, vector<1x88x8xbf16>
    %18 = vector.shape_cast %17 : vector<1x88x8xbf16> to vector<88x8xbf16>
    %c3 = arith.constant 3 : index
    %c0_20 = arith.constant 0 : index
    %c0_21 = arith.constant 0 : index
    %19 = vector.load %arg5[%c3, %c0_20, %c0_21] : memref<49x8x64xbf16, #tpu.memory_space<vmem>>, vector<1x8x64xbf16>
    %20 = vector.shape_cast %19 : vector<1x8x64xbf16> to vector<8x64xbf16>
    %cst_22 = arith.constant dense<0.000000e+00> : vector<88x64xf32>
    %21 = tpu.matmul %18, %20, %cst_22 {dimension_numbers = #tpu.dot_dimension_numbers<[1], [0], [0], [1], [0, 0, 1, 1], [], []>} : vector<88x8xbf16>, vector<8x64xbf16>, vector<88x64xf32> -> vector<88x64xf32>
    %22 = arith.addf %16, %21 : vector<88x64xf32>
    %c0_23 = arith.constant 0 : index
    %c2_24 = arith.constant 2 : index
    %c0_25 = arith.constant 0 : index
    %23 = vector.load %arg1[%c0_23, %c2_24, %c0_25] : memref<1x132x8xbf16, #tpu.memory_space<vmem>>, vector<1x88x8xbf16>
    %24 = vector.shape_cast %23 : vector<1x88x8xbf16> to vector<88x8xbf16>
    %c4 = arith.constant 4 : index
    %c0_26 = arith.constant 0 : index
    %c0_27 = arith.constant 0 : index
    %25 = vector.load %arg5[%c4, %c0_26, %c0_27] : memref<49x8x64xbf16, #tpu.memory_space<vmem>>, vector<1x8x64xbf16>
    %26 = vector.shape_cast %25 : vector<1x8x64xbf16> to vector<8x64xbf16>
    %cst_28 = arith.constant dense<0.000000e+00> : vector<88x64xf32>
    %27 = tpu.matmul %24, %26, %cst_28 {dimension_numbers = #tpu.dot_dimension_numbers<[1], [0], [0], [1], [0, 0, 1, 1], [], []>} : vector<88x8xbf16>, vector<8x64xbf16>, vector<88x64xf32> -> vector<88x64xf32>
    %28 = arith.addf %22, %27 : vector<88x64xf32>
    %c0_29 = arith.constant 0 : index
    %c2_30 = arith.constant 2 : index
    %c0_31 = arith.constant 0 : index
    %29 = vector.load %arg2[%c0_29, %c2_30, %c0_31] : memref<1x132x8xbf16, #tpu.memory_space<vmem>>, vector<1x88x8xbf16>
    %30 = vector.shape_cast %29 : vector<1x88x8xbf16> to vector<88x8xbf16>
    %c5 = arith.constant 5 : index
    %c0_32 = arith.constant 0 : index
    %c0_33 = arith.constant 0 : index
    %31 = vector.load %arg5[%c5, %c0_32, %c0_33] : memref<49x8x64xbf16, #tpu.memory_space<vmem>>, vector<1x8x64xbf16>
    %32 = vector.shape_cast %31 : vector<1x8x64xbf16> to vector<8x64xbf16>
    %cst_34 = arith.constant dense<0.000000e+00> : vector<88x64xf32>
    %33 = tpu.matmul %30, %32, %cst_34 {dimension_numbers = #tpu.dot_dimension_numbers<[1], [0], [0], [1], [0, 0, 1, 1], [], []>} : vector<88x8xbf16>, vector<8x64xbf16>, vector<88x64xf32> -> vector<88x64xf32>
    %34 = arith.addf %28, %33 : vector<88x64xf32>
    %c0_35 = arith.constant 0 : index
    %c3_36 = arith.constant 3 : index
    %c0_37 = arith.constant 0 : index
    %35 = vector.load %arg1[%c0_35, %c3_36, %c0_37] : memref<1x132x8xbf16, #tpu.memory_space<vmem>>, vector<1x88x8xbf16>
    %36 = vector.shape_cast %35 : vector<1x88x8xbf16> to vector<88x8xbf16>
    %c6 = arith.constant 6 : index
    %c0_38 = arith.constant 0 : index
    %c0_39 = arith.constant 0 : index
    %37 = vector.load %arg5[%c6, %c0_38, %c0_39] : memref<49x8x64xbf16, #tpu.memory_space<vmem>>, vector<1x8x64xbf16>
    %38 = vector.shape_cast %37 : vector<1x8x64xbf16> to vector<8x64xbf16>
    %cst_40 = arith.constant dense<0.000000e+00> : vector<88x64xf32>
    %39 = tpu.matmul %36, %38, %cst_40 {dimension_numbers = #tpu.dot_dimension_numbers<[1], [0], [0], [1], [0, 0, 1, 1], [], []>} : vector<88x8xbf16>, vector<8x64xbf16>, vector<88x64xf32> -> vector<88x64xf32>
    %40 = arith.addf %34, %39 : vector<88x64xf32>
    %c0_41 = arith.constant 0 : index
    %c0_42 = arith.constant 0 : index
    %c0_43 = arith.constant 0 : index
    %41 = vector.load %arg3[%c0_41, %c0_42, %c0_43] : memref<1x132x8xbf16, #tpu.memory_space<vmem>>, vector<1x88x8xbf16>
    %42 = vector.shape_cast %41 : vector<1x88x8xbf16> to vector<88x8xbf16>
    %c7 = arith.constant 7 : index
    %c0_44 = arith.constant 0 : index
    %c0_45 = arith.constant 0 : index
    %43 = vector.load %arg5[%c7, %c0_44, %c0_45] : memref<49x8x64xbf16, #tpu.memory_space<vmem>>, vector<1x8x64xbf16>
    %44 = vector.shape_cast %43 : vector<1x8x64xbf16> to vector<8x64xbf16>
    %cst_46 = arith.constant dense<0.000000e+00> : vector<88x64xf32>
    %45 = tpu.matmul %42, %44, %cst_46 {dimension_numbers = #tpu.dot_dimension_numbers<[1], [0], [0], [1], [0, 0, 1, 1], [], []>} : vector<88x8xbf16>, vector<8x64xbf16>, vector<88x64xf32> -> vector<88x64xf32>
    %46 = arith.addf %40, %45 : vector<88x64xf32>
    %c0_47 = arith.constant 0 : index
    %c0_48 = arith.constant 0 : index
    %c0_49 = arith.constant 0 : index
    %47 = vector.load %arg4[%c0_47, %c0_48, %c0_49] : memref<1x132x8xbf16, #tpu.memory_space<vmem>>, vector<1x88x8xbf16>
    %48 = vector.shape_cast %47 : vector<1x88x8xbf16> to vector<88x8xbf16>
    %c8 = arith.constant 8 : index
    %c0_50 = arith.constant 0 : index
    %c0_51 = arith.constant 0 : index
    %49 = vector.load %arg5[%c8, %c0_50, %c0_51] : memref<49x8x64xbf16, #tpu.memory_space<vmem>>, vector<1x8x64xbf16>
    %50 = vector.shape_cast %49 : vector<1x8x64xbf16> to vector<8x64xbf16>
    %cst_52 = arith.constant dense<0.000000e+00> : vector<88x64xf32>
    %51 = tpu.matmul %48, %50, %cst_52 {dimension_numbers = #tpu.dot_dimension_numbers<[1], [0], [0], [1], [0, 0, 1, 1], [], []>} : vector<88x8xbf16>, vector<8x64xbf16>, vector<88x64xf32> -> vector<88x64xf32>
    %52 = arith.addf %46, %51 : vector<88x64xf32>
    %c0_53 = arith.constant 0 : index
    %c1_54 = arith.constant 1 : index
    %c0_55 = arith.constant 0 : index
    %53 = vector.load %arg3[%c0_53, %c1_54, %c0_55] : memref<1x132x8xbf16, #tpu.memory_space<vmem>>, vector<1x88x8xbf16>
    %54 = vector.shape_cast %53 : vector<1x88x8xbf16> to vector<88x8xbf16>
    %c9 = arith.constant 9 : index
    %c0_56 = arith.constant 0 : index
    %c0_57 = arith.constant 0 : index
    %55 = vector.load %arg5[%c9, %c0_56, %c0_57] : memref<49x8x64xbf16, #tpu.memory_space<vmem>>, vector<1x8x64xbf16>
    %56 = vector.shape_cast %55 : vector<1x8x64xbf16> to vector<8x64xbf16>
    %cst_58 = arith.constant dense<0.000000e+00> : vector<88x64xf32>
    %57 = tpu.matmul %54, %56, %cst_58 {dimension_numbers = #tpu.dot_dimension_numbers<[1], [0], [0], [1], [0, 0, 1, 1], [], []>} : vector<88x8xbf16>, vector<8x64xbf16>, vector<88x64xf32> -> vector<88x64xf32>
    %58 = arith.addf %52, %57 : vector<88x64xf32>
    %c0_59 = arith.constant 0 : index
    %c1_60 = arith.constant 1 : index
    %c0_61 = arith.constant 0 : index
    %59 = vector.load %arg4[%c0_59, %c1_60, %c0_61] : memref<1x132x8xbf16, #tpu.memory_space<vmem>>, vector<1x88x8xbf16>
    %60 = vector.shape_cast %59 : vector<1x88x8xbf16> to vector<88x8xbf16>
    %c10 = arith.constant 10 : index
    %c0_62 = arith.constant 0 : index
    %c0_63 = arith.constant 0 : index
    %61 = vector.load %arg5[%c10, %c0_62, %c0_63] : memref<49x8x64xbf16, #tpu.memory_space<vmem>>, vector<1x8x64xbf16>
    %62 = vector.shape_cast %61 : vector<1x8x64xbf16> to vector<8x64xbf16>
    %cst_64 = arith.constant dense<0.000000e+00> : vector<88x64xf32>
    %63 = tpu.matmul %60, %62, %cst_64 {dimension_numbers = #tpu.dot_dimension_numbers<[1], [0], [0], [1], [0, 0, 1, 1], [], []>} : vector<88x8xbf16>, vector<8x64xbf16>, vector<88x64xf32> -> vector<88x64xf32>
    %64 = arith.addf %58, %63 : vector<88x64xf32>
    %c0_65 = arith.constant 0 : index
    %c2_66 = arith.constant 2 : index
    %c0_67 = arith.constant 0 : index
    %65 = vector.load %arg3[%c0_65, %c2_66, %c0_67] : memref<1x132x8xbf16, #tpu.memory_space<vmem>>, vector<1x88x8xbf16>
    %66 = vector.shape_cast %65 : vector<1x88x8xbf16> to vector<88x8xbf16>
    %c11 = arith.constant 11 : index
    %c0_68 = arith.constant 0 : index
    %c0_69 = arith.constant 0 : index
    %67 = vector.load %arg5[%c11, %c0_68, %c0_69] : memref<49x8x64xbf16, #tpu.memory_space<vmem>>, vector<1x8x64xbf16>
    %68 = vector.shape_cast %67 : vector<1x8x64xbf16> to vector<8x64xbf16>
    %cst_70 = arith.constant dense<0.000000e+00> : vector<88x64xf32>
    %69 = tpu.matmul %66, %68, %cst_70 {dimension_numbers = #tpu.dot_dimension_numbers<[1], [0], [0], [1], [0, 0, 1, 1], [], []>} : vector<88x8xbf16>, vector<8x64xbf16>, vector<88x64xf32> -> vector<88x64xf32>
    %70 = arith.addf %64, %69 : vector<88x64xf32>
    %c0_71 = arith.constant 0 : index
    %c2_72 = arith.constant 2 : index
    %c0_73 = arith.constant 0 : index
    %71 = vector.load %arg4[%c0_71, %c2_72, %c0_73] : memref<1x132x8xbf16, #tpu.memory_space<vmem>>, vector<1x88x8xbf16>
    %72 = vector.shape_cast %71 : vector<1x88x8xbf16> to vector<88x8xbf16>
    %c12 = arith.constant 12 : index
    %c0_74 = arith.constant 0 : index
    %c0_75 = arith.constant 0 : index
    %73 = vector.load %arg5[%c12, %c0_74, %c0_75] : memref<49x8x64xbf16, #tpu.memory_space<vmem>>, vector<1x8x64xbf16>
    %74 = vector.shape_cast %73 : vector<1x8x64xbf16> to vector<8x64xbf16>
    %cst_76 = arith.constant dense<0.000000e+00> : vector<88x64xf32>
    %75 = tpu.matmul %72, %74, %cst_76 {dimension_numbers = #tpu.dot_dimension_numbers<[1], [0], [0], [1], [0, 0, 1, 1], [], []>} : vector<88x8xbf16>, vector<8x64xbf16>, vector<88x64xf32> -> vector<88x64xf32>
    %76 = arith.addf %70, %75 : vector<88x64xf32>
    %c0_77 = arith.constant 0 : index
    %c3_78 = arith.constant 3 : index
    %c0_79 = arith.constant 0 : index
    %77 = vector.load %arg3[%c0_77, %c3_78, %c0_79] : memref<1x132x8xbf16, #tpu.memory_space<vmem>>, vector<1x88x8xbf16>
    %78 = vector.shape_cast %77 : vector<1x88x8xbf16> to vector<88x8xbf16>
    %c13 = arith.constant 13 : index
    %c0_80 = arith.constant 0 : index
    %c0_81 = arith.constant 0 : index
    %79 = vector.load %arg5[%c13, %c0_80, %c0_81] : memref<49x8x64xbf16, #tpu.memory_space<vmem>>, vector<1x8x64xbf16>
    %80 = vector.shape_cast %79 : vector<1x8x64xbf16> to vector<8x64xbf16>
    %cst_82 = arith.constant dense<0.000000e+00> : vector<88x64xf32>
    %81 = tpu.matmul %78, %80, %cst_82 {dimension_numbers = #tpu.dot_dimension_numbers<[1], [0], [0], [1], [0, 0, 1, 1], [], []>} : vector<88x8xbf16>, vector<8x64xbf16>, vector<88x64xf32> -> vector<88x64xf32>
    %82 = arith.addf %76, %81 : vector<88x64xf32>
    %c0_83 = arith.constant 0 : index
    %c11_84 = arith.constant 11 : index
    %c0_85 = arith.constant 0 : index
    %83 = vector.load %arg1[%c0_83, %c11_84, %c0_85] : memref<1x132x8xbf16, #tpu.memory_space<vmem>>, vector<1x88x8xbf16>
    %84 = vector.shape_cast %83 : vector<1x88x8xbf16> to vector<88x8xbf16>
    %c14 = arith.constant 14 : index
    %c0_86 = arith.constant 0 : index
    %c0_87 = arith.constant 0 : index
    %85 = vector.load %arg5[%c14, %c0_86, %c0_87] : memref<49x8x64xbf16, #tpu.memory_space<vmem>>, vector<1x8x64xbf16>
    %86 = vector.shape_cast %85 : vector<1x8x64xbf16> to vector<8x64xbf16>
    %cst_88 = arith.constant dense<0.000000e+00> : vector<88x64xf32>
    %87 = tpu.matmul %84, %86, %cst_88 {dimension_numbers = #tpu.dot_dimension_numbers<[1], [0], [0], [1], [0, 0, 1, 1], [], []>} : vector<88x8xbf16>, vector<8x64xbf16>, vector<88x64xf32> -> vector<88x64xf32>
    %88 = arith.addf %82, %87 : vector<88x64xf32>
    %c0_89 = arith.constant 0 : index
    %c11_90 = arith.constant 11 : index
    %c0_91 = arith.constant 0 : index
    %89 = vector.load %arg2[%c0_89, %c11_90, %c0_91] : memref<1x132x8xbf16, #tpu.memory_space<vmem>>, vector<1x88x8xbf16>
    %90 = vector.shape_cast %89 : vector<1x88x8xbf16> to vector<88x8xbf16>
    %c15 = arith.constant 15 : index
    %c0_92 = arith.constant 0 : index
    %c0_93 = arith.constant 0 : index
    %91 = vector.load %arg5[%c15, %c0_92, %c0_93] : memref<49x8x64xbf16, #tpu.memory_space<vmem>>, vector<1x8x64xbf16>
    %92 = vector.shape_cast %91 : vector<1x8x64xbf16> to vector<8x64xbf16>
    %cst_94 = arith.constant dense<0.000000e+00> : vector<88x64xf32>
    %93 = tpu.matmul %90, %92, %cst_94 {dimension_numbers = #tpu.dot_dimension_numbers<[1], [0], [0], [1], [0, 0, 1, 1], [], []>} : vector<88x8xbf16>, vector<8x64xbf16>, vector<88x64xf32> -> vector<88x64xf32>
    %94 = arith.addf %88, %93 : vector<88x64xf32>
    %c0_95 = arith.constant 0 : index
    %c12_96 = arith.constant 12 : index
    %c0_97 = arith.constant 0 : index
    %95 = vector.load %arg1[%c0_95, %c12_96, %c0_97] : memref<1x132x8xbf16, #tpu.memory_space<vmem>>, vector<1x88x8xbf16>
    %96 = vector.shape_cast %95 : vector<1x88x8xbf16> to vector<88x8xbf16>
    %c16 = arith.constant 16 : index
    %c0_98 = arith.constant 0 : index
    %c0_99 = arith.constant 0 : index
    %97 = vector.load %arg5[%c16, %c0_98, %c0_99] : memref<49x8x64xbf16, #tpu.memory_space<vmem>>, vector<1x8x64xbf16>
    %98 = vector.shape_cast %97 : vector<1x8x64xbf16> to vector<8x64xbf16>
    %cst_100 = arith.constant dense<0.000000e+00> : vector<88x64xf32>
    %99 = tpu.matmul %96, %98, %cst_100 {dimension_numbers = #tpu.dot_dimension_numbers<[1], [0], [0], [1], [0, 0, 1, 1], [], []>} : vector<88x8xbf16>, vector<8x64xbf16>, vector<88x64xf32> -> vector<88x64xf32>
    %100 = arith.addf %94, %99 : vector<88x64xf32>
    %c0_101 = arith.constant 0 : index
    %c12_102 = arith.constant 12 : index
    %c0_103 = arith.constant 0 : index
    %101 = vector.load %arg2[%c0_101, %c12_102, %c0_103] : memref<1x132x8xbf16, #tpu.memory_space<vmem>>, vector<1x88x8xbf16>
    %102 = vector.shape_cast %101 : vector<1x88x8xbf16> to vector<88x8xbf16>
    %c17 = arith.constant 17 : index
    %c0_104 = arith.constant 0 : index
    %c0_105 = arith.constant 0 : index
    %103 = vector.load %arg5[%c17, %c0_104, %c0_105] : memref<49x8x64xbf16, #tpu.memory_space<vmem>>, vector<1x8x64xbf16>
    %104 = vector.shape_cast %103 : vector<1x8x64xbf16> to vector<8x64xbf16>
    %cst_106 = arith.constant dense<0.000000e+00> : vector<88x64xf32>
    %105 = tpu.matmul %102, %104, %cst_106 {dimension_numbers = #tpu.dot_dimension_numbers<[1], [0], [0], [1], [0, 0, 1, 1], [], []>} : vector<88x8xbf16>, vector<8x64xbf16>, vector<88x64xf32> -> vector<88x64xf32>
    %106 = arith.addf %100, %105 : vector<88x64xf32>
    %c0_107 = arith.constant 0 : index
    %c13_108 = arith.constant 13 : index
    %c0_109 = arith.constant 0 : index
    %107 = vector.load %arg1[%c0_107, %c13_108, %c0_109] : memref<1x132x8xbf16, #tpu.memory_space<vmem>>, vector<1x88x8xbf16>
    %108 = vector.shape_cast %107 : vector<1x88x8xbf16> to vector<88x8xbf16>
    %c18 = arith.constant 18 : index
    %c0_110 = arith.constant 0 : index
    %c0_111 = arith.constant 0 : index
    %109 = vector.load %arg5[%c18, %c0_110, %c0_111] : memref<49x8x64xbf16, #tpu.memory_space<vmem>>, vector<1x8x64xbf16>
    %110 = vector.shape_cast %109 : vector<1x8x64xbf16> to vector<8x64xbf16>
    %cst_112 = arith.constant dense<0.000000e+00> : vector<88x64xf32>
    %111 = tpu.matmul %108, %110, %cst_112 {dimension_numbers = #tpu.dot_dimension_numbers<[1], [0], [0], [1], [0, 0, 1, 1], [], []>} : vector<88x8xbf16>, vector<8x64xbf16>, vector<88x64xf32> -> vector<88x64xf32>
    %112 = arith.addf %106, %111 : vector<88x64xf32>
    %c0_113 = arith.constant 0 : index
    %c13_114 = arith.constant 13 : index
    %c0_115 = arith.constant 0 : index
    %113 = vector.load %arg2[%c0_113, %c13_114, %c0_115] : memref<1x132x8xbf16, #tpu.memory_space<vmem>>, vector<1x88x8xbf16>
    %114 = vector.shape_cast %113 : vector<1x88x8xbf16> to vector<88x8xbf16>
    %c19 = arith.constant 19 : index
    %c0_116 = arith.constant 0 : index
    %c0_117 = arith.constant 0 : index
    %115 = vector.load %arg5[%c19, %c0_116, %c0_117] : memref<49x8x64xbf16, #tpu.memory_space<vmem>>, vector<1x8x64xbf16>
    %116 = vector.shape_cast %115 : vector<1x8x64xbf16> to vector<8x64xbf16>
    %cst_118 = arith.constant dense<0.000000e+00> : vector<88x64xf32>
    %117 = tpu.matmul %114, %116, %cst_118 {dimension_numbers = #tpu.dot_dimension_numbers<[1], [0], [0], [1], [0, 0, 1, 1], [], []>} : vector<88x8xbf16>, vector<8x64xbf16>, vector<88x64xf32> -> vector<88x64xf32>
    %118 = arith.addf %112, %117 : vector<88x64xf32>
    %c0_119 = arith.constant 0 : index
    %c14_120 = arith.constant 14 : index
    %c0_121 = arith.constant 0 : index
    %119 = vector.load %arg1[%c0_119, %c14_120, %c0_121] : memref<1x132x8xbf16, #tpu.memory_space<vmem>>, vector<1x88x8xbf16>
    %120 = vector.shape_cast %119 : vector<1x88x8xbf16> to vector<88x8xbf16>
    %c20 = arith.constant 20 : index
    %c0_122 = arith.constant 0 : index
    %c0_123 = arith.constant 0 : index
    %121 = vector.load %arg5[%c20, %c0_122, %c0_123] : memref<49x8x64xbf16, #tpu.memory_space<vmem>>, vector<1x8x64xbf16>
    %122 = vector.shape_cast %121 : vector<1x8x64xbf16> to vector<8x64xbf16>
    %cst_124 = arith.constant dense<0.000000e+00> : vector<88x64xf32>
    %123 = tpu.matmul %120, %122, %cst_124 {dimension_numbers = #tpu.dot_dimension_numbers<[1], [0], [0], [1], [0, 0, 1, 1], [], []>} : vector<88x8xbf16>, vector<8x64xbf16>, vector<88x64xf32> -> vector<88x64xf32>
    %124 = arith.addf %118, %123 : vector<88x64xf32>
    %c0_125 = arith.constant 0 : index
    %c11_126 = arith.constant 11 : index
    %c0_127 = arith.constant 0 : index
    %125 = vector.load %arg3[%c0_125, %c11_126, %c0_127] : memref<1x132x8xbf16, #tpu.memory_space<vmem>>, vector<1x88x8xbf16>
    %126 = vector.shape_cast %125 : vector<1x88x8xbf16> to vector<88x8xbf16>
    %c21 = arith.constant 21 : index
    %c0_128 = arith.constant 0 : index
    %c0_129 = arith.constant 0 : index
    %127 = vector.load %arg5[%c21, %c0_128, %c0_129] : memref<49x8x64xbf16, #tpu.memory_space<vmem>>, vector<1x8x64xbf16>
    %128 = vector.shape_cast %127 : vector<1x8x64xbf16> to vector<8x64xbf16>
    %cst_130 = arith.constant dense<0.000000e+00> : vector<88x64xf32>
    %129 = tpu.matmul %126, %128, %cst_130 {dimension_numbers = #tpu.dot_dimension_numbers<[1], [0], [0], [1], [0, 0, 1, 1], [], []>} : vector<88x8xbf16>, vector<8x64xbf16>, vector<88x64xf32> -> vector<88x64xf32>
    %130 = arith.addf %124, %129 : vector<88x64xf32>
    %c0_131 = arith.constant 0 : index
    %c11_132 = arith.constant 11 : index
    %c0_133 = arith.constant 0 : index
    %131 = vector.load %arg4[%c0_131, %c11_132, %c0_133] : memref<1x132x8xbf16, #tpu.memory_space<vmem>>, vector<1x88x8xbf16>
    %132 = vector.shape_cast %131 : vector<1x88x8xbf16> to vector<88x8xbf16>
    %c22 = arith.constant 22 : index
    %c0_134 = arith.constant 0 : index
    %c0_135 = arith.constant 0 : index
    %133 = vector.load %arg5[%c22, %c0_134, %c0_135] : memref<49x8x64xbf16, #tpu.memory_space<vmem>>, vector<1x8x64xbf16>
    %134 = vector.shape_cast %133 : vector<1x8x64xbf16> to vector<8x64xbf16>
    %cst_136 = arith.constant dense<0.000000e+00> : vector<88x64xf32>
    %135 = tpu.matmul %132, %134, %cst_136 {dimension_numbers = #tpu.dot_dimension_numbers<[1], [0], [0], [1], [0, 0, 1, 1], [], []>} : vector<88x8xbf16>, vector<8x64xbf16>, vector<88x64xf32> -> vector<88x64xf32>
    %136 = arith.addf %130, %135 : vector<88x64xf32>
    %c0_137 = arith.constant 0 : index
    %c12_138 = arith.constant 12 : index
    %c0_139 = arith.constant 0 : index
    %137 = vector.load %arg3[%c0_137, %c12_138, %c0_139] : memref<1x132x8xbf16, #tpu.memory_space<vmem>>, vector<1x88x8xbf16>
    %138 = vector.shape_cast %137 : vector<1x88x8xbf16> to vector<88x8xbf16>
    %c23 = arith.constant 23 : index
    %c0_140 = arith.constant 0 : index
    %c0_141 = arith.constant 0 : index
    %139 = vector.load %arg5[%c23, %c0_140, %c0_141] : memref<49x8x64xbf16, #tpu.memory_space<vmem>>, vector<1x8x64xbf16>
    %140 = vector.shape_cast %139 : vector<1x8x64xbf16> to vector<8x64xbf16>
    %cst_142 = arith.constant dense<0.000000e+00> : vector<88x64xf32>
    %141 = tpu.matmul %138, %140, %cst_142 {dimension_numbers = #tpu.dot_dimension_numbers<[1], [0], [0], [1], [0, 0, 1, 1], [], []>} : vector<88x8xbf16>, vector<8x64xbf16>, vector<88x64xf32> -> vector<88x64xf32>
    %142 = arith.addf %136, %141 : vector<88x64xf32>
    %c0_143 = arith.constant 0 : index
    %c12_144 = arith.constant 12 : index
    %c0_145 = arith.constant 0 : index
    %143 = vector.load %arg4[%c0_143, %c12_144, %c0_145] : memref<1x132x8xbf16, #tpu.memory_space<vmem>>, vector<1x88x8xbf16>
    %144 = vector.shape_cast %143 : vector<1x88x8xbf16> to vector<88x8xbf16>
    %c24 = arith.constant 24 : index
    %c0_146 = arith.constant 0 : index
    %c0_147 = arith.constant 0 : index
    %145 = vector.load %arg5[%c24, %c0_146, %c0_147] : memref<49x8x64xbf16, #tpu.memory_space<vmem>>, vector<1x8x64xbf16>
    %146 = vector.shape_cast %145 : vector<1x8x64xbf16> to vector<8x64xbf16>
    %cst_148 = arith.constant dense<0.000000e+00> : vector<88x64xf32>
    %147 = tpu.matmul %144, %146, %cst_148 {dimension_numbers = #tpu.dot_dimension_numbers<[1], [0], [0], [1], [0, 0, 1, 1], [], []>} : vector<88x8xbf16>, vector<8x64xbf16>, vector<88x64xf32> -> vector<88x64xf32>
    %148 = arith.addf %142, %147 : vector<88x64xf32>
    %c0_149 = arith.constant 0 : index
    %c13_150 = arith.constant 13 : index
    %c0_151 = arith.constant 0 : index
    %149 = vector.load %arg3[%c0_149, %c13_150, %c0_151] : memref<1x132x8xbf16, #tpu.memory_space<vmem>>, vector<1x88x8xbf16>
    %150 = vector.shape_cast %149 : vector<1x88x8xbf16> to vector<88x8xbf16>
    %c25 = arith.constant 25 : index
    %c0_152 = arith.constant 0 : index
    %c0_153 = arith.constant 0 : index
    %151 = vector.load %arg5[%c25, %c0_152, %c0_153] : memref<49x8x64xbf16, #tpu.memory_space<vmem>>, vector<1x8x64xbf16>
    %152 = vector.shape_cast %151 : vector<1x8x64xbf16> to vector<8x64xbf16>
    %cst_154 = arith.constant dense<0.000000e+00> : vector<88x64xf32>
    %153 = tpu.matmul %150, %152, %cst_154 {dimension_numbers = #tpu.dot_dimension_numbers<[1], [0], [0], [1], [0, 0, 1, 1], [], []>} : vector<88x8xbf16>, vector<8x64xbf16>, vector<88x64xf32> -> vector<88x64xf32>
    %154 = arith.addf %148, %153 : vector<88x64xf32>
    %c0_155 = arith.constant 0 : index
    %c13_156 = arith.constant 13 : index
    %c0_157 = arith.constant 0 : index
    %155 = vector.load %arg4[%c0_155, %c13_156, %c0_157] : memref<1x132x8xbf16, #tpu.memory_space<vmem>>, vector<1x88x8xbf16>
    %156 = vector.shape_cast %155 : vector<1x88x8xbf16> to vector<88x8xbf16>
    %c26 = arith.constant 26 : index
    %c0_158 = arith.constant 0 : index
    %c0_159 = arith.constant 0 : index
    %157 = vector.load %arg5[%c26, %c0_158, %c0_159] : memref<49x8x64xbf16, #tpu.memory_space<vmem>>, vector<1x8x64xbf16>
    %158 = vector.shape_cast %157 : vector<1x8x64xbf16> to vector<8x64xbf16>
    %cst_160 = arith.constant dense<0.000000e+00> : vector<88x64xf32>
    %159 = tpu.matmul %156, %158, %cst_160 {dimension_numbers = #tpu.dot_dimension_numbers<[1], [0], [0], [1], [0, 0, 1, 1], [], []>} : vector<88x8xbf16>, vector<8x64xbf16>, vector<88x64xf32> -> vector<88x64xf32>
    %160 = arith.addf %154, %159 : vector<88x64xf32>
    %c0_161 = arith.constant 0 : index
    %c14_162 = arith.constant 14 : index
    %c0_163 = arith.constant 0 : index
    %161 = vector.load %arg3[%c0_161, %c14_162, %c0_163] : memref<1x132x8xbf16, #tpu.memory_space<vmem>>, vector<1x88x8xbf16>
    %162 = vector.shape_cast %161 : vector<1x88x8xbf16> to vector<88x8xbf16>
    %c27 = arith.constant 27 : index
    %c0_164 = arith.constant 0 : index
    %c0_165 = arith.constant 0 : index
    %163 = vector.load %arg5[%c27, %c0_164, %c0_165] : memref<49x8x64xbf16, #tpu.memory_space<vmem>>, vector<1x8x64xbf16>
    %164 = vector.shape_cast %163 : vector<1x8x64xbf16> to vector<8x64xbf16>
    %cst_166 = arith.constant dense<0.000000e+00> : vector<88x64xf32>
    %165 = tpu.matmul %162, %164, %cst_166 {dimension_numbers = #tpu.dot_dimension_numbers<[1], [0], [0], [1], [0, 0, 1, 1], [], []>} : vector<88x8xbf16>, vector<8x64xbf16>, vector<88x64xf32> -> vector<88x64xf32>
    %166 = arith.addf %160, %165 : vector<88x64xf32>
    %c0_167 = arith.constant 0 : index
    %c22_168 = arith.constant 22 : index
    %c0_169 = arith.constant 0 : index
    %167 = vector.load %arg1[%c0_167, %c22_168, %c0_169] : memref<1x132x8xbf16, #tpu.memory_space<vmem>>, vector<1x88x8xbf16>
    %168 = vector.shape_cast %167 : vector<1x88x8xbf16> to vector<88x8xbf16>
    %c28 = arith.constant 28 : index
    %c0_170 = arith.constant 0 : index
    %c0_171 = arith.constant 0 : index
    %169 = vector.load %arg5[%c28, %c0_170, %c0_171] : memref<49x8x64xbf16, #tpu.memory_space<vmem>>, vector<1x8x64xbf16>
    %170 = vector.shape_cast %169 : vector<1x8x64xbf16> to vector<8x64xbf16>
    %cst_172 = arith.constant dense<0.000000e+00> : vector<88x64xf32>
    %171 = tpu.matmul %168, %170, %cst_172 {dimension_numbers = #tpu.dot_dimension_numbers<[1], [0], [0], [1], [0, 0, 1, 1], [], []>} : vector<88x8xbf16>, vector<8x64xbf16>, vector<88x64xf32> -> vector<88x64xf32>
    %172 = arith.addf %166, %171 : vector<88x64xf32>
    %c0_173 = arith.constant 0 : index
    %c22_174 = arith.constant 22 : index
    %c0_175 = arith.constant 0 : index
    %173 = vector.load %arg2[%c0_173, %c22_174, %c0_175] : memref<1x132x8xbf16, #tpu.memory_space<vmem>>, vector<1x88x8xbf16>
    %174 = vector.shape_cast %173 : vector<1x88x8xbf16> to vector<88x8xbf16>
    %c29 = arith.constant 29 : index
    %c0_176 = arith.constant 0 : index
    %c0_177 = arith.constant 0 : index
    %175 = vector.load %arg5[%c29, %c0_176, %c0_177] : memref<49x8x64xbf16, #tpu.memory_space<vmem>>, vector<1x8x64xbf16>
    %176 = vector.shape_cast %175 : vector<1x8x64xbf16> to vector<8x64xbf16>
    %cst_178 = arith.constant dense<0.000000e+00> : vector<88x64xf32>
    %177 = tpu.matmul %174, %176, %cst_178 {dimension_numbers = #tpu.dot_dimension_numbers<[1], [0], [0], [1], [0, 0, 1, 1], [], []>} : vector<88x8xbf16>, vector<8x64xbf16>, vector<88x64xf32> -> vector<88x64xf32>
    %178 = arith.addf %172, %177 : vector<88x64xf32>
    %c0_179 = arith.constant 0 : index
    %c23_180 = arith.constant 23 : index
    %c0_181 = arith.constant 0 : index
    %179 = vector.load %arg1[%c0_179, %c23_180, %c0_181] : memref<1x132x8xbf16, #tpu.memory_space<vmem>>, vector<1x88x8xbf16>
    %180 = vector.shape_cast %179 : vector<1x88x8xbf16> to vector<88x8xbf16>
    %c30 = arith.constant 30 : index
    %c0_182 = arith.constant 0 : index
    %c0_183 = arith.constant 0 : index
    %181 = vector.load %arg5[%c30, %c0_182, %c0_183] : memref<49x8x64xbf16, #tpu.memory_space<vmem>>, vector<1x8x64xbf16>
    %182 = vector.shape_cast %181 : vector<1x8x64xbf16> to vector<8x64xbf16>
    %cst_184 = arith.constant dense<0.000000e+00> : vector<88x64xf32>
    %183 = tpu.matmul %180, %182, %cst_184 {dimension_numbers = #tpu.dot_dimension_numbers<[1], [0], [0], [1], [0, 0, 1, 1], [], []>} : vector<88x8xbf16>, vector<8x64xbf16>, vector<88x64xf32> -> vector<88x64xf32>
    %184 = arith.addf %178, %183 : vector<88x64xf32>
    %c0_185 = arith.constant 0 : index
    %c23_186 = arith.constant 23 : index
    %c0_187 = arith.constant 0 : index
    %185 = vector.load %arg2[%c0_185, %c23_186, %c0_187] : memref<1x132x8xbf16, #tpu.memory_space<vmem>>, vector<1x88x8xbf16>
    %186 = vector.shape_cast %185 : vector<1x88x8xbf16> to vector<88x8xbf16>
    %c31 = arith.constant 31 : index
    %c0_188 = arith.constant 0 : index
    %c0_189 = arith.constant 0 : index
    %187 = vector.load %arg5[%c31, %c0_188, %c0_189] : memref<49x8x64xbf16, #tpu.memory_space<vmem>>, vector<1x8x64xbf16>
    %188 = vector.shape_cast %187 : vector<1x8x64xbf16> to vector<8x64xbf16>
    %cst_190 = arith.constant dense<0.000000e+00> : vector<88x64xf32>
    %189 = tpu.matmul %186, %188, %cst_190 {dimension_numbers = #tpu.dot_dimension_numbers<[1], [0], [0], [1], [0, 0, 1, 1], [], []>} : vector<88x8xbf16>, vector<8x64xbf16>, vector<88x64xf32> -> vector<88x64xf32>
    %190 = arith.addf %184, %189 : vector<88x64xf32>
    %c0_191 = arith.constant 0 : index
    %c24_192 = arith.constant 24 : index
    %c0_193 = arith.constant 0 : index
    %191 = vector.load %arg1[%c0_191, %c24_192, %c0_193] : memref<1x132x8xbf16, #tpu.memory_space<vmem>>, vector<1x88x8xbf16>
    %192 = vector.shape_cast %191 : vector<1x88x8xbf16> to vector<88x8xbf16>
    %c32 = arith.constant 32 : index
    %c0_194 = arith.constant 0 : index
    %c0_195 = arith.constant 0 : index
    %193 = vector.load %arg5[%c32, %c0_194, %c0_195] : memref<49x8x64xbf16, #tpu.memory_space<vmem>>, vector<1x8x64xbf16>
    %194 = vector.shape_cast %193 : vector<1x8x64xbf16> to vector<8x64xbf16>
    %cst_196 = arith.constant dense<0.000000e+00> : vector<88x64xf32>
    %195 = tpu.matmul %192, %194, %cst_196 {dimension_numbers = #tpu.dot_dimension_numbers<[1], [0], [0], [1], [0, 0, 1, 1], [], []>} : vector<88x8xbf16>, vector<8x64xbf16>, vector<88x64xf32> -> vector<88x64xf32>
    %196 = arith.addf %190, %195 : vector<88x64xf32>
    %c0_197 = arith.constant 0 : index
    %c24_198 = arith.constant 24 : index
    %c0_199 = arith.constant 0 : index
    %197 = vector.load %arg2[%c0_197, %c24_198, %c0_199] : memref<1x132x8xbf16, #tpu.memory_space<vmem>>, vector<1x88x8xbf16>
    %198 = vector.shape_cast %197 : vector<1x88x8xbf16> to vector<88x8xbf16>
    %c33 = arith.constant 33 : index
    %c0_200 = arith.constant 0 : index
    %c0_201 = arith.constant 0 : index
    %199 = vector.load %arg5[%c33, %c0_200, %c0_201] : memref<49x8x64xbf16, #tpu.memory_space<vmem>>, vector<1x8x64xbf16>
    %200 = vector.shape_cast %199 : vector<1x8x64xbf16> to vector<8x64xbf16>
    %cst_202 = arith.constant dense<0.000000e+00> : vector<88x64xf32>
    %201 = tpu.matmul %198, %200, %cst_202 {dimension_numbers = #tpu.dot_dimension_numbers<[1], [0], [0], [1], [0, 0, 1, 1], [], []>} : vector<88x8xbf16>, vector<8x64xbf16>, vector<88x64xf32> -> vector<88x64xf32>
    %202 = arith.addf %196, %201 : vector<88x64xf32>
    %c0_203 = arith.constant 0 : index
    %c25_204 = arith.constant 25 : index
    %c0_205 = arith.constant 0 : index
    %203 = vector.load %arg1[%c0_203, %c25_204, %c0_205] : memref<1x132x8xbf16, #tpu.memory_space<vmem>>, vector<1x88x8xbf16>
    %204 = vector.shape_cast %203 : vector<1x88x8xbf16> to vector<88x8xbf16>
    %c34 = arith.constant 34 : index
    %c0_206 = arith.constant 0 : index
    %c0_207 = arith.constant 0 : index
    %205 = vector.load %arg5[%c34, %c0_206, %c0_207] : memref<49x8x64xbf16, #tpu.memory_space<vmem>>, vector<1x8x64xbf16>
    %206 = vector.shape_cast %205 : vector<1x8x64xbf16> to vector<8x64xbf16>
    %cst_208 = arith.constant dense<0.000000e+00> : vector<88x64xf32>
    %207 = tpu.matmul %204, %206, %cst_208 {dimension_numbers = #tpu.dot_dimension_numbers<[1], [0], [0], [1], [0, 0, 1, 1], [], []>} : vector<88x8xbf16>, vector<8x64xbf16>, vector<88x64xf32> -> vector<88x64xf32>
    %208 = arith.addf %202, %207 : vector<88x64xf32>
    %c0_209 = arith.constant 0 : index
    %c22_210 = arith.constant 22 : index
    %c0_211 = arith.constant 0 : index
    %209 = vector.load %arg3[%c0_209, %c22_210, %c0_211] : memref<1x132x8xbf16, #tpu.memory_space<vmem>>, vector<1x88x8xbf16>
    %210 = vector.shape_cast %209 : vector<1x88x8xbf16> to vector<88x8xbf16>
    %c35 = arith.constant 35 : index
    %c0_212 = arith.constant 0 : index
    %c0_213 = arith.constant 0 : index
    %211 = vector.load %arg5[%c35, %c0_212, %c0_213] : memref<49x8x64xbf16, #tpu.memory_space<vmem>>, vector<1x8x64xbf16>
    %212 = vector.shape_cast %211 : vector<1x8x64xbf16> to vector<8x64xbf16>
    %cst_214 = arith.constant dense<0.000000e+00> : vector<88x64xf32>
    %213 = tpu.matmul %210, %212, %cst_214 {dimension_numbers = #tpu.dot_dimension_numbers<[1], [0], [0], [1], [0, 0, 1, 1], [], []>} : vector<88x8xbf16>, vector<8x64xbf16>, vector<88x64xf32> -> vector<88x64xf32>
    %214 = arith.addf %208, %213 : vector<88x64xf32>
    %c0_215 = arith.constant 0 : index
    %c22_216 = arith.constant 22 : index
    %c0_217 = arith.constant 0 : index
    %215 = vector.load %arg4[%c0_215, %c22_216, %c0_217] : memref<1x132x8xbf16, #tpu.memory_space<vmem>>, vector<1x88x8xbf16>
    %216 = vector.shape_cast %215 : vector<1x88x8xbf16> to vector<88x8xbf16>
    %c36 = arith.constant 36 : index
    %c0_218 = arith.constant 0 : index
    %c0_219 = arith.constant 0 : index
    %217 = vector.load %arg5[%c36, %c0_218, %c0_219] : memref<49x8x64xbf16, #tpu.memory_space<vmem>>, vector<1x8x64xbf16>
    %218 = vector.shape_cast %217 : vector<1x8x64xbf16> to vector<8x64xbf16>
    %cst_220 = arith.constant dense<0.000000e+00> : vector<88x64xf32>
    %219 = tpu.matmul %216, %218, %cst_220 {dimension_numbers = #tpu.dot_dimension_numbers<[1], [0], [0], [1], [0, 0, 1, 1], [], []>} : vector<88x8xbf16>, vector<8x64xbf16>, vector<88x64xf32> -> vector<88x64xf32>
    %220 = arith.addf %214, %219 : vector<88x64xf32>
    %c0_221 = arith.constant 0 : index
    %c23_222 = arith.constant 23 : index
    %c0_223 = arith.constant 0 : index
    %221 = vector.load %arg3[%c0_221, %c23_222, %c0_223] : memref<1x132x8xbf16, #tpu.memory_space<vmem>>, vector<1x88x8xbf16>
    %222 = vector.shape_cast %221 : vector<1x88x8xbf16> to vector<88x8xbf16>
    %c37 = arith.constant 37 : index
    %c0_224 = arith.constant 0 : index
    %c0_225 = arith.constant 0 : index
    %223 = vector.load %arg5[%c37, %c0_224, %c0_225] : memref<49x8x64xbf16, #tpu.memory_space<vmem>>, vector<1x8x64xbf16>
    %224 = vector.shape_cast %223 : vector<1x8x64xbf16> to vector<8x64xbf16>
    %cst_226 = arith.constant dense<0.000000e+00> : vector<88x64xf32>
    %225 = tpu.matmul %222, %224, %cst_226 {dimension_numbers = #tpu.dot_dimension_numbers<[1], [0], [0], [1], [0, 0, 1, 1], [], []>} : vector<88x8xbf16>, vector<8x64xbf16>, vector<88x64xf32> -> vector<88x64xf32>
    %226 = arith.addf %220, %225 : vector<88x64xf32>
    %c0_227 = arith.constant 0 : index
    %c23_228 = arith.constant 23 : index
    %c0_229 = arith.constant 0 : index
    %227 = vector.load %arg4[%c0_227, %c23_228, %c0_229] : memref<1x132x8xbf16, #tpu.memory_space<vmem>>, vector<1x88x8xbf16>
    %228 = vector.shape_cast %227 : vector<1x88x8xbf16> to vector<88x8xbf16>
    %c38 = arith.constant 38 : index
    %c0_230 = arith.constant 0 : index
    %c0_231 = arith.constant 0 : index
    %229 = vector.load %arg5[%c38, %c0_230, %c0_231] : memref<49x8x64xbf16, #tpu.memory_space<vmem>>, vector<1x8x64xbf16>
    %230 = vector.shape_cast %229 : vector<1x8x64xbf16> to vector<8x64xbf16>
    %cst_232 = arith.constant dense<0.000000e+00> : vector<88x64xf32>
    %231 = tpu.matmul %228, %230, %cst_232 {dimension_numbers = #tpu.dot_dimension_numbers<[1], [0], [0], [1], [0, 0, 1, 1], [], []>} : vector<88x8xbf16>, vector<8x64xbf16>, vector<88x64xf32> -> vector<88x64xf32>
    %232 = arith.addf %226, %231 : vector<88x64xf32>
    %c0_233 = arith.constant 0 : index
    %c24_234 = arith.constant 24 : index
    %c0_235 = arith.constant 0 : index
    %233 = vector.load %arg3[%c0_233, %c24_234, %c0_235] : memref<1x132x8xbf16, #tpu.memory_space<vmem>>, vector<1x88x8xbf16>
    %234 = vector.shape_cast %233 : vector<1x88x8xbf16> to vector<88x8xbf16>
    %c39 = arith.constant 39 : index
    %c0_236 = arith.constant 0 : index
    %c0_237 = arith.constant 0 : index
    %235 = vector.load %arg5[%c39, %c0_236, %c0_237] : memref<49x8x64xbf16, #tpu.memory_space<vmem>>, vector<1x8x64xbf16>
    %236 = vector.shape_cast %235 : vector<1x8x64xbf16> to vector<8x64xbf16>
    %cst_238 = arith.constant dense<0.000000e+00> : vector<88x64xf32>
    %237 = tpu.matmul %234, %236, %cst_238 {dimension_numbers = #tpu.dot_dimension_numbers<[1], [0], [0], [1], [0, 0, 1, 1], [], []>} : vector<88x8xbf16>, vector<8x64xbf16>, vector<88x64xf32> -> vector<88x64xf32>
    %238 = arith.addf %232, %237 : vector<88x64xf32>
    %c0_239 = arith.constant 0 : index
    %c24_240 = arith.constant 24 : index
    %c0_241 = arith.constant 0 : index
    %239 = vector.load %arg4[%c0_239, %c24_240, %c0_241] : memref<1x132x8xbf16, #tpu.memory_space<vmem>>, vector<1x88x8xbf16>
    %240 = vector.shape_cast %239 : vector<1x88x8xbf16> to vector<88x8xbf16>
    %c40 = arith.constant 40 : index
    %c0_242 = arith.constant 0 : index
    %c0_243 = arith.constant 0 : index
    %241 = vector.load %arg5[%c40, %c0_242, %c0_243] : memref<49x8x64xbf16, #tpu.memory_space<vmem>>, vector<1x8x64xbf16>
    %242 = vector.shape_cast %241 : vector<1x8x64xbf16> to vector<8x64xbf16>
    %cst_244 = arith.constant dense<0.000000e+00> : vector<88x64xf32>
    %243 = tpu.matmul %240, %242, %cst_244 {dimension_numbers = #tpu.dot_dimension_numbers<[1], [0], [0], [1], [0, 0, 1, 1], [], []>} : vector<88x8xbf16>, vector<8x64xbf16>, vector<88x64xf32> -> vector<88x64xf32>
    %244 = arith.addf %238, %243 : vector<88x64xf32>
    %c0_245 = arith.constant 0 : index
    %c25_246 = arith.constant 25 : index
    %c0_247 = arith.constant 0 : index
    %245 = vector.load %arg3[%c0_245, %c25_246, %c0_247] : memref<1x132x8xbf16, #tpu.memory_space<vmem>>, vector<1x88x8xbf16>
    %246 = vector.shape_cast %245 : vector<1x88x8xbf16> to vector<88x8xbf16>
    %c41 = arith.constant 41 : index
    %c0_248 = arith.constant 0 : index
    %c0_249 = arith.constant 0 : index
    %247 = vector.load %arg5[%c41, %c0_248, %c0_249] : memref<49x8x64xbf16, #tpu.memory_space<vmem>>, vector<1x8x64xbf16>
    %248 = vector.shape_cast %247 : vector<1x8x64xbf16> to vector<8x64xbf16>
    %cst_250 = arith.constant dense<0.000000e+00> : vector<88x64xf32>
    %249 = tpu.matmul %246, %248, %cst_250 {dimension_numbers = #tpu.dot_dimension_numbers<[1], [0], [0], [1], [0, 0, 1, 1], [], []>} : vector<88x8xbf16>, vector<8x64xbf16>, vector<88x64xf32> -> vector<88x64xf32>
    %250 = arith.addf %244, %249 : vector<88x64xf32>
    %c0_251 = arith.constant 0 : index
    %c33_252 = arith.constant 33 : index
    %c0_253 = arith.constant 0 : index
    %251 = vector.load %arg1[%c0_251, %c33_252, %c0_253] : memref<1x132x8xbf16, #tpu.memory_space<vmem>>, vector<1x88x8xbf16>
    %252 = vector.shape_cast %251 : vector<1x88x8xbf16> to vector<88x8xbf16>
    %c42 = arith.constant 42 : index
    %c0_254 = arith.constant 0 : index
    %c0_255 = arith.constant 0 : index
    %253 = vector.load %arg5[%c42, %c0_254, %c0_255] : memref<49x8x64xbf16, #tpu.memory_space<vmem>>, vector<1x8x64xbf16>
    %254 = vector.shape_cast %253 : vector<1x8x64xbf16> to vector<8x64xbf16>
    %cst_256 = arith.constant dense<0.000000e+00> : vector<88x64xf32>
    %255 = tpu.matmul %252, %254, %cst_256 {dimension_numbers = #tpu.dot_dimension_numbers<[1], [0], [0], [1], [0, 0, 1, 1], [], []>} : vector<88x8xbf16>, vector<8x64xbf16>, vector<88x64xf32> -> vector<88x64xf32>
    %256 = arith.addf %250, %255 : vector<88x64xf32>
    %c0_257 = arith.constant 0 : index
    %c33_258 = arith.constant 33 : index
    %c0_259 = arith.constant 0 : index
    %257 = vector.load %arg2[%c0_257, %c33_258, %c0_259] : memref<1x132x8xbf16, #tpu.memory_space<vmem>>, vector<1x88x8xbf16>
    %258 = vector.shape_cast %257 : vector<1x88x8xbf16> to vector<88x8xbf16>
    %c43 = arith.constant 43 : index
    %c0_260 = arith.constant 0 : index
    %c0_261 = arith.constant 0 : index
    %259 = vector.load %arg5[%c43, %c0_260, %c0_261] : memref<49x8x64xbf16, #tpu.memory_space<vmem>>, vector<1x8x64xbf16>
    %260 = vector.shape_cast %259 : vector<1x8x64xbf16> to vector<8x64xbf16>
    %cst_262 = arith.constant dense<0.000000e+00> : vector<88x64xf32>
    %261 = tpu.matmul %258, %260, %cst_262 {dimension_numbers = #tpu.dot_dimension_numbers<[1], [0], [0], [1], [0, 0, 1, 1], [], []>} : vector<88x8xbf16>, vector<8x64xbf16>, vector<88x64xf32> -> vector<88x64xf32>
    %262 = arith.addf %256, %261 : vector<88x64xf32>
    %c0_263 = arith.constant 0 : index
    %c34_264 = arith.constant 34 : index
    %c0_265 = arith.constant 0 : index
    %263 = vector.load %arg1[%c0_263, %c34_264, %c0_265] : memref<1x132x8xbf16, #tpu.memory_space<vmem>>, vector<1x88x8xbf16>
    %264 = vector.shape_cast %263 : vector<1x88x8xbf16> to vector<88x8xbf16>
    %c44 = arith.constant 44 : index
    %c0_266 = arith.constant 0 : index
    %c0_267 = arith.constant 0 : index
    %265 = vector.load %arg5[%c44, %c0_266, %c0_267] : memref<49x8x64xbf16, #tpu.memory_space<vmem>>, vector<1x8x64xbf16>
    %266 = vector.shape_cast %265 : vector<1x8x64xbf16> to vector<8x64xbf16>
    %cst_268 = arith.constant dense<0.000000e+00> : vector<88x64xf32>
    %267 = tpu.matmul %264, %266, %cst_268 {dimension_numbers = #tpu.dot_dimension_numbers<[1], [0], [0], [1], [0, 0, 1, 1], [], []>} : vector<88x8xbf16>, vector<8x64xbf16>, vector<88x64xf32> -> vector<88x64xf32>
    %268 = arith.addf %262, %267 : vector<88x64xf32>
    %c0_269 = arith.constant 0 : index
    %c34_270 = arith.constant 34 : index
    %c0_271 = arith.constant 0 : index
    %269 = vector.load %arg2[%c0_269, %c34_270, %c0_271] : memref<1x132x8xbf16, #tpu.memory_space<vmem>>, vector<1x88x8xbf16>
    %270 = vector.shape_cast %269 : vector<1x88x8xbf16> to vector<88x8xbf16>
    %c45 = arith.constant 45 : index
    %c0_272 = arith.constant 0 : index
    %c0_273 = arith.constant 0 : index
    %271 = vector.load %arg5[%c45, %c0_272, %c0_273] : memref<49x8x64xbf16, #tpu.memory_space<vmem>>, vector<1x8x64xbf16>
    %272 = vector.shape_cast %271 : vector<1x8x64xbf16> to vector<8x64xbf16>
    %cst_274 = arith.constant dense<0.000000e+00> : vector<88x64xf32>
    %273 = tpu.matmul %270, %272, %cst_274 {dimension_numbers = #tpu.dot_dimension_numbers<[1], [0], [0], [1], [0, 0, 1, 1], [], []>} : vector<88x8xbf16>, vector<8x64xbf16>, vector<88x64xf32> -> vector<88x64xf32>
    %274 = arith.addf %268, %273 : vector<88x64xf32>
    %c0_275 = arith.constant 0 : index
    %c35_276 = arith.constant 35 : index
    %c0_277 = arith.constant 0 : index
    %275 = vector.load %arg1[%c0_275, %c35_276, %c0_277] : memref<1x132x8xbf16, #tpu.memory_space<vmem>>, vector<1x88x8xbf16>
    %276 = vector.shape_cast %275 : vector<1x88x8xbf16> to vector<88x8xbf16>
    %c46 = arith.constant 46 : index
    %c0_278 = arith.constant 0 : index
    %c0_279 = arith.constant 0 : index
    %277 = vector.load %arg5[%c46, %c0_278, %c0_279] : memref<49x8x64xbf16, #tpu.memory_space<vmem>>, vector<1x8x64xbf16>
    %278 = vector.shape_cast %277 : vector<1x8x64xbf16> to vector<8x64xbf16>
    %cst_280 = arith.constant dense<0.000000e+00> : vector<88x64xf32>
    %279 = tpu.matmul %276, %278, %cst_280 {dimension_numbers = #tpu.dot_dimension_numbers<[1], [0], [0], [1], [0, 0, 1, 1], [], []>} : vector<88x8xbf16>, vector<8x64xbf16>, vector<88x64xf32> -> vector<88x64xf32>
    %280 = arith.addf %274, %279 : vector<88x64xf32>
    %c0_281 = arith.constant 0 : index
    %c35_282 = arith.constant 35 : index
    %c0_283 = arith.constant 0 : index
    %281 = vector.load %arg2[%c0_281, %c35_282, %c0_283] : memref<1x132x8xbf16, #tpu.memory_space<vmem>>, vector<1x88x8xbf16>
    %282 = vector.shape_cast %281 : vector<1x88x8xbf16> to vector<88x8xbf16>
    %c47 = arith.constant 47 : index
    %c0_284 = arith.constant 0 : index
    %c0_285 = arith.constant 0 : index
    %283 = vector.load %arg5[%c47, %c0_284, %c0_285] : memref<49x8x64xbf16, #tpu.memory_space<vmem>>, vector<1x8x64xbf16>
    %284 = vector.shape_cast %283 : vector<1x8x64xbf16> to vector<8x64xbf16>
    %cst_286 = arith.constant dense<0.000000e+00> : vector<88x64xf32>
    %285 = tpu.matmul %282, %284, %cst_286 {dimension_numbers = #tpu.dot_dimension_numbers<[1], [0], [0], [1], [0, 0, 1, 1], [], []>} : vector<88x8xbf16>, vector<8x64xbf16>, vector<88x64xf32> -> vector<88x64xf32>
    %286 = arith.addf %280, %285 : vector<88x64xf32>
    %c0_287 = arith.constant 0 : index
    %c36_288 = arith.constant 36 : index
    %c0_289 = arith.constant 0 : index
    %287 = vector.load %arg1[%c0_287, %c36_288, %c0_289] : memref<1x132x8xbf16, #tpu.memory_space<vmem>>, vector<1x88x8xbf16>
    %288 = vector.shape_cast %287 : vector<1x88x8xbf16> to vector<88x8xbf16>
    %c48 = arith.constant 48 : index
    %c0_290 = arith.constant 0 : index
    %c0_291 = arith.constant 0 : index
    %289 = vector.load %arg5[%c48, %c0_290, %c0_291] : memref<49x8x64xbf16, #tpu.memory_space<vmem>>, vector<1x8x64xbf16>
    %290 = vector.shape_cast %289 : vector<1x8x64xbf16> to vector<8x64xbf16>
    %cst_292 = arith.constant dense<0.000000e+00> : vector<88x64xf32>
    %291 = tpu.matmul %288, %290, %cst_292 {dimension_numbers = #tpu.dot_dimension_numbers<[1], [0], [0], [1], [0, 0, 1, 1], [], []>} : vector<88x8xbf16>, vector<8x64xbf16>, vector<88x64xf32> -> vector<88x64xf32>
    %292 = arith.addf %286, %291 : vector<88x64xf32>
    %c0_293 = arith.constant 0 : index
    %c0_294 = arith.constant 0 : index
    %293 = vector.load %arg6[%c0_293, %c0_294] : memref<88x1xf32, #tpu.memory_space<vmem>>, vector<88x1xf32>
    %294 = vector.broadcast %293 : vector<88x1xf32> to vector<88x64xf32>
    %295 = arith.mulf %292, %294 : vector<88x64xf32>
    %cst_295 = arith.constant dense<0.000000e+00> : vector<64xf32>
    %296 = vector.multi_reduction <add>, %295, %cst_295 [0] : vector<88x64xf32> to vector<64xf32>
    %297 = vector.shape_cast %296 : vector<64xf32> to vector<1x64xf32>
    %c0_296 = arith.constant 0 : index
    %c0_297 = arith.constant 0 : index
    %c0_298 = arith.constant 0 : index
    %298 = vector.load %arg8[%c0_296, %c0_297, %c0_298] : memref<1x1x64xf32, #tpu.memory_space<vmem>>, vector<1x1x64xf32>
    %299 = vector.shape_cast %298 : vector<1x1x64xf32> to vector<1x64xf32>
    %300 = vector.shape_cast %297 : vector<1x64xf32> to vector<1x1x64xf32>
    tpu.vector_store %arg8[%c0_296, %c0_297, %c0_298], %300 {strides = array<i32>} : memref<1x1x64xf32, #tpu.memory_space<vmem>>, vector<1x1x64xf32>,
    %301 = arith.mulf %295, %295 : vector<88x64xf32>
    %cst_299 = arith.constant dense<0.000000e+00> : vector<64xf32>
    %302 = vector.multi_reduction <add>, %301, %cst_299 [0] : vector<88x64xf32> to vector<64xf32>
    %303 = vector.shape_cast %302 : vector<64xf32> to vector<1x64xf32>
    %c0_300 = arith.constant 0 : index
    %c0_301 = arith.constant 0 : index
    %c0_302 = arith.constant 0 : index
    %304 = vector.load %arg9[%c0_300, %c0_301, %c0_302] : memref<1x1x64xf32, #tpu.memory_space<vmem>>, vector<1x1x64xf32>
    %305 = vector.shape_cast %304 : vector<1x1x64xf32> to vector<1x64xf32>
    %306 = vector.shape_cast %303 : vector<1x64xf32> to vector<1x1x64xf32>
    tpu.vector_store %arg9[%c0_300, %c0_301, %c0_302], %306 {strides = array<i32>} : memref<1x1x64xf32, #tpu.memory_space<vmem>>, vector<1x1x64xf32>,
    %307 = arith.truncf %292 : vector<88x64xf32> to vector<88x64xbf16>
    %c0_303 = arith.constant 0 : index
    %c0_304 = arith.constant 0 : index
    %c0_305 = arith.constant 0 : index
    %308 = vector.load %arg7[%c0_303, %c0_304, %c0_305] : memref<1x88x64xbf16, #tpu.memory_space<vmem>>, vector<1x88x64xbf16>
    %309 = vector.shape_cast %308 : vector<1x88x64xbf16> to vector<88x64xbf16>
    %310 = vector.shape_cast %307 : vector<88x64xbf16> to vector<1x88x64xbf16>
    tpu.vector_store %arg7[%c0_303, %c0_304, %c0_305], %310 {strides = array<i32>} : memref<1x88x64xbf16, #tpu.memory_space<vmem>>, vector<1x88x64xbf16>,
    return
  }
  func.func @transform_0(%arg0: i32) -> (i32, i32, i32) {
    %c0_i32 = arith.constant 0 : i32
    %c0_i32_0 = arith.constant 0 : i32
    %c0_i32_1 = arith.constant 0 : i32
    return %arg0, %c0_i32, %c0_i32_0 : i32, i32, i32
  }
  func.func @transform_1(%arg0: i32) -> (i32, i32, i32) {
    %c0_i32 = arith.constant 0 : i32
    %c0_i32_0 = arith.constant 0 : i32
    %c0_i32_1 = arith.constant 0 : i32
    return %arg0, %c0_i32, %c0_i32_0 : i32, i32, i32
  }
  func.func @transform_2(%arg0: i32) -> (i32, i32, i32) {
    %c0_i32 = arith.constant 0 : i32
    %c0_i32_0 = arith.constant 0 : i32
    %c0_i32_1 = arith.constant 0 : i32
    return %arg0, %c0_i32, %c0_i32_0 : i32, i32, i32
  }
  func.func @transform_3(%arg0: i32) -> (i32, i32, i32) {
    %c0_i32 = arith.constant 0 : i32
    %c0_i32_0 = arith.constant 0 : i32
    %c0_i32_1 = arith.constant 0 : i32
    return %arg0, %c0_i32, %c0_i32_0 : i32, i32, i32
  }
  func.func @transform_4(%arg0: i32) -> (i32, i32, i32) {
    %c0_i32 = arith.constant 0 : i32
    %c0_i32_0 = arith.constant 0 : i32
    %c0_i32_1 = arith.constant 0 : i32
    %c0_i32_2 = arith.constant 0 : i32
    return %c0_i32, %c0_i32_0, %c0_i32_1 : i32, i32, i32
  }
  func.func @transform_5(%arg0: i32) -> (i32, i32) {
    %c0_i32 = arith.constant 0 : i32
    %c0_i32_0 = arith.constant 0 : i32
    %c0_i32_1 = arith.constant 0 : i32
    return %c0_i32, %c0_i32_0 : i32, i32
  }
  func.func @transform_6(%arg0: i32) -> (i32, i32, i32) {
    %c0_i32 = arith.constant 0 : i32
    %c0_i32_0 = arith.constant 0 : i32
    %c0_i32_1 = arith.constant 0 : i32
    return %arg0, %c0_i32, %c0_i32_0 : i32, i32, i32
  }
  func.func @transform_7(%arg0: i32) -> (i32, i32, i32) {
    %c0_i32 = arith.constant 0 : i32
    %c0_i32_0 = arith.constant 0 : i32
    %c0_i32_1 = arith.constant 0 : i32
    return %arg0, %c0_i32, %c0_i32_0 : i32, i32, i32
  }
  func.func @transform_8(%arg0: i32) -> (i32, i32, i32) {
    %c0_i32 = arith.constant 0 : i32
    %c0_i32_0 = arith.constant 0 : i32
    %c0_i32_1 = arith.constant 0 : i32
    return %arg0, %c0_i32, %c0_i32_0 : i32, i32, i32
  }
}

</mosaic_0001>

<bundles_post_ra>
// kernel: tpu_custom_call.1
= control target key start
LH: loop header
LB: loop body
LE: loop exit
PB: predicated region body
PF: predicated region fallthrough
CT: control target
= control target key end

     0   :  { %s13478_s0 = inlined_call_operand.vmem [shape: bf16[2,132,8], index: 0, kind: input, shape index: {}]   ;;  %s13479_s1 = inlined_call_operand.vmem [shape: bf16[2,132,8], index: 1, kind: input, shape index: {}]   ;;  %s13480_s2 = inlined_call_operand.vmem [shape: bf16[2,132,8], index: 2, kind: input, shape index: {}]   ;;  %s13481_s3 = inlined_call_operand.vmem [shape: bf16[2,132,8], index: 3, kind: input, shape index: {}]   ;;  %s13482_s4 = inlined_call_operand.vmem [shape: bf16[49,8,64], index: 4, kind: input, shape index: {}]   ;;  %s13483_s5 = inlined_call_operand.vmem [shape: f32[88,1], index: 5, kind: input, shape index: {}]   ;;  %s13484_s6 = inlined_call_operand.vmem [shape: bf16[2,88,64], index: 6, kind: output, shape index: {0}]   ;;  %s13485_s7 = inlined_call_operand.hbm [shape: f32[2,1,64], index: 7, kind: output, shape index: {1}]   ;;  %s13486_s8 = inlined_call_operand.hbm [shape: f32[2,1,64], index: 8, kind: output, shape index: {2}]  }
   0x1   :  { %13503 = sst [smem:[#allocation14_spill]] %s13478_s0 }
   0x2   :  { %14 = vsyncpa [#allocation3], 0 }
   0x3   :  { %16 = vsyncpa [#allocation3 + $0x1], 0 }
   0x4   :  { %17 = vsyncpa [#allocation5], 0 }
   0x5   :  { %19 = vsyncpa [#allocation5 + $0x1], 0  ;;  %s10531_s27 = smov 0   ;;  %s10533_s28 = smov 0  }
   0x6   :  { %s10535_s29 = smov 0   ;;  %s10537_s30 = smov 0  }
   0x7 LB: > { %s10552_s9 = sadd.s32 4294967295, %s10481_s30   ;;  %s8546_s10 = sadd.s32 4294967294, %s10481_s30   ;;  %s10481_s30 = sphi %s10537_s30, %s13532_s30   ;;  %s10477_s29 = sphi %s10535_s29, %s13531_s29   ;;  %s10473_s28 = sphi %s10533_s28, %s13530_s28   ;;  %s10469_s27 = sphi %s10531_s27, %s13529_s27  }
   0x8   : > { %s10556_s11 = sadd.s32 1, %s10481_s30   ;;  %s204_s12 = sadd.s32 1, %s10477_s29 }
   0x9   : > { %s201_s13 = ssub.s32 %s10481_s30, %s10556_s11  ;;  %p214_p0 = scmp.ne.s32.totalorder %s10477_s29, %s10473_s28 }
   0xa   : > { %p202_p1 = scmp.eq.s32.totalorder %s201_s13, 0  ;;  %p215_p2 = scmp.eq.s32.totalorder %s10552_s9, 1 }
   0xb   : > { %p220_p3 = scmp.ne.s32.totalorder %s10473_s28, %s10469_s27  ;;  %p221_p4 = scmp.eq.s32.totalorder %s8546_s10, 1 }
   0xc   : > { %s10567_s14 = scalar_select %p202_p1, %s10477_s29, %s204_s12  }
   0xd   : > { %p10569_p5 = por %p215_p2, %p214_p0  ;;  %p10573_p6 = por %p221_p4, %p220_p3 }
   0xe   : > { %p8549_p7 = scmp.ge.s32.totalorder %s10481_s30, 1  ;;  %p303_p8 = scmp.lt.s32.totalorder %s10481_s30, 3 }
  0x10   : > { %p304_p9 = pnand %p8549_p7, %p303_p8 }
  0x12   : > { %307 = sbr.rel (%p304_p9) target bundleno = 874 (0x36a), region = 44 }
  0x17   : > { %v8555_v0 = vld [vmem:[%s13482_s4 + $0x4] sm:$0xf]  ;;  %vm458_vm0 = vcmask 1043456   ;;  %p360_p10 = scmp.lt.s32.totalorder %s10552_s9, 1  ;;  %v397_v2 = vld [vmem:[%s13482_s4] sm:$0xf] }
  0x18   : > { %10124 = vmatprep.subr.msk.bf16.mxu1 %vm458_vm0, %v8555_v0  ;;  %v460_v1 = vsel %vm458_vm0, %v8555_v0, 0  ;;  %10123 = vmatprep.subr.msk.bf16.mxu0 %vm458_vm0, %v8555_v0  ;;  %v8580_v3 = vld [vmem:[%s13482_s4 + $0x8] sm:$0xf]  ;;  %vm439_vm1 = vcmask 64512   ;;  %v8593_v5 = vld [vmem:[%s13482_s4 + $0xc] sm:$0xf] }
  0x19   : > { %10122 = vmatpush3.bf16.msra.mxu1 %v460_v1  ;;  %s10593_s23 = scalar_select %p360_p10, %s10552_s9, 1  ;;  %9436 = vmatpush3.bf16.msra.mxu0 %v460_v1  ;;  %v589_v7 = vsel %vm458_vm0, %v397_v2, 0  ;;  %v8606_v9 = vld [vmem:[%s13482_s4 + $0x10] sm:$0xf]  ;;  %v782_v11 = vsel %vm458_vm0, %v8580_v3, 0  ;;  %v985_v48 = vsel %vm458_vm0, %v8593_v5, 0 }
  0x1a   : > { %10125 = vmatprep.subr.msk.bf16.mxu1 %vm458_vm0, %v397_v2  ;;  %10126 = vmatprep.subr.msk.bf16.mxu0 %vm458_vm0, %v8580_v3  ;;  %s13506_s0 = sld [smem:[#allocation14_spill]]  ;;  %vm715_vm2 = vsmask.f32 7424  ;;  %v1115_v33 = vsel %vm458_vm0, %v8606_v9, 0  ;;  %v10675_v40 = vld [vmem:[%s13482_s4 + $0x18] sm:$0xf] }
  0x1b   : > { %s10598_s24 = smul.u32 68, %s10593_s23  ;;  %v10700_v52 = vld [vmem:[%s13482_s4 + $0x14] sm:$0xf]  ;;  %vm1084_vm3 = vcmask 1046528   ;;  %vm1343_vm4 = vsmask.f32 6400 }
  0x1c   : > { %vm3596_vm5 = vcmask 1044480   ;;  %vm3034_vm6 = vcmask 1045504   ;;  %vm3293_vm7 = vsmask.f32 5376  ;;  %vm5167_vm8 = vsmask.f32 4352 }
  0x1d   : > { %s10604_s10 = scalar_lea.vmem %s13479_s1, %s10598_s24  ;;  %s10741_s18 = scalar_lea.vmem %s13481_s3, %s10598_s24  ;;  %vm8352_vm9 = vcmask 519168   ;;  %vm8238_vm10 = vcmask 523264   ;;  %vm8266_vm11 = vcmask 516096  }
  0x1e   : > { %v10222_v4 = vld [vmem:[%s10604_s10 + $0x10] sm:$0xff]   ;;  %v10223_v6 = vld [vmem:[%s10604_s10 + $0x18] sm:$0xff]   ;;  %v10224_v8 = vld [vmem:[%s10604_s10] sm:$0xff]   ;;  %s10751_s22 = scalar_lea.vmem %s13480_s2, %s10598_s24  ;;  %s13394_s12 = sand.u32 1, %s10473_s28  }
  0x1f   : > { %9441 = vmatprep.mubr.msk.bf16.mxu1 %vm439_vm1, %v10222_v4  ;;  %v10225_v10 = vld [vmem:[%s10604_s10 + $0x8] sm:$0xff]   ;;  %9437 = vmatprep.mubr.msk.bf16.mxu0 %vm439_vm1, %v10224_v8  ;;  %v10226_v12 = vld [vmem:[%s10604_s10 + $0x20] sm:$0xff]   ;;  %s353_s13 = scalar_lea.vmem [#allocation2], %s13394_s12  ;;  %s13502_s20 = scalar_lea.vmem [#allocation4], %s13394_s12 }
  0x20   : > { %s10616_s19 = scalar_lea.vmem %s13506_s0, %s10598_s24  ;;  %9442 = vmatmul.mubr.msk.bf16.vlgmr.msra.gmra.mxu1 %vm439_vm1, %v10223_v6  ;;  %9438 = vmatmul.mubr.msk.bf16.vlgmr.msra.gmra.mxu0 %vm439_vm1, %v10225_v10  ;;  %v10227_v13 = vld [vmem:[%s10604_s10 + $0x28] ss:$0 sps:$4 sm:$0xff]   ;;  %v875_v55 = vld [vmem:[%s10604_s10] sm:$0xf]  ;;  %v10708_v56 = vld [vmem:[%s10604_s10 + $0x4] sm:$0xf] }
  0x21   : > { %9450 = vmatpush3.bf16.msra.mxu1 %v589_v7  ;;  %v671_v14 = vld [vmem:[%s10616_s19] sm:$0xf]  ;;  %9445 = vmatprep.mubr.msk.bf16.mxu1 %vm439_vm1, %v10226_v12  ;;  %v10634_v15 = vld [vmem:[%s10616_s19 + $0x4] sm:$0xf]  ;;  %v10638_v17 = vld [vmem:[%s10616_s19 + $0x8] sm:$0xff]   ;;  %v8594_v58 = vcombine.low %v875_v55, %v10708_v56  ;;  %s8389_s17 = sshll.u32 %s353_s13, 4  ;;  %s13406_s17 = int_to_ptr.vmem [resolvable:$true] %s8389_s17 }
  0x22   : > { %10127 = vmatprep.subr.msk.bf16.mxu1 %vm458_vm0, %v8593_v5  ;;  %9464 = vmatpush3.bf16.msra.mxu0 %v782_v11  ;;  %v8581_v16 = vcombine.low %v671_v14, %v10634_v15  ;;  %v10642_v18 = vld [vmem:[%s10616_s19 + $0x10] sm:$0xff]   ;;  %v724_v21 = vshll.u32 %v10638_v17, 16  ;;  %v728_v22 = vshrl.u32 %v10638_v17, 16  ;;  %v10231_v23 = vld [vmem:[%s10616_s19] sm:$0xff]   ;;  %v10649_v25 = vld [vmem:[%s10616_s19 + $0x18] sm:$0xff]   ;;  %v1086_v8 = vrot.slane %v10638_v17, 1 }
  0x23   : > { %10128 = vmatprep.subr.msk.bf16.mxu0 %vm458_vm0, %v8606_v9  ;;  %v732_v24 = vshll.u32 %v10642_v18, 16  ;;  %v736_v29 = vshrl.u32 %v10642_v18, 16  ;;  %v740_v30 = vshll.u32 %v10649_v25, 16  ;;  %v10663_v34 = vld [vmem:[%s10616_s19 + $0x20] sm:$0xff]   ;;  %v10232_v35 = vld [vmem:[%s10616_s19 + $0x8] sm:$0xff]   ;;  %v744_v38 = vshrl.u32 %v10649_v25, 16 }
  0x24   : > { %v717_v19 = vshrl.u32 %v8581_v16, 16  ;;  %v719_v20 = vshll.u32 %v8581_v16, 16  ;;  %v726_v27 = vrot.slane %v724_v21, 1  ;;  %v10235_v39 = vld [vmem:[%s10616_s19 + $0x10] sm:$0xff]   ;;  %v748_v43 = vshll.u32 %v10663_v34, 16  ;;  %v10716_v60 = vld [vmem:[%s10604_s10 + $0x8] sm:$0xff]  }
  0x25   : > { %v734_v28 = vrot.slane %v732_v24, 1  ;;  %v742_v37 = vrot.slane %v740_v30, 1  ;;  %v752_v44 = vshrl.u32 %v10663_v34, 16  ;;  %v10684_v46 = vld [vmem:[%s10616_s19 + $0x28] sm:$0xf]  ;;  %v922_v62 = vshll.u32 %v8594_v58, 16 }
  0x26   : > { %v721_v26 = vrot.slane %v719_v20, 1  ;;  %v730_v32 = vor.u32 %v728_v22, %v726_v27  ;;  %v682_v47 = vld [vmem:[%s10616_s19 + $0x2c] sm:$0x1]  ;;  %v750_v49 = vrot.slane %v748_v43, 1  ;;  %v1078_v57 = vld [vmem:[%s10616_s19] sm:$0xe] }
  0x27   : > { %v738_v36 = vor.u32 %v736_v29, %v734_v28  ;;  %v10692_v50 = vcombine.low %v10684_v46, %v682_v47  ;;  %v746_v51 = vor.u32 %v744_v38, %v742_v37  ;;  %v10236_v63 = vld [vmem:[%s10616_s19 + $0x18] sm:$0xff]   ;;  %v10724_v1 = vcombine.low %v1078_v57, %v10634_v15  ;;  %v10238_v2 = vld [vmem:[%s10616_s19 + $0x20] sm:$0xff]   ;;  %v10735_v9 = vld [vmem:[%s10604_s10 + $0x10] sm:$0xff]   ;;  %s8402_s21 = sshll.u32 %s13502_s20, 4  ;;  %s10484_s24 = smov [#allocation2]   ;;  %s13414_s21 = int_to_ptr.vmem [resolvable:$true] %s8402_s21 }
  0x28   : > { %9446 = vmatmul.mubr.msk.bf16.gmra.mxu1 %vm439_vm1, %v10227_v13  ;;  %v722_v31 = vor.u32 %v721_v26, %v717_v19  ;;  %v735_v42 = vsel %vm715_vm2, %v730_v32, %v734_v28  ;;  %v754_v53 = vor.u32 %v752_v44, %v750_v49  ;;  %v920_v4 = vshrl.u32 %v8594_v58, 16  ;;  %v10745_v13 = vld [vmem:[%s10604_s10 + $0x18] sm:$0xff]   ;;  %v10239_v14 = vld [vmem:[%s10616_s19 + $0x28] ss:$0 sps:$4 sm:$0xff]   ;;  %v10764_v28 = vld [vmem:[%s10604_s10 + $0x20] sm:$0xff]   ;;  %s10395_s25 = sshll.u32 %s10484_s24, 4  ;;  %s10396_s25 = int_to_ptr.vmem [resolvable:$false] %s10395_s25 }
  0x29   : > { %9451 = vmatprep.mubr.msk.bf16.mxu1 %vm439_vm1, %v10231_v23  ;;  %v743_v45 = vsel %vm715_vm2, %v738_v36, %v742_v37  ;;  %v756_v54 = vshll.u32 %v10692_v50, 16  ;;  %v751_v61 = vsel %vm715_vm2, %v746_v51, %v750_v49  ;;  %v760_v3 = vshrl.u32 %v10692_v50, 16  ;;  %v10780_v47 = vld [vmem:[%s13482_s4 + $0x20] sm:$0xf]  ;;  %v1337_v17 = vld [vmem:[%s10616_s19 + $0x2c] sm:$0x3]  ;;  %p10398_p0 = scmp.lt.s32.totalorder %s13406_s17, %s10396_s25 }
  0x2a   : > { %v727_v41 = vsel %vm715_vm2, %v722_v31, %v726_v27  ;;  %v924_v5 = vrot.slane %v922_v62, 1  ;;  %v927_v6 = vshll.u32 %v10716_v60, 16  ;;  %v1085_v7 = vrot.slane %v10724_v1, 1  ;;  %s10397_s20 = scalar_lea.vmem %s10396_s25, 32 }
  0x2b   : > { %9465 = vmatprep.mubr.msk.bf16.mxu0 %vm439_vm1, %v727_v41  ;;  %v758_v59 = vrot.slane %v756_v54, 1  ;;  %v935_v16 = vshll.u32 %v10735_v9, 16  ;;  %v931_v19 = vshrl.u32 %v10716_v60, 16  ;;  %v939_v23 = vshrl.u32 %v10735_v9, 16 }
  0x2c   : > { %9466 = vmatmul.mubr.msk.bf16.vlgmr.msra.gmra.mxu0 %vm439_vm1, %v735_v42  ;;  %v925_v11 = vor.u32 %v924_v5, %v920_v4  ;;  %v929_v12 = vrot.slane %v927_v6, 1  ;;  %v1087_v15 = vsel %vm1084_vm3, %v1085_v7, %v1086_v8  ;;  %v943_v26 = vshll.u32 %v10745_v13, 16 }
  0x2d   : > { %9492 = vmatpush3.bf16.msra.mxu0 %v1115_v33  ;;  %9469 = vmatprep.mubr.msk.bf16.mxu0 %vm439_vm1, %v743_v45  ;;  %v759_v0 = vsel %vm715_vm2, %v754_v53, %v758_v59  ;;  %v762_v10 = vor.u32 %v760_v3, %v758_v59  ;;  %v1088_v27 = vrot.slane %v10642_v18, 1  ;;  %v937_v31 = vrot.slane %v935_v16, 1  ;;  %v1208_v3 = vld [vmem:[%s10604_s10] sm:$0xe] }
  0x2e   : > { %10130 = vmatprep.subr.msk.bf16.mxu0 %vm458_vm0, %v10675_v40  ;;  %v930_v20 = vsel %vm715_vm2, %v925_v11, %v929_v12  ;;  %v1090_v32 = vrot.slane %v10649_v25, 1  ;;  %v933_v33 = vor.u32 %v931_v19, %v929_v12  ;;  %v945_v37 = vrot.slane %v943_v26, 1 }
  0x2f   : > { %v941_v36 = vor.u32 %v939_v23, %v937_v31  ;;  %v951_v41 = vshll.u32 %v10764_v28, 16  ;;  %v1396_v42 = vsel %vm458_vm0, %v10675_v40, 0  ;;  %v1244_v49 = vsel %vm458_vm0, %v10700_v52, 0 }
  0x30   : > { %9452 = vmatmul.mubr.msk.bf16.vlgmr.msra.gmra.mxu1 %vm439_vm1, %v10232_v35  ;;  %v10770_v35 = vld [vmem:[%s10604_s10 + $0x28] sm:$0x1f]   ;;  %v1091_v45 = vsel %vm1084_vm3, %v1088_v27, %v1090_v32  ;;  %v947_v51 = vshrl.u32 %v10745_v13, 16  ;;  %v955_v40 = vshrl.u32 %v10764_v28, 16  ;;  %v1092_v55 = vrot.slane %v10663_v34, 1 }
  0x31   : > { %9478 = vmatpush3.bf16.msra.mxu1 %v985_v48  ;;  %9455 = vmatprep.mubr.msk.bf16.mxu1 %vm439_vm1, %v10235_v39  ;;  %v1089_v39 = vsel %vm1084_vm3, %v1086_v8, %v1088_v27  ;;  %v938_v48 = vsel %vm715_vm2, %v933_v33, %v937_v31  ;;  %v946_v53 = vsel %vm715_vm2, %v941_v36, %v945_v37  ;;  %v959_v54 = vshll.u32 %v10770_v35, 16 }
  0x32   : > { %10129 = vmatprep.subr.msk.bf16.mxu1 %vm458_vm0, %v10700_v52  ;;  %v953_v57 = vrot.slane %v951_v41, 1  ;;  %v1094_v58 = vrot.slane %v10692_v50, 1  ;;  %v8630_v52 = vld [vmem:[%s13482_s4 + $0x1c] sm:$0xf]  ;;  %v1345_v59 = vshrl.u32 %v10724_v1, 16  ;;  %v949_v62 = vor.u32 %v947_v51, %v945_v37  ;;  %v10251_v51 = vld [vmem:[%s10751_s22] sm:$0xff]  }
  0x33   : > { %v1093_v50 = vsel %vm1084_vm3, %v1090_v32, %v1092_v55  ;;  %v1353_v6 = vrot.slane %v724_v21, 2  ;;  %v963_v11 = vshrl.u32 %v10770_v35, 16  ;;  %v1361_v23 = vrot.slane %v740_v30, 2 }
  0x34   : > { %9470 = vmatmul.mubr.msk.bf16.gmra.mxu0 %vm439_vm1, %v751_v61  ;;  %v1348_v61 = vshll.u32 %v10724_v1, 16  ;;  %v1347_v4 = vrot.slane %v1345_v59, 1  ;;  %v1352_v1 = vrot.slane %v728_v22, 1  ;;  %v954_v7 = vsel %vm715_vm2, %v949_v62, %v953_v57  ;;  %v10255_v62 = vld [vmem:[%s10751_s22 + $0x10] sm:$0xff]  }
  0x35   : > { %9473 = vmatprep.mubr.msk.bf16.mxu0 %vm439_vm1, %v759_v0  ;;  %v961_v0 = vrot.slane %v959_v54, 1  ;;  %v8623_v26 = vcombine.low %v10684_v46, %v1337_v17  ;;  %v1219_v25 = vrot.slane %v10745_v13, 1  ;;  %v1702_v46 = vsel %vm458_vm0, %v10780_v47, 0  ;;  %v10250_v54 = vld [vmem:[%s10741_s18 + $0x8] sm:$0xff]   ;;  %v10919_v17 = vld [vmem:[%s10751_s22 + $0x10] sm:$0xff]  }
  0x36   : > { %v1350_v5 = vrot.slane %v1348_v61, 2  ;;  %v1354_v22 = vor.u32 %v1353_v6, %v1352_v1  ;;  %v1364_v31 = vrot.slane %v752_v44, 1  ;;  %v1365_v32 = vrot.slane %v748_v43, 2  ;;  %v8656_v43 = vld [vmem:[%s13482_s4 + $0x24] sm:$0xf]  ;;  %v10908_v1 = vld [vmem:[%s10751_s22 + $0x8] sm:$0xff]  }
  0x37   : > { %v965_v16 = vor.u32 %v963_v11, %v961_v0  ;;  %v1372_v27 = vshll.u32 %v8623_v26, 16  ;;  %v1549_v13 = vsel %vm458_vm0, %v8630_v52, 0  ;;  %v10254_v6 = vld [vmem:[%s10741_s18 + $0x18] sm:$0xff]  }
  0x38   : > { %9456 = vmatmul.mubr.msk.bf16.gmra.mxu1 %vm439_vm1, %v10236_v63  ;;  %v957_v63 = vor.u32 %v955_v40, %v953_v57  ;;  %v1351_v12 = vor.u32 %v1350_v5, %v1347_v4  ;;  %v1366_v34 = vor.u32 %v1365_v32, %v1364_v31  ;;  %v10878_v40 = vld [vmem:[%s10741_s18 + $0x4] sm:$0xf]  ;;  %v1795_v57 = vld [vmem:[%s10751_s22] sm:$0xf]  ;;  %v8682_v4 = vld [vmem:[%s13482_s4 + $0x2c] sm:$0xf] }
  0x39   : > { %9459 = vmatprep.mubr.msk.bf16.mxu1 %vm439_vm1, %v10238_v2  ;;  %v1095_v2 = vsel %vm1084_vm3, %v1092_v55, %v1094_v58  ;;  %v1374_v37 = vrot.slane %v1372_v27, 2  ;;  %v10253_v55 = vld [vmem:[%s10741_s18 + $0x10] sm:$0xff]  }
  0x3a   : > { %v962_v8 = vsel %vm715_vm2, %v957_v63, %v961_v0  ;;  %v1355_v19 = vsel %vm1343_vm4, %v1351_v12, %v1354_v22  ;;  %v8690_v63 = vld [vmem:[%s13482_s4 + $0x30] sm:$0xf]  ;;  %v1905_v0 = vsel %vm458_vm0, %v8656_v43, 0 }
  0x3b   : > { %v2366_v32 = vsel %vm458_vm0, %v8690_v63, 0 }
  0x3c   : > { %9474 = vmatmul.mubr.msk.bf16.gmra.mxu0 %vm439_vm1, %v762_v10  ;;  %v8615_v10 = vcombine.low %v1208_v3, %v10708_v56  ;;  %v1356_v56 = vrot.slane %v736_v29, 1  ;;  %v1369_v29 = vshrl.u32 %v8623_v26, 16  ;;  %v10901_v3 = vld [vmem:[%s10741_s18 + $0x10] sm:$0xff]   ;;  %v10928_v26 = vld [vmem:[%s10741_s18 + $0x18] sm:$0xff]  }
  0x3d   : > { %9493 = vmatprep.mubr.msk.bf16.mxu0 %vm439_vm1, %v1087_v15  ;;  %v1357_v15 = vrot.slane %v732_v24, 2 }
  0x3e   : > { %v1214_v21 = vrot.slane %v8615_v10, 1  ;;  %v1371_v36 = vrot.slane %v1369_v29, 1 }
  0x3f   : > { %v1358_v24 = vor.u32 %v1357_v15, %v1356_v56  ;;  %v10259_v15 = vld [vmem:[%s10751_s22 + $0x20] sm:$0xff]  }
  0x40   : > { %9460 = vmatmul.mubr.msk.bf16.gmra.mxu1 %vm439_vm1, %v10239_v14  ;;  %v1215_v14 = vrot.slane %v10716_v60, 1  ;;  %v1375_v44 = vor.u32 %v1374_v37, %v1371_v36  ;;  %v2066_v37 = vshll.u32 %v10928_v26, 16 }
  0x41   : > { %9479 = vmatprep.mubr.msk.bf16.mxu1 %vm439_vm1, %v930_v20  ;;  %v1360_v20 = vrot.slane %v744_v38, 1  ;;  %v1217_v38 = vrot.slane %v10735_v9, 1  ;;  %v1359_v30 = vsel %vm1343_vm4, %v1354_v22, %v1358_v24  ;;  %v8669_v9 = vld [vmem:[%s13482_s4 + $0x28] sm:$0xf]  ;;  %v2058_v22 = vshll.u32 %v10901_v3, 16 }
  0x42   : > { %v1216_v60 = vsel %vm1084_vm3, %v1214_v21, %v1215_v14  ;;  %v2108_v59 = vsel %vm458_vm0, %v8669_v9, 0 }
  0x43   : > { %v1362_v18 = vor.u32 %v1361_v23, %v1360_v20  ;;  %v1220_v41 = vsel %vm1084_vm3, %v1217_v38, %v1219_v25  ;;  %v1855_v23 = vshll.u32 %v10919_v17, 16  ;;  %v2060_v29 = vrot.slane %v2058_v22, 1 }
  0x44   : > { %9494 = vmatmul.mubr.msk.bf16.vlgmr.msra.gmra.mxu0 %vm439_vm1, %v1089_v39  ;;  %v1218_v39 = vsel %vm1084_vm3, %v1215_v14, %v1217_v38  ;;  %v1847_v14 = vshll.u32 %v10908_v1, 16  ;;  %v1851_v38 = vshrl.u32 %v10908_v1, 16 }
  0x45   : > { %9520 = vmatpush3.bf16.msra.mxu0 %v1396_v42  ;;  %9497 = vmatprep.mubr.msk.bf16.mxu0 %vm439_vm1, %v1091_v45  ;;  %v1363_v33 = vsel %vm1343_vm4, %v1358_v24, %v1362_v18  ;;  %v1221_v42 = vrot.slane %v10764_v28, 1  ;;  %v1223_v45 = vrot.slane %v10770_v35, 1  ;;  %v10249_v35 = vld [vmem:[%s10741_s18] sm:$0xff]   ;;  %v10258_v24 = vld [vmem:[%s10741_s18 + $0x28] ss:$0 sps:$4 sm:$0xff]   ;;  %v1857_v36 = vrot.slane %v1855_v23, 1 }
  0x46   : > { %10132 = vmatprep.subr.msk.bf16.mxu0 %vm458_vm0, %v10780_v47  ;;  %v1367_v47 = vsel %vm1343_vm4, %v1362_v18, %v1366_v34  ;;  %v1849_v27 = vrot.slane %v1847_v14, 1 }
  0x47   : > { %v1224_v28 = vsel %vm1084_vm3, %v1221_v42, %v1223_v45 }
  0x48   : > { %9480 = vmatmul.mubr.msk.bf16.vlgmr.msra.gmra.mxu1 %vm439_vm1, %v938_v48  ;;  %v1376_v48 = vsel %vm1343_vm4, %v1366_v34, %v1375_v44  ;;  %v3590_v34 = vld [vmem:[%s10616_s19 + $0x4] sm:$0x8] }
  0x49   : > { %9506 = vmatpush3.bf16.msra.mxu1 %v1244_v49  ;;  %9483 = vmatprep.mubr.msk.bf16.mxu1 %vm439_vm1, %v946_v53  ;;  %v1222_v49 = vsel %vm1084_vm3, %v1219_v25, %v1221_v42  ;;  %v1998_v53 = vld [vmem:[%s10741_s18] sm:$0xf]  ;;  %v10940_v25 = vsel %vm458_vm0, %v8682_v4, 0 }
  0x4a   : > { %10131 = vmatprep.subr.msk.bf16.mxu1 %vm458_vm0, %v8630_v52  ;;  %v10252_v52 = vld [vmem:[%s10751_s22 + $0x8] sm:$0xff]   ;;  %v8670_v61 = vcombine.low %v1998_v53, %v10878_v40  ;;  %v2068_v53 = vrot.slane %v2066_v37, 1  ;;  %v2330_v37 = vld [vmem:[%s10741_s18] sm:$0xe] }
  0x4c   : > { %9498 = vmatmul.mubr.msk.bf16.gmra.mxu0 %vm439_vm1, %v1093_v50  ;;  %v10896_v50 = vld [vmem:[%s10741_s18 + $0x8] sm:$0xff]   ;;  %v2045_v5 = vshll.u32 %v8670_v61, 16  ;;  %v2043_v11 = vshrl.u32 %v8670_v61, 16 }
  0x4d   : > { %9501 = vmatprep.mubr.msk.bf16.mxu0 %vm439_vm1, %v1095_v2  ;;  %v2050_v12 = vshll.u32 %v10896_v50, 16  ;;  %v2054_v20 = vshrl.u32 %v10896_v50, 16 }
  0x4e   : > { %v2047_v21 = vrot.slane %v2045_v5, 1 }
  0x50   : > { %9484 = vmatmul.mubr.msk.bf16.gmra.mxu1 %vm439_vm1, %v954_v7  ;;  %v10256_v7 = vld [vmem:[%s10751_s22 + $0x18] sm:$0xff]   ;;  %v2048_v18 = vor.u32 %v2047_v21, %v2043_v11 }
  0x51   : > { %9487 = vmatprep.mubr.msk.bf16.mxu1 %vm439_vm1, %v962_v8  ;;  %v10257_v8 = vld [vmem:[%s10741_s18 + $0x20] sm:$0xff]  }
  0x54   : > { %9502 = vmatmul.mubr.msk.bf16.gmra.mxu0 %vm439_vm1, %v1094_v58  ;;  %v10884_v58 = vld [vmem:[%s10751_s22 + $0x4] sm:$0xf] }
  0x55   : > { %9521 = vmatprep.mubr.msk.bf16.mxu0 %vm439_vm1, %v1355_v19  ;;  %v8657_v2 = vcombine.low %v1795_v57, %v10884_v58  ;;  %v2052_v19 = vrot.slane %v2050_v12, 1  ;;  %v1853_v57 = vor.u32 %v1851_v38, %v1849_v27 }
  0x57   : > { %v1842_v10 = vshll.u32 %v8657_v2, 16  ;;  %v1840_v56 = vshrl.u32 %v8657_v2, 16  ;;  %v2070_v2 = vshrl.u32 %v10928_v26, 16  ;;  %v1858_v22 = vsel %vm715_vm2, %v1853_v57, %v1857_v36 }
  0x58   : > { %9488 = vmatmul.mubr.msk.bf16.gmra.mxu1 %vm439_vm1, %v965_v16 }
  0x59   : > { %9507 = vmatprep.mubr.msk.bf16.mxu1 %vm439_vm1, %v1216_v60  ;;  %v1844_v16 = vrot.slane %v1842_v10, 1  ;;  %v10931_v60 = vld [vmem:[%s10741_s18 + $0x20] sm:$0xff]  }
  0x5a   : > { %v11000_v10 = vld [vmem:[%s10616_s19 + $0x1c] sm:$0xff]  }
  0x5b   : > { %v1845_v31 = vor.u32 %v1844_v16, %v1840_v56  ;;  %v11013_v56 = vld [vmem:[%s10616_s19 + $0x24] sm:$0xff]  }
  0x5c   : > { %9522 = vmatmul.mubr.msk.bf16.vlgmr.msra.gmra.mxu0 %vm439_vm1, %v1359_v30  ;;  %v10943_v30 = vld [vmem:[%s10751_s22 + $0x18] sm:$0xff]  }
  0x5d   : > { %9548 = vmatpush3.bf16.msra.mxu0 %v1702_v46  ;;  %9525 = vmatprep.mubr.msk.bf16.mxu0 %vm439_vm1, %v1363_v33  ;;  %v10260_v46 = vld [vmem:[%s10751_s22 + $0x28] ss:$0 sps:$4 sm:$0xff]   ;;  %v2062_v33 = vshrl.u32 %v10901_v3, 16  ;;  %v1850_v42 = vsel %vm715_vm2, %v1845_v31, %v1849_v27  ;;  %v3604_v27 = vrot.slane %v11013_v56, 3 }
  0x5e   : > { %10134 = vmatprep.subr.msk.bf16.mxu0 %vm458_vm0, %v8669_v9  ;;  %v1859_v9 = vshrl.u32 %v10919_v17, 16 }
  0x60   : > { %9508 = vmatmul.mubr.msk.bf16.vlgmr.msra.gmra.mxu1 %vm439_vm1, %v1218_v39  ;;  %v2074_v39 = vshll.u32 %v10931_v60, 16 }
  0x61   : > { %9534 = vmatpush3.bf16.msra.mxu1 %v1549_v13  ;;  %9511 = vmatprep.mubr.msk.bf16.mxu1 %vm439_vm1, %v1220_v41  ;;  %v2053_v13 = vsel %vm715_vm2, %v2048_v18, %v2052_v19  ;;  %v2056_v41 = vor.u32 %v2054_v20, %v2052_v19  ;;  %v2072_v18 = vor.u32 %v2070_v2, %v2068_v53 }
  0x62   : > { %10133 = vmatprep.subr.msk.bf16.mxu1 %vm458_vm0, %v8656_v43  ;;  %v1863_v43 = vshll.u32 %v10943_v30, 16  ;;  %v2076_v21 = vrot.slane %v2074_v39, 1 }
  0x64   : > { %9526 = vmatmul.mubr.msk.bf16.gmra.mxu0 %vm439_vm1, %v1367_v47  ;;  %v10965_v47 = vld [vmem:[%s10616_s19 + $0x8] sm:$0xf]  ;;  %v1865_v61 = vrot.slane %v1863_v43, 1 }
  0x65   : > { %9529 = vmatprep.mubr.msk.bf16.mxu0 %vm439_vm1, %v1376_v48  ;;  %v10968_v48 = vld [vmem:[%s10616_s19 + $0xc] sm:$0xff]  }
  0x68   : > { %9512 = vmatmul.mubr.msk.bf16.gmra.mxu1 %vm439_vm1, %v1222_v49  ;;  %v1806_v49 = vld [vmem:[%s10751_s22 + $0x2c] sm:$0x1] }
  0x69   : > { %9515 = vmatprep.mubr.msk.bf16.mxu1 %vm439_vm1, %v1224_v28  ;;  %v8765_v28 = vcombine.low %v3590_v34, %v10965_v47  ;;  %v2077_v34 = vsel %vm715_vm2, %v2072_v18, %v2076_v21 }
  0x6c   : > { %9530 = vmatmul.mubr.msk.bf16.gmra.mxu0 %vm439_vm1, %v1375_v44  ;;  %v10957_v44 = vld [vmem:[%s10751_s22 + $0x20] sm:$0xff]  }
  0x6d   : > { %9549 = vmatprep.mubr.msk.bf16.mxu0 %vm439_vm1, %v10249_v35  ;;  %v2061_v35 = vsel %vm715_vm2, %v2056_v41, %v2060_v29  ;;  %v1871_v5 = vshll.u32 %v10957_v44, 16  ;;  %v1875_v19 = vshrl.u32 %v10957_v44, 16 }
  0x70   : > { %9516 = vmatmul.mubr.msk.bf16.gmra.mxu1 %vm439_vm1, %v1223_v45  ;;  %v10962_v45 = vld [vmem:[%s10751_s22 + $0x28] sm:$0xf] }
  0x71   : > { %9535 = vmatprep.mubr.msk.bf16.mxu1 %vm439_vm1, %v10251_v51  ;;  %v2064_v51 = vor.u32 %v2062_v33, %v2060_v29  ;;  %v8698_v29 = vld [vmem:[%s13482_s4 + $0x34] sm:$0xf] }
  0x72   : > { %v2517_v18 = vsel %vm458_vm0, %v8698_v29, 0 }
  0x74   : > { %9550 = vmatmul.mubr.msk.bf16.vlgmr.msra.gmra.mxu0 %vm439_vm1, %v10250_v54  ;;  %v10976_v54 = vld [vmem:[%s10741_s18 + $0x28] sm:$0x1f]  }
  0x75   : > { %9576 = vmatpush3.bf16.msra.mxu0 %v2108_v59  ;;  %9553 = vmatprep.mubr.msk.bf16.mxu0 %vm439_vm1, %v10253_v55  ;;  %v10979_v55 = vld [vmem:[%s10616_s19 + $0x14] sm:$0xff]   ;;  %v3597_v59 = vrot.slane %v8765_v28, 3 }
  0x76   : > { %10136 = vmatprep.subr.msk.bf16.mxu0 %vm458_vm0, %v8690_v63  ;;  %v3598_v63 = vrot.slane %v10968_v48, 3 }
  0x78   : > { %9536 = vmatmul.mubr.msk.bf16.vlgmr.msra.gmra.mxu1 %vm439_vm1, %v10252_v52  ;;  %v1861_v52 = vor.u32 %v1859_v9, %v1857_v36  ;;  %v11003_v11 = vsel %vm3596_vm5, %v3597_v59, %v3598_v63 }
  0x79   : > { %9562 = vmatpush3.bf16.msra.mxu1 %v1905_v0  ;;  %9539 = vmatprep.mubr.msk.bf16.mxu1 %vm439_vm1, %v10255_v62  ;;  %v10989_v62 = vcombine.low %v10962_v45, %v1806_v49  ;;  %v3600_v0 = vrot.slane %v10979_v55, 3  ;;  %v8691_v49 = vcombine.low %v2330_v37, %v10878_v40  ;;  %v2337_v40 = vrot.slane %v10896_v50, 1 }
  0x7a   : > { %10135 = vmatprep.subr.msk.bf16.mxu1 %vm458_vm0, %v8682_v4  ;;  %v1867_v4 = vshrl.u32 %v10943_v30, 16  ;;  %v1866_v16 = vsel %vm715_vm2, %v1861_v52, %v1865_v61  ;;  %v2341_v50 = vrot.slane %v10928_v26, 1  ;;  %v11079_v26 = vld [vmem:[%s13482_s4 + $0x40] sm:$0xf] }
  0x7b   : > { %v11006_v12 = vsel %vm3596_vm5, %v3598_v63, %v3600_v0  ;;  %v1879_v20 = vshll.u32 %v10989_v62, 16  ;;  %v1883_v57 = vshrl.u32 %v10989_v62, 16  ;;  %v2336_v52 = vrot.slane %v8691_v49, 1 }
  0x7c   : > { %9554 = vmatmul.mubr.msk.bf16.gmra.mxu0 %vm439_vm1, %v10254_v6  ;;  %v2078_v6 = vshrl.u32 %v10931_v60, 16  ;;  %v1869_v36 = vor.u32 %v1867_v4, %v1865_v61  ;;  %v2208_v63 = vrot.slane %v10908_v1, 1  ;;  %v2621_v1 = vld [vmem:[%s10616_s19 + $0x30] sm:$0x3] }
  0x7d   : > { %9557 = vmatprep.mubr.msk.bf16.mxu0 %vm439_vm1, %v10257_v8  ;;  %v2082_v8 = vshll.u32 %v10976_v54, 16  ;;  %v1881_v41 = vrot.slane %v1879_v20, 1  ;;  %v2338_v2 = vsel %vm1084_vm3, %v2336_v52, %v2337_v40 }
  0x7e   : > { %v2080_v31 = vor.u32 %v2078_v6, %v2076_v21  ;;  %v2339_v6 = vrot.slane %v10901_v3, 1 }
  0x7f   : > { %v2084_v33 = vrot.slane %v2082_v8, 1  ;;  %v2610_v8 = vld [vmem:[%s10616_s19 + $0x4] sm:$0xe] }
  0x80   : > { %9540 = vmatmul.mubr.msk.bf16.gmra.mxu1 %vm439_vm1, %v10256_v7  ;;  %v2069_v7 = vsel %vm715_vm2, %v2064_v51, %v2068_v53  ;;  %v2340_v21 = vsel %vm1084_vm3, %v2337_v40, %v2339_v6  ;;  %v2342_v20 = vsel %vm1084_vm3, %v2339_v6, %v2341_v50  ;;  %v2473_v40 = vrot.slane %v1851_v38, 1  ;;  %v11123_v38 = vld [vmem:[%s10616_s19 + $0x2c] sm:$0xf] }
  0x81   : > { %9543 = vmatprep.mubr.msk.bf16.mxu1 %vm439_vm1, %v10259_v15  ;;  %v8706_v15 = vld [vmem:[%s13482_s4 + $0x38] sm:$0xf]  ;;  %v2684_v6 = vshll.u32 %v11000_v10, 16 }
  0x84   : > { %9558 = vmatmul.mubr.msk.bf16.gmra.mxu0 %vm439_vm1, %v10258_v24  ;;  %v3602_v24 = vrot.slane %v11000_v10, 3 }
  0x85   : > { %9577 = vmatprep.mubr.msk.bf16.mxu0 %vm439_vm1, %v2053_v13 }
  0x86   : > { %v11040_v39 = vsel %vm3596_vm5, %v3602_v24, %v3604_v27 }
  0x88   : > { %9544 = vmatmul.mubr.msk.bf16.gmra.mxu1 %vm439_vm1, %v10260_v46  ;;  %v1873_v46 = vrot.slane %v1871_v5, 1 }
  0x89   : > { %9563 = vmatprep.mubr.msk.bf16.mxu1 %vm439_vm1, %v1850_v42  ;;  %v2085_v42 = vsel %vm715_vm2, %v2080_v31, %v2084_v33  ;;  %v2345_v31 = vrot.slane %v10976_v54, 1 }
  0x8a   : > { %v1877_v13 = vor.u32 %v1875_v19, %v1873_v46  ;;  %v1874_v28 = vsel %vm715_vm2, %v1869_v36, %v1873_v46 }
  0x8c   : > { %9578 = vmatmul.mubr.msk.bf16.vlgmr.msra.gmra.mxu0 %vm439_vm1, %v2061_v35  ;;  %v2086_v35 = vshrl.u32 %v10976_v54, 16  ;;  %v1882_v51 = vsel %vm715_vm2, %v1877_v13, %v1881_v41  ;;  %v2666_v13 = vshll.u32 %v10968_v48, 16  ;;  %v2216_v54 = vrot.slane %v10989_v62, 1 }
  0x8d   : > { %9604 = vmatpush3.bf16.msra.mxu0 %v2366_v32  ;;  %9581 = vmatprep.mubr.msk.bf16.mxu0 %vm439_vm1, %v2069_v7  ;;  %v11030_v32 = vsel %vm3596_vm5, %v3600_v0, %v3602_v24  ;;  %v1885_v0 = vor.u32 %v1883_v57, %v1881_v41  ;;  %v2210_v7 = vrot.slane %v10919_v17, 1  ;;  %v8707_v24 = vcombine.low %v2610_v8, %v10965_v47 }
  0x8e   : > { %10138 = vmatprep.subr.msk.bf16.mxu0 %vm458_vm0, %v8706_v15  ;;  %v2088_v59 = vor.u32 %v2086_v35, %v2084_v33  ;;  %v11090_v33 = vld [vmem:[%s13482_s4 + $0x3c] sm:$0xf]  ;;  %v2690_v17 = vshrl.u32 %v11013_v56, 16 }
  0x8f   : > { %v2211_v3 = vsel %vm1084_vm3, %v2208_v63, %v2210_v7  ;;  %v2655_v36 = vshrl.u32 %v8707_v24, 16  ;;  %v2658_v37 = vshll.u32 %v8707_v24, 16  ;;  %v11137_v24 = vcombine.low %v11123_v38, %v2621_v1 }
  0x90   : > { %9564 = vmatmul.mubr.msk.bf16.vlgmr.msra.gmra.mxu1 %vm439_vm1, %v1858_v22  ;;  %v2212_v22 = vrot.slane %v10943_v30, 1 }
  0x91   : > { %9590 = vmatpush3.bf16.msra.mxu1 %v10940_v25  ;;  %9567 = vmatprep.mubr.msk.bf16.mxu1 %vm439_vm1, %v1866_v16  ;;  %v2201_v25 = vld [vmem:[%s10751_s22] sm:$0xe]  ;;  %v2726_v16 = vsel %vm458_vm0, %v8706_v15, 0  ;;  %v2343_v15 = vrot.slane %v10931_v60, 1  ;;  %v2214_v60 = vrot.slane %v10957_v44, 1  ;;  %v2657_v49 = vrot.slane %v2655_v36, 1 }
  0x92   : > { %10137 = vmatprep.subr.msk.bf16.mxu1 %vm458_vm0, %v8698_v29  ;;  %v8683_v53 = vcombine.low %v2201_v25, %v10884_v58  ;;  %v2213_v46 = vsel %vm1084_vm3, %v2210_v7, %v2212_v22  ;;  %v2663_v29 = vshrl.u32 %v10968_v48, 16  ;;  %v2482_v36 = vrot.slane %v1863_v43, 2 }
  0x93   : > { %v2344_v25 = vsel %vm1084_vm3, %v2341_v50, %v2343_v15  ;;  %v2215_v57 = vsel %vm1084_vm3, %v2212_v22, %v2214_v60  ;;  %v2217_v62 = vsel %vm1084_vm3, %v2214_v60, %v2216_v54  ;;  %v2459_v22 = vld [vmem:[%s10751_s22 + $0x2c] sm:$0x3] }
  0x94   : > { %9582 = vmatmul.mubr.msk.bf16.gmra.mxu0 %vm439_vm1, %v2077_v34  ;;  %v2207_v61 = vrot.slane %v8683_v53, 1  ;;  %v2466_v41 = vshrl.u32 %v8683_v53, 16  ;;  %v2469_v34 = vshll.u32 %v8683_v53, 16  ;;  %v2665_v35 = vrot.slane %v2663_v29, 1 }
  0x95   : > { %9585 = vmatprep.mubr.msk.bf16.mxu0 %vm439_vm1, %v2085_v42  ;;  %v2346_v42 = vsel %vm1084_vm3, %v2343_v15, %v2345_v31  ;;  %v2481_v15 = vrot.slane %v1867_v4, 1  ;;  %v2702_v4 = vshll.u32 %v11137_v24, 16 }
  0x96   : > { %v2209_v58 = vsel %vm1084_vm3, %v2207_v61, %v2208_v63  ;;  %v2468_v53 = vrot.slane %v2466_v41, 1  ;;  %v2471_v52 = vrot.slane %v2469_v34, 2  ;;  %v2672_v61 = vshrl.u32 %v10979_v55, 16 }
  0x97   : > { %v2675_v63 = vshll.u32 %v10979_v55, 16  ;;  %v2483_v43 = vor.u32 %v2482_v36, %v2481_v15  ;;  %v11211_v36 = vld [vmem:[%s10604_s10 + $0x14] sm:$0xff]  }
  0x98   : > { %9568 = vmatmul.mubr.msk.bf16.gmra.mxu1 %vm439_vm1, %v1874_v28  ;;  %v2660_v28 = vrot.slane %v2658_v37, 2  ;;  %v2674_v7 = vrot.slane %v2672_v61, 1  ;;  %v8699_v37 = vcombine.low %v10962_v45, %v2459_v22 }
  0x99   : > { %9571 = vmatprep.mubr.msk.bf16.mxu1 %vm439_vm1, %v1882_v51  ;;  %v2668_v51 = vrot.slane %v2666_v13, 2  ;;  %v2677_v8 = vrot.slane %v2675_v63, 2 }
  0x9a   : > { %v2490_v45 = vshrl.u32 %v8699_v37, 16  ;;  %v2493_v41 = vshll.u32 %v8699_v37, 16 }
  0x9b   : > { %v2678_v60 = vor.u32 %v2677_v8, %v2674_v7 }
  0x9c   : > { %9586 = vmatmul.mubr.msk.bf16.gmra.mxu0 %vm439_vm1, %v2088_v59  ;;  %v2474_v59 = vrot.slane %v1847_v14, 2  ;;  %v2472_v14 = vor.u32 %v2471_v52, %v2468_v53  ;;  %v2935_v53 = vsel %vm458_vm0, %v11090_v33, 0  ;;  %v2485_v52 = vrot.slane %v1875_v19, 1 }
  0x9d   : > { %9605 = vmatprep.mubr.msk.bf16.mxu0 %vm439_vm1, %v2338_v2  ;;  %v2669_v2 = vor.u32 %v2668_v51, %v2665_v35 }
  0x9e   : > { %v2475_v50 = vor.u32 %v2474_v59, %v2473_v40  ;;  %v2486_v40 = vrot.slane %v1871_v5, 2  ;;  %v11177_v59 = vld [vmem:[%s10604_s10 + $0xc] sm:$0xff]   ;;  %v11191_v5 = vld [vmem:[%s13482_s4 + $0x44] sm:$0xf] }
  0x9f   : > { %v2679_v34 = vsel %vm1343_vm4, %v2669_v2, %v2678_v60  ;;  %v2872_v7 = vshrl.u32 %v11177_v59, 16 }
  0xa0   : > { %9572 = vmatmul.mubr.msk.bf16.gmra.mxu1 %vm439_vm1, %v1885_v0  ;;  %v2661_v0 = vor.u32 %v2660_v28, %v2657_v49  ;;  %v11164_v49 = vld [vmem:[%s10604_s10 + $0x8] sm:$0xf]  ;;  %v3065_v28 = vsel %vm458_vm0, %v11079_v26, 0 }
  0xa1   : > { %9591 = vmatprep.mubr.msk.bf16.mxu1 %vm439_vm1, %v2209_v58  ;;  %v2681_v58 = vshrl.u32 %v11000_v10, 16  ;;  %v2874_v15 = vrot.slane %v2872_v7, 1 }
  0xa4   : > { %9606 = vmatmul.mubr.msk.bf16.vlgmr.msra.gmra.mxu0 %vm439_vm1, %v2340_v21  ;;  %v2670_v21 = vsel %vm1343_vm4, %v2661_v0, %v2669_v2  ;;  %v2492_v2 = vrot.slane %v2490_v45, 1  ;;  %v2884_v45 = vshll.u32 %v11211_v36, 16 }
  0xa5   : > { %9632 = vmatpush3.bf16.msra.mxu0 %v2726_v16  ;;  %9609 = vmatprep.mubr.msk.bf16.mxu0 %vm439_vm1, %v2342_v20  ;;  %v2683_v16 = vrot.slane %v2681_v58, 1  ;;  %v2686_v20 = vrot.slane %v2684_v6, 2 }
  0xa6   : > { %10140 = vmatprep.subr.msk.bf16.mxu0 %vm458_vm0, %v11079_v26  ;;  %v11182_v26 = vld [vmem:[%s13482_s4 + $0x48] sm:$0xf] }
  0xa8   : > { %9592 = vmatmul.mubr.msk.bf16.vlgmr.msra.gmra.mxu1 %vm439_vm1, %v2211_v3  ;;  %v2477_v3 = vrot.slane %v1859_v9, 1  ;;  %v2687_v9 = vor.u32 %v2686_v20, %v2683_v16  ;;  %v2875_v16 = vshll.u32 %v11177_v59, 16 }
  0xa9   : > { %9618 = vmatpush3.bf16.msra.mxu1 %v2517_v18  ;;  %9595 = vmatprep.mubr.msk.bf16.mxu1 %vm439_vm1, %v2213_v46  ;;  %v2478_v18 = vrot.slane %v1855_v23, 2  ;;  %v2476_v46 = vsel %vm1343_vm4, %v2472_v14, %v2475_v50  ;;  %v2693_v23 = vshll.u32 %v11013_v56, 16  ;;  %v2487_v14 = vor.u32 %v2486_v40, %v2485_v52 }
  0xaa   : > { %10139 = vmatprep.subr.msk.bf16.mxu1 %vm458_vm0, %v11090_v33  ;;  %v2688_v35 = vsel %vm1343_vm4, %v2678_v60, %v2687_v9  ;;  %v2495_v33 = vrot.slane %v2493_v41, 2 }
  0xab   : > { %v2479_v30 = vor.u32 %v2478_v18, %v2477_v3 }
  0xac   : > { %9610 = vmatmul.mubr.msk.bf16.gmra.mxu0 %vm439_vm1, %v2344_v25  ;;  %v2692_v25 = vrot.slane %v2690_v17, 1  ;;  %v2496_v8 = vor.u32 %v2495_v33, %v2492_v2  ;;  %v3038_v2 = vrot.slane %v10979_v55, 2  ;;  %v3040_v33 = vrot.slane %v11000_v10, 2 }
  0xad   : > { %9613 = vmatprep.mubr.msk.bf16.mxu0 %vm439_vm1, %v2346_v42  ;;  %v2819_v42 = vld [vmem:[%s10604_s10 + $0x4] sm:$0xe]  ;;  %v2484_v0 = vsel %vm1343_vm4, %v2479_v30, %v2483_v43 }
  0xae   : > { %v8720_v1 = vcombine.low %v2819_v42, %v11164_v49  ;;  %v2497_v37 = vsel %vm1343_vm4, %v2487_v14, %v2496_v8  ;;  %v11230_v42 = vld [vmem:[%s10604_s10 + $0x2c] sm:$0xf] }
  0xb0   : > { %9596 = vmatmul.mubr.msk.bf16.gmra.mxu1 %vm439_vm1, %v2215_v57  ;;  %v2704_v57 = vrot.slane %v2702_v4, 2  ;;  %v2864_v22 = vshrl.u32 %v8720_v1, 16 }
  0xb1   : > { %9599 = vmatprep.mubr.msk.bf16.mxu1 %vm439_vm1, %v2217_v62  ;;  %v2480_v62 = vsel %vm1343_vm4, %v2475_v50, %v2479_v30  ;;  %v3028_v50 = vld [vmem:[%s10616_s19 + $0x4] sm:$0xc]  ;;  %v3036_v30 = vrot.slane %v10968_v48, 2  ;;  %v3287_v48 = vld [vmem:[%s10616_s19 + $0x30] sm:$0x7] }
  0xb2   : > { %v11205_v18 = vcombine.low %v3028_v50, %v10965_v47  ;;  %v2866_v60 = vrot.slane %v2864_v22, 1  ;;  %v11218_v47 = vld [vmem:[%s10604_s10 + $0x1c] sm:$0xff]  }
  0xb4   : > { %9614 = vmatmul.mubr.msk.bf16.gmra.mxu0 %vm439_vm1, %v2345_v31  ;;  %v2699_v31 = vshrl.u32 %v11137_v24, 16  ;;  %v3035_v4 = vrot.slane %v11205_v18, 2 }
  0xb5   : > { %9633 = vmatprep.mubr.msk.bf16.mxu0 %vm439_vm1, %v2670_v21  ;;  %v2867_v21 = vshll.u32 %v8720_v1, 16 }
  0xb6   : > { %v2701_v51 = vrot.slane %v2699_v31, 1 }
  0xb7   : > { %v2869_v31 = vrot.slane %v2867_v21, 2  ;;  %v3039_v21 = vsel %vm3034_vm6, %v3036_v30, %v3038_v2 }
  0xb8   : > { %9600 = vmatmul.mubr.msk.bf16.gmra.mxu1 %vm439_vm1, %v2216_v54  ;;  %v2695_v54 = vrot.slane %v2693_v23, 2  ;;  %v2705_v19 = vor.u32 %v2704_v57, %v2701_v51  ;;  %v2886_v57 = vrot.slane %v2884_v45, 2 }
  0xb9   : > { %9619 = vmatprep.mubr.msk.bf16.mxu1 %vm439_vm1, %v2476_v46  ;;  %v2488_v46 = vsel %vm1343_vm4, %v2483_v43, %v2487_v14  ;;  %v2881_v43 = vshrl.u32 %v11211_v36, 16  ;;  %v2870_v41 = vor.u32 %v2869_v31, %v2866_v60 }
  0xba   : > { %v2696_v44 = vor.u32 %v2695_v54, %v2692_v25  ;;  %v2890_v25 = vshrl.u32 %v11218_v47, 16  ;;  %v2893_v54 = vshll.u32 %v11218_v47, 16 }
  0xbb   : > { %v2883_v51 = vrot.slane %v2881_v43, 1 }
  0xbc   : > { %9634 = vmatmul.mubr.msk.bf16.vlgmr.msra.gmra.mxu0 %vm439_vm1, %v2679_v34  ;;  %v2697_v20 = vsel %vm1343_vm4, %v2687_v9, %v2696_v44  ;;  %v2706_v3 = vsel %vm1343_vm4, %v2696_v44, %v2705_v19  ;;  %v2877_v9 = vrot.slane %v2875_v16, 2  ;;  %v2892_v52 = vrot.slane %v2890_v25, 1 }
  0xbd   : > { %9660 = vmatpush3.bf16.msra.mxu0 %v3065_v28  ;;  %9637 = vmatprep.mubr.msk.bf16.mxu0 %vm439_vm1, %v2688_v35  ;;  %v2830_v28 = vld [vmem:[%s10604_s10 + $0x30] sm:$0x3]  ;;  %v3037_v35 = vsel %vm3034_vm6, %v3035_v4, %v3036_v30  ;;  %v2895_v40 = vrot.slane %v2893_v54, 2  ;;  %v2887_v1 = vor.u32 %v2886_v57, %v2883_v51  ;;  %v3042_v4 = vrot.slane %v11013_v56, 2  ;;  %v3158_v57 = vld [vmem:[%s10604_s10 + $0x4] sm:$0xc] }
  0xbe   : > { %10142 = vmatprep.subr.msk.bf16.mxu0 %vm458_vm0, %v11182_v26  ;;  %v2878_v34 = vor.u32 %v2877_v9, %v2874_v15  ;;  %v3044_v30 = vrot.slane %v11137_v24, 2 }
  0xbf   : > { %v2896_v14 = vor.u32 %v2895_v40, %v2892_v52  ;;  %v3043_v24 = vsel %vm3034_vm6, %v3040_v33, %v3042_v4  ;;  %v3303_v40 = vrot.slane %v2666_v13, 3 }
  0xc0   : > { %9620 = vmatmul.mubr.msk.bf16.vlgmr.msra.gmra.mxu1 %vm439_vm1, %v2480_v62  ;;  %v11239_v62 = vld [vmem:[%s10604_s10 + $0x24] sm:$0xff]   ;;  %v3045_v51 = vsel %vm3034_vm6, %v3042_v4, %v3044_v30 }
  0xc1   : > { %9646 = vmatpush3.bf16.msra.mxu1 %v2935_v53  ;;  %9623 = vmatprep.mubr.msk.bf16.mxu1 %vm439_vm1, %v2484_v0  ;;  %v2879_v53 = vsel %vm1343_vm4, %v2870_v41, %v2878_v34  ;;  %v11248_v0 = vcombine.low %v11230_v42, %v2830_v28  ;;  %v2899_v44 = vshrl.u32 %v11239_v62, 16  ;;  %v2897_v60 = vsel %vm1343_vm4, %v2887_v1, %v2896_v14  ;;  %v11283_v41 = vld [vmem:[%s13482_s4 + $0x4c] sm:$0xf] }
  0xc2   : > { %10141 = vmatprep.subr.msk.bf16.mxu1 %vm458_vm0, %v11191_v5 }
  0xc3   : > { %v2908_v50 = vshrl.u32 %v11248_v0, 16  ;;  %v2911_v22 = vshll.u32 %v11248_v0, 16 }
  0xc4   : > { %9638 = vmatmul.mubr.msk.bf16.gmra.mxu0 %vm439_vm1, %v2697_v20  ;;  %v3346_v20 = vsel %vm458_vm0, %v11182_v26, 0  ;;  %v3194_v26 = vsel %vm458_vm0, %v11191_v5, 0  ;;  %v3295_v5 = vshrl.u32 %v11205_v18, 16 }
  0xc5   : > { %9641 = vmatprep.mubr.msk.bf16.mxu0 %vm439_vm1, %v2706_v3  ;;  %v2888_v3 = vsel %vm1343_vm4, %v2878_v34, %v2887_v1  ;;  %v2910_v31 = vrot.slane %v2908_v50, 1  ;;  %v2913_v9 = vrot.slane %v2911_v22, 2  ;;  %v3298_v34 = vshll.u32 %v11205_v18, 16 }
  0xc6   : > { %v3302_v18 = vrot.slane %v2663_v29, 2 }
  0xc7   : > { %v3300_v52 = vrot.slane %v3298_v34, 3  ;;  %v3169_v34 = vrot.slane %v11218_v47, 2 }
  0xc8   : > { %9624 = vmatmul.mubr.msk.bf16.gmra.mxu1 %vm439_vm1, %v2488_v46  ;;  %v2901_v46 = vrot.slane %v2899_v44, 1  ;;  %v3304_v29 = vor.u32 %v3303_v40, %v3302_v18 }
  0xc9   : > { %9627 = vmatprep.mubr.msk.bf16.mxu1 %vm439_vm1, %v2497_v37  ;;  %v11271_v37 = vld [vmem:[%s13482_s4 + $0x50] sm:$0xf] }
  0xcc   : > { %9642 = vmatmul.mubr.msk.bf16.gmra.mxu0 %vm439_vm1, %v2705_v19  ;;  %v2902_v19 = vshll.u32 %v11239_v62, 16 }
  0xcd   : > { %9661 = vmatprep.mubr.msk.bf16.mxu0 %vm439_vm1, %v3037_v35  ;;  %v2914_v35 = vor.u32 %v2913_v9, %v2910_v31  ;;  %v11328_v31 = vcombine.low %v11123_v38, %v3287_v48  ;;  %v3167_v38 = vrot.slane %v11211_v36, 2 }
  0xce   : > { %v2904_v15 = vrot.slane %v2902_v19, 2 }
  0xcf   : > { %v3319_v10 = vshrl.u32 %v11328_v31, 16 }
  0xd0   : > { %9628 = vmatmul.mubr.msk.bf16.gmra.mxu1 %vm439_vm1, %v2496_v8  ;;  %v3041_v8 = vsel %vm3034_vm6, %v3038_v2, %v3040_v33  ;;  %v2905_v28 = vor.u32 %v2904_v15, %v2901_v46  ;;  %v11304_v33 = vcombine.low %v3158_v57, %v11164_v49  ;;  %v3165_v49 = vrot.slane %v11177_v59, 2 }
  0xd1   : > { %9647 = vmatprep.mubr.msk.bf16.mxu1 %vm439_vm1, %v2879_v53  ;;  %v3297_v53 = vrot.slane %v3295_v5, 2  ;;  %v3627_v57 = vsel %vm458_vm0, %v11271_v37, 0 }
  0xd2   : > { %v2906_v2 = vsel %vm1343_vm4, %v2896_v14, %v2905_v28  ;;  %v2915_v1 = vsel %vm1343_vm4, %v2905_v28, %v2914_v35  ;;  %v3168_v40 = vsel %vm3034_vm6, %v3165_v49, %v3167_v38 }
  0xd3   : > { %v3301_v22 = vor.u32 %v3300_v52, %v3297_v53  ;;  %v3321_v52 = vrot.slane %v3319_v10, 2 }
  0xd4   : > { %9662 = vmatmul.mubr.msk.bf16.vlgmr.msra.gmra.mxu0 %vm439_vm1, %v3039_v21  ;;  %v3164_v21 = vrot.slane %v11304_v33, 2 }
  0xd5   : > { %9688 = vmatpush3.bf16.msra.mxu0 %v3346_v20  ;;  %9665 = vmatprep.mubr.msk.bf16.mxu0 %vm439_vm1, %v3041_v8  ;;  %v3306_v20 = vrot.slane %v2672_v61, 2  ;;  %v3307_v8 = vrot.slane %v2675_v63, 3  ;;  %v3305_v15 = vsel %vm3293_vm7, %v3301_v22, %v3304_v29 }
  0xd6   : > { %10144 = vmatprep.subr.msk.bf16.mxu0 %vm458_vm0, %v11271_v37  ;;  %v3166_v63 = vsel %vm3034_vm6, %v3164_v21, %v3165_v49  ;;  %v3170_v37 = vsel %vm3034_vm6, %v3167_v38, %v3169_v34 }
  0xd7   : > { %v3308_v9 = vor.u32 %v3307_v8, %v3306_v20  ;;  %v3171_v20 = vrot.slane %v11239_v62, 2  ;;  %v3173_v8 = vrot.slane %v11248_v0, 2 }
  0xd8   : > { %9648 = vmatmul.mubr.msk.bf16.vlgmr.msra.gmra.mxu1 %vm439_vm1, %v2888_v3 }
  0xd9   : > { %9674 = vmatpush3.bf16.msra.mxu1 %v3194_v26  ;;  %9651 = vmatprep.mubr.msk.bf16.mxu1 %vm439_vm1, %v2897_v60  ;;  %v3310_v26 = vrot.slane %v2681_v58, 2  ;;  %v3311_v60 = vrot.slane %v2684_v6, 3  ;;  %v3322_v6 = vshll.u32 %v11328_v31, 16  ;;  %v3309_v28 = vsel %vm3293_vm7, %v3304_v29, %v3308_v9  ;;  %v11369_v29 = vld [vmem:[%s13482_s4 + $0x54] sm:$0xf] }
  0xda   : > { %10143 = vmatprep.subr.msk.bf16.mxu1 %vm458_vm0, %v11283_v41  ;;  %v3172_v0 = vsel %vm3034_vm6, %v3169_v34, %v3171_v20 }
  0xdb   : > { %v3312_v58 = vor.u32 %v3311_v60, %v3310_v26  ;;  %v3324_v18 = vrot.slane %v3322_v6, 3  ;;  %v3446_v60 = vshrl.u32 %v11304_v33, 16 }
  0xdc   : > { %9666 = vmatmul.mubr.msk.bf16.gmra.mxu0 %vm439_vm1, %v3043_v24  ;;  %v3314_v24 = vrot.slane %v2690_v17, 2 }
  0xdd   : > { %9669 = vmatprep.mubr.msk.bf16.mxu0 %vm439_vm1, %v3045_v51  ;;  %v3313_v53 = vsel %vm3293_vm7, %v3308_v9, %v3312_v58  ;;  %v3325_v49 = vor.u32 %v3324_v18, %v3321_v52  ;;  %v3454_v52 = vrot.slane %v2875_v16, 3 }
  0xe0   : > { %v11307_v50 = vpop.f32.mrf.mxu1  ;;  %9652 = vmatmul.mubr.msk.bf16.gmra.mxu1 %vm439_vm1, %v2906_v2  ;;  %v9439_v14 = vpop.f32.mrf.mxu0  ;;  %v11357_v2 = vld [vmem:[%s13482_s4 + $0x58] sm:$0xf] }
  0xe1   : > { %9655 = vmatprep.mubr.msk.bf16.mxu1 %vm439_vm1, %v2915_v1 }
  0xe2   : > { %v11312_v13 = vpop.f32.mrf.mxu1  ;;  %v496_v46 = vpop.f32.mrf.mxu0 }
  0xe4   : > { %v11320_v3 = vpop.f32.mrf.mxu1  ;;  %9670 = vmatmul.mubr.msk.bf16.gmra.mxu0 %vm439_vm1, %v3044_v30  ;;  %v9440_v55 = vpop.f32.mrf.mxu0 }
  0xe5   : > { %9689 = vmatprep.mubr.msk.bf16.mxu0 %vm439_vm1, %v3305_v15 }
  0xe6   : > { %v11331_v61 = vpop.f32.mrf.mxu1  ;;  %v499_v30 = vpop.f32.mrf.mxu0 }
  0xe8   : > { %v11335_v4 = vpop.f32.mrf.mxu1  ;;  %9656 = vmatmul.mubr.msk.bf16.gmra.mxu1 %vm439_vm1, %v2914_v35  ;;  %v3315_v35 = vrot.slane %v2693_v23, 3  ;;  %v3497_v23 = vsel %vm458_vm0, %v11283_v41, 0 }
  0xe9   : > { %9675 = vmatprep.mubr.msk.bf16.mxu1 %vm439_vm1, %v3166_v63  ;;  %v3449_v63 = vshll.u32 %v11304_v33, 16 }
  0xea   : > { %v11342_v5 = vpop.f32.mrf.mxu1  ;;  %v3316_v22 = vor.u32 %v3315_v35, %v3314_v24  ;;  %v3174_v35 = vsel %vm3034_vm6, %v3171_v20, %v3173_v8 }
  0xec   : > { %v9448_v51 = vpop.f32.mrf.mxu1  ;;  %v9467_v1 = vpop.f32.mrf.mxu0  ;;  %9690 = vmatmul.mubr.msk.bf16.vlgmr.msra.gmra.mxu0 %vm439_vm1, %v3309_v28  ;;  %v3317_v10 = vsel %vm3293_vm7, %v3312_v58, %v3316_v22  ;;  %v3326_v28 = vsel %vm3293_vm7, %v3316_v22, %v3325_v49  ;;  %v3451_v58 = vrot.slane %v3449_v63, 3 }
  0xed   : > { %9716 = vmatpush3.bf16.msra.mxu0 %v3627_v57  ;;  %9693 = vmatprep.mubr.msk.bf16.mxu0 %vm439_vm1, %v3313_v53  ;;  %v3448_v57 = vrot.slane %v3446_v60, 2  ;;  %v3453_v53 = vrot.slane %v2872_v7, 2 }
  0xee   : > { %v11360_v17 = vpop.f32.mrf.mxu1  ;;  %v818_v48 = vpop.f32.mrf.mxu0  ;;  %10146 = vmatprep.subr.msk.bf16.mxu0 %vm458_vm0, %v11357_v2 }
  0xef   : > { %v3452_v59 = vor.u32 %v3451_v58, %v3448_v57  ;;  %v3455_v16 = vor.u32 %v3454_v52, %v3453_v53  ;;  %v11445_v57 = vld [vmem:[%s10751_s22 + $0x8] sm:$0xf]  ;;  %v3465_v52 = vrot.slane %v2899_v44, 2  ;;  %v3836_v44 = vsel %vm458_vm0, %v11369_v29, 0 }
  0xf0   : > { %v9453_v21 = vpop.f32.mrf.mxu1  ;;  %9676 = vmatmul.mubr.msk.bf16.vlgmr.msra.gmra.mxu1 %vm439_vm1, %v3168_v40  ;;  %v9468_v15 = vpop.f32.mrf.mxu0 }
  0xf1   : > { %v634_v41 = vadd.f32 %v9453_v21, %v9439_v14  ;;  %9702 = vmatpush3.bf16.msra.mxu1 %v3497_v23  ;;  %9679 = vmatprep.mubr.msk.bf16.mxu1 %vm439_vm1, %v3170_v37  ;;  %v3439_v37 = vld [vmem:[%s10604_s10 + $0x30] sm:$0x7] }
  0xf2   : > { %v625_v26 = vpop.f32.mrf.mxu1  ;;  %10145 = vmatprep.subr.msk.bf16.mxu1 %vm458_vm0, %v11369_v29  ;;  %v821_v6 = vpop.f32.mrf.mxu0  ;;  %v8757_v20 = vcombine.low %v11230_v42, %v3439_v37  ;;  %v3461_v42 = vrot.slane %v2890_v25, 2  ;;  %v3929_v25 = vld [vmem:[%s10741_s18 + $0x4] sm:$0xe] }
  0xf3   : > { %v626_v9 = vadd.f32 %v625_v26, %v496_v46  ;;  %v11382_v14 = vadd.f32 %v9467_v1, %v634_v41  ;;  %v3458_v26 = vrot.slane %v2884_v45, 3 }
  0xf4   : > { %v9454_v38 = vpop.f32.mrf.mxu1  ;;  %v9471_v33 = vpop.f32.mrf.mxu0  ;;  %9694 = vmatmul.mubr.msk.bf16.gmra.mxu0 %vm439_vm1, %v3317_v10 }
  0xf5   : > { %v637_v24 = vadd.f32 %v9454_v38, %v9440_v55  ;;  %v11387_v51 = vadd.f32 %v818_v48, %v626_v9  ;;  %9697 = vmatprep.mubr.msk.bf16.mxu0 %vm439_vm1, %v3326_v28  ;;  %v3456_v9 = vsel %vm3293_vm7, %v3452_v59, %v3455_v16  ;;  %v11428_v38 = vld [vmem:[%s10741_s18 + $0x8] sm:$0xf] }
  0xf6   : > { %v628_v46 = vpop.f32.mrf.mxu1  ;;  %v834_v18 = vpop.f32.mrf.mxu0 }
  0xf7   : > { %v629_v55 = vadd.f32 %v628_v46, %v499_v30  ;;  %v11395_v34 = vadd.f32 %v9468_v15, %v637_v24  ;;  %v8786_v46 = vcombine.low %v3929_v25, %v11428_v38 }
  0xf8   : > { %v9457_v40 = vpop.f32.mrf.mxu1  ;;  %9680 = vmatmul.mubr.msk.bf16.gmra.mxu1 %vm439_vm1, %v3172_v0  ;;  %v9472_v7 = vpop.f32.mrf.mxu0 }
  0xf9   : > { %v650_v1 = vadd.f32 %v9457_v40, %v11307_v50  ;;  %9683 = vmatprep.mubr.msk.bf16.mxu1 %vm439_vm1, %v3174_v35  ;;  %v11400_v23 = vadd.f32 %v821_v6, %v629_v55  ;;  %v3457_v50 = vrot.slane %v2881_v43, 2  ;;  %v3462_v43 = vrot.slane %v2893_v54, 3 }
  0xfa   : > { %v641_v22 = vpop.f32.mrf.mxu1  ;;  %v837_v21 = vpop.f32.mrf.mxu0  ;;  %v3473_v6 = vshll.u32 %v8757_v20, 16  ;;  %v4045_v35 = vsel %vm458_vm0, %v11357_v2, 0  ;;  %v3466_v55 = vrot.slane %v2902_v19, 3 }
  0xfb   : > { %v642_v30 = vadd.f32 %v641_v22, %v11312_v13  ;;  %v11404_v48 = vadd.f32 %v9471_v33, %v650_v1  ;;  %v3459_v54 = vor.u32 %v3458_v26, %v3457_v50  ;;  %v3463_v0 = vor.u32 %v3462_v43, %v3461_v42 }
  0xfc   : > { %v9458_v41 = vpop.f32.mrf.mxu1  ;;  %v9475_v63 = vpop.f32.mrf.mxu0  ;;  %9698 = vmatmul.mubr.msk.bf16.gmra.mxu0 %vm439_vm1, %v3325_v49  ;;  %v3470_v49 = vshrl.u32 %v8757_v20, 16  ;;  %v3606_v50 = vrot.slane %v11328_v31, 3 }
  0xfd   : > { %v653_v15 = vadd.f32 %v9458_v41, %v11320_v3  ;;  %v11412_v60 = vadd.f32 %v834_v18, %v642_v30  ;;  %9717 = vmatprep.mubr.msk.bf16.mxu0 %vm439_vm1, %v11003_v11  ;;  %v11435_v11 = vld [vmem:[%s10741_s18 + $0xc] sm:$0xff]   ;;  %v3475_v18 = vrot.slane %v3473_v6, 3  ;;  %v3460_v2 = vsel %vm3293_vm7, %v3455_v16, %v3459_v54 }
  0xfe   : > { %v644_v13 = vpop.f32.mrf.mxu1  ;;  %v850_v3 = vpop.f32.mrf.mxu0  ;;  %v3982_v1 = vshrl.u32 %v11435_v11, 16  ;;  %v3985_v37 = vshll.u32 %v11435_v11, 16  ;;  %v3464_v19 = vsel %vm3293_vm7, %v3459_v54, %v3463_v0  ;;  %v11468_v16 = vld [vmem:[%s10751_s22 + $0xc] sm:$0xff]   ;;  %v3977_v41 = vshll.u32 %v8786_v46, 16  ;;  %v11503_v54 = vld [vmem:[%s10751_s22 + $0x14] sm:$0xff]  }
  0xff   : > { %v645_v36 = vadd.f32 %v644_v13, %v11331_v61  ;;  %v11423_v45 = vadd.f32 %v9472_v7, %v653_v15  ;;  %v11459_v7 = vld [vmem:[%s13482_s4 + $0x60] sm:$0xf]  ;;  %v3467_v15 = vor.u32 %v3466_v55, %v3465_v52 }
 0x100   : > { %v9461_v10 = vpop.f32.mrf.mxu1  ;;  %9684 = vmatmul.mubr.msk.bf16.gmra.mxu1 %vm439_vm1, %v3173_v8  ;;  %v9476_v28 = vpop.f32.mrf.mxu0  ;;  %v3987_v13 = vrot.slane %v3985_v37, 2  ;;  %v3979_v25 = vrot.slane %v3977_v41, 2 }
 0x101   : > { %v666_v47 = vadd.f32 %v9461_v10, %v11335_v4  ;;  %9703 = vmatprep.mubr.msk.bf16.mxu1 %vm439_vm1, %v3456_v9  ;;  %v11432_v61 = vadd.f32 %v837_v21, %v645_v36  ;;  %v3720_v4 = vld [vmem:[%s10751_s22 + $0x4] sm:$0xe]  ;;  %v3974_v21 = vshrl.u32 %v8786_v46, 16  ;;  %v3773_v10 = vshrl.u32 %v11468_v16, 16 }
 0x102   : > { %v657_v24 = vpop.f32.mrf.mxu1  ;;  %v853_v58 = vpop.f32.mrf.mxu0  ;;  %v8773_v59 = vcombine.low %v3720_v4, %v11445_v57  ;;  %v11514_v4 = vld [vmem:[%s10741_s18 + $0x1c] sm:$0xff]  }
 0x103   : > { %v658_v8 = vadd.f32 %v657_v24, %v11342_v5  ;;  %v11440_v33 = vadd.f32 %v9475_v63, %v666_v47  ;;  %v3472_v5 = vrot.slane %v3470_v49, 2  ;;  %v3984_v63 = vrot.slane %v3982_v1, 1 }
 0x104   : > { %v9462_v53 = vpop.f32.mrf.mxu1  ;;  %v9495_v22 = vpop.f32.mrf.mxu0  ;;  %9718 = vmatmul.mubr.msk.bf16.vlgmr.msra.gmra.mxu0 %vm439_vm1, %v11006_v12  ;;  %v11476_v12 = vld [vmem:[%s13482_s4 + $0x5c] sm:$0xf]  ;;  %v3765_v36 = vshrl.u32 %v8773_v59, 16  ;;  %v3976_v6 = vrot.slane %v3974_v21, 1  ;;  %v4000_v21 = vshrl.u32 %v11514_v4, 16  ;;  %v4003_v41 = vshll.u32 %v11514_v4, 16 }
 0x105   : > { %v11452_v40 = vadd.f32 %v850_v3, %v658_v8  ;;  %9744 = vmatpush3.bf16.msra.mxu0 %v4045_v35  ;;  %9721 = vmatprep.mubr.msk.bf16.mxu0 %vm439_vm1, %v11030_v32  ;;  %v11480_v26 = vor.u32 %v3475_v18, %v3472_v5  ;;  %v3768_v3 = vshll.u32 %v8773_v59, 16  ;;  %v3468_v8 = vsel %vm3293_vm7, %v3463_v0, %v3467_v15 }
 0x106   : > { %v660_v62 = vpop.f32.mrf.mxu1  ;;  %v1151_v29 = vpop.f32.mrf.mxu0  ;;  %10148 = vmatprep.subr.msk.bf16.mxu0 %vm458_vm0, %v11459_v7  ;;  %v3607_v35 = vsel %vm3596_vm5, %v3604_v27, %v3606_v50  ;;  %v11519_v52 = vor.u32 %v3987_v13, %v3984_v63  ;;  %v3767_v27 = vrot.slane %v3765_v36, 1  ;;  %v3775_v18 = vrot.slane %v3773_v10, 1  ;;  %v3940_v63 = vld [vmem:[%s10741_s18 + $0x30] sm:$0x3] }
 0x107   : > { %v661_v30 = vadd.f32 %v660_v62, %v11360_v17  ;;  %v11483_v17 = vld [vmem:[%s10741_s18 + $0x14] sm:$0xff]   ;;  %v3477_v53 = vsel %vm3293_vm7, %v3467_v15, %v11480_v26  ;;  %v3770_v5 = vrot.slane %v3768_v3, 2  ;;  %v3980_v62 = vor.u32 %v3979_v25, %v3976_v6 }
 0x108   : > { %v9481_v20 = vpop.f32.mrf.mxu1  ;;  %9704 = vmatmul.mubr.msk.bf16.vlgmr.msra.gmra.mxu1 %vm439_vm1, %v3460_v2  ;;  %v9496_v42 = vpop.f32.mrf.mxu0  ;;  %v3991_v46 = vshrl.u32 %v11483_v17, 16  ;;  %v11530_v2 = vld [vmem:[%s10751_s22 + $0x1c] sm:$0xff]  }
 0x109   : > { %v1069_v32 = vadd.f32 %v9481_v20, %v11382_v14  ;;  %9730 = vmatpush3.bf16.msra.mxu1 %v3836_v44  ;;  %9707 = vmatprep.mubr.msk.bf16.mxu1 %vm439_vm1, %v3464_v19  ;;  %v11493_v9 = vadd.f32 %v853_v58, %v661_v30  ;;  %v3776_v14 = vshll.u32 %v11468_v16, 16  ;;  %v13489_v30 = vshll.u32 %v11503_v54, 16 }
 0x10a   : > { %v1021_v43 = vpop.f32.mrf.mxu1  ;;  %10147 = vmatprep.subr.msk.bf16.mxu1 %vm458_vm0, %v11476_v12  ;;  %v1154_v28 = vpop.f32.mrf.mxu0  ;;  %v13488_v36 = vshrl.u32 %v11530_v2, 16  ;;  %v13487_v3 = vshll.u32 %v11530_v2, 16  ;;  %v3989_v6 = vsel %vm1343_vm4, %v3980_v62, %v11519_v52 }
 0x10b   : > { %v1067_v49 = vadd.f32 %v1021_v43, %v11387_v51  ;;  %v11500_v47 = vadd.f32 %v9495_v22, %v1069_v32  ;;  %v3994_v51 = vshll.u32 %v11483_v17, 16  ;;  %v11550_v32 = vld [vmem:[%s10741_s18 + $0x2c] sm:$0xf]  ;;  %v3771_v43 = vor.u32 %v3770_v5, %v3767_v27 }
 0x10c   : > { %v9482_v24 = vpop.f32.mrf.mxu1  ;;  %v9499_v55 = vpop.f32.mrf.mxu0  ;;  %9722 = vmatmul.mubr.msk.bf16.gmra.mxu0 %vm439_vm1, %v11040_v39  ;;  %v3782_v39 = vshrl.u32 %v11503_v54, 16  ;;  %v4005_v27 = vrot.slane %v4003_v41, 2  ;;  %v11576_v5 = vcombine.low %v11550_v32, %v3940_v63  ;;  %v3796_v63 = vrot.slane %v13487_v3, 2 }
 0x10d   : > { %v1070_v58 = vadd.f32 %v9482_v24, %v11395_v34  ;;  %v11521_v0 = vadd.f32 %v1151_v29, %v1067_v49  ;;  %v3778_v34 = vrot.slane %v3776_v14, 2  ;;  %9725 = vmatprep.mubr.msk.bf16.mxu0 %vm439_vm1, %v3607_v35  ;;  %v3993_v29 = vrot.slane %v3991_v46, 1  ;;  %v3731_v35 = vld [vmem:[%s10751_s22 + $0x30] sm:$0x3] }
 0x10e   : > { %v1024_v56 = vpop.f32.mrf.mxu1  ;;  %v1167_v19 = vpop.f32.mrf.mxu0  ;;  %v3996_v20 = vrot.slane %v3994_v51, 2  ;;  %v3784_v25 = vrot.slane %v3782_v39, 1  ;;  %v4021_v3 = vshll.u32 %v11576_v5, 16 }
 0x10f   : > { %v1068_v22 = vadd.f32 %v1024_v56, %v11400_v23  ;;  %v11535_v44 = vadd.f32 %v9496_v42, %v1070_v58  ;;  %v3787_v56 = vrot.slane %v13489_v30, 2 }
 0x110   : > { %v9485_v59 = vpop.f32.mrf.mxu1  ;;  %9708 = vmatmul.mubr.msk.bf16.gmra.mxu1 %vm439_vm1, %v3468_v8  ;;  %v9500_v13 = vpop.f32.mrf.mxu0  ;;  %v11566_v8 = vld [vmem:[%s10751_s22 + $0x2c] sm:$0xf] }
 0x111   : > { %v1073_v23 = vadd.f32 %v9485_v59, %v11404_v48  ;;  %9711 = vmatprep.mubr.msk.bf16.mxu1 %vm439_vm1, %v3477_v53  ;;  %v11547_v15 = vadd.f32 %v1154_v28, %v1068_v22  ;;  %v3779_v48 = vor.u32 %v3778_v34, %v3775_v18  ;;  %v11561_v28 = vld [vmem:[%s10741_s18 + $0x24] sm:$0xff]   ;;  %v3997_v18 = vor.u32 %v3996_v20, %v3993_v29 }
 0x112   : > { %v1037_v42 = vpop.f32.mrf.mxu1  ;;  %v1170_v58 = vpop.f32.mrf.mxu0  ;;  %v11580_v34 = vld [vmem:[%s10751_s22 + $0x24] sm:$0xff]   ;;  %v4009_v31 = vshrl.u32 %v11561_v28, 16 }
 0x113   : > { %v1071_v49 = vadd.f32 %v1037_v42, %v11412_v60  ;;  %v11563_v24 = vadd.f32 %v9499_v55, %v1073_v23  ;;  %v4002_v60 = vrot.slane %v4000_v21, 1  ;;  %v3780_v23 = vsel %vm1343_vm4, %v3771_v43, %v3779_v48 }
 0x114   : > { %v9486_v53 = vpop.f32.mrf.mxu1  ;;  %v9503_v62 = vpop.f32.mrf.mxu0  ;;  %9726 = vmatmul.mubr.msk.bf16.gmra.mxu0 %vm439_vm1, %v3606_v50  ;;  %v3793_v42 = vrot.slane %v13488_v36, 1  ;;  %v13490_v50 = vshll.u32 %v11561_v28, 16 }
 0x115   : > { %v1074_v55 = vadd.f32 %v9486_v53, %v11423_v45  ;;  %v11582_v22 = vadd.f32 %v1167_v19, %v1071_v49  ;;  %v11593_v45 = vcombine.low %v11566_v8, %v3731_v35  ;;  %9745 = vmatprep.mubr.msk.bf16.mxu0 %vm439_vm1, %v3989_v6  ;;  %v3788_v49 = vor.u32 %v3787_v56, %v3784_v25 }
 0x116   : > { %v1040_v59 = vpop.f32.mrf.mxu1  ;;  %v1183_v20 = vpop.f32.mrf.mxu0  ;;  %v4006_v53 = vor.u32 %v4005_v27, %v4002_v60  ;;  %v4018_v35 = vshrl.u32 %v11576_v5, 16  ;;  %v3800_v6 = vshrl.u32 %v11580_v34, 16  ;;  %v3797_v25 = vor.u32 %v3796_v63, %v3793_v42 }
 0x117   : > { %v1072_v19 = vadd.f32 %v1040_v59, %v11432_v61  ;;  %v11599_v29 = vadd.f32 %v9500_v13, %v1074_v55  ;;  %v13491_v13 = vshll.u32 %v11580_v34, 16  ;;  %v3809_v56 = vshrl.u32 %v11593_v45, 16 }
 0x118   : > { %v9489_v43 = vpop.f32.mrf.mxu1  ;;  %9712 = vmatmul.mubr.msk.bf16.gmra.mxu1 %vm439_vm1, %v11480_v26  ;;  %v9504_v59 = vpop.f32.mrf.mxu0  ;;  %v3998_v26 = vsel %vm1343_vm4, %v11519_v52, %v3997_v18  ;;  %v3812_v60 = vshll.u32 %v11593_v45, 16  ;;  %v4011_v27 = vrot.slane %v4009_v31, 1  ;;  %v4303_v52 = vsel %vm458_vm0, %v11459_v7, 0 }
 0x119   : > { %v1077_v61 = vadd.f32 %v9489_v43, %v11440_v33  ;;  %9731 = vmatprep.mubr.msk.bf16.mxu1 %vm439_vm1, %v3780_v23  ;;  %v11609_v55 = vadd.f32 %v1170_v58, %v1072_v19  ;;  %v4014_v23 = vrot.slane %v13490_v50, 2  ;;  %v4007_v42 = vsel %vm1343_vm4, %v3997_v18, %v4006_v53 }
 0x11a   : > { %v1053_v36 = vpop.f32.mrf.mxu1  ;;  %v1186_v19 = vpop.f32.mrf.mxu0  ;;  %v4020_v63 = vrot.slane %v4018_v35, 1  ;;  %v4023_v59 = vrot.slane %v4021_v3, 2  ;;  %v3789_v30 = vsel %vm1343_vm4, %v3779_v48, %v3788_v49  ;;  %v4174_v48 = vsel %vm458_vm0, %v11476_v12, 0 }
 0x11b   : > { %v1075_v33 = vadd.f32 %v1053_v36, %v11452_v40  ;;  %v11620_v58 = vadd.f32 %v9503_v62, %v1077_v61  ;;  %v3802_v40 = vrot.slane %v3800_v6, 1  ;;  %v3805_v36 = vrot.slane %v13491_v13, 2  ;;  %v11635_v62 = vld [vmem:[%s13482_s4 + $0x68] sm:$0xf] }
 0x11c   : > { %v9490_v43 = vpop.f32.mrf.mxu1  ;;  %v9523_v7 = vpop.f32.mrf.mxu0  ;;  %9746 = vmatmul.mubr.msk.bf16.vlgmr.msra.gmra.mxu0 %vm439_vm1, %v3998_v26  ;;  %v3798_v3 = vsel %vm1343_vm4, %v3788_v49, %v3797_v25  ;;  %v3811_v35 = vrot.slane %v3809_v56, 1  ;;  %v3814_v61 = vrot.slane %v3812_v60, 2  ;;  %v4024_v12 = vor.u32 %v4023_v59, %v4020_v63  ;;  %v4267_v56 = vld [vmem:[%s10741_s18 + $0x4] sm:$0xc] }
 0x11d   : > { %v11630_v50 = vadd.f32 %v1183_v20, %v1075_v33  ;;  %9772 = vmatpush3.bf16.msra.mxu0 %v4303_v52  ;;  %9749 = vmatprep.mubr.msk.bf16.mxu0 %vm439_vm1, %v4007_v42  ;;  %v4015_v33 = vor.u32 %v4014_v23, %v4011_v27  ;;  %v11646_v43 = vld [vmem:[%s13482_s4 + $0x64] sm:$0xf]  ;;  %v3806_v49 = vor.u32 %v3805_v36, %v3802_v40 }
 0x11e   : > { %v1056_v18 = vpop.f32.mrf.mxu1  ;;  %v1432_v26 = vpop.f32.mrf.mxu0  ;;  %10150 = vmatprep.subr.msk.bf16.mxu0 %vm458_vm0, %v11635_v62  ;;  %v3815_v52 = vor.u32 %v3814_v61, %v3811_v35  ;;  %v4138_v63 = vld [vmem:[%s10751_s22 + $0x4] sm:$0xc] }
 0x11f   : > { %v1076_v20 = vadd.f32 %v1056_v18, %v11493_v9  ;;  %v4016_v42 = vsel %vm1343_vm4, %v4006_v53, %v4015_v33  ;;  %v4025_v40 = vsel %vm1343_vm4, %v4015_v33, %v4024_v12  ;;  %v3807_v18 = vsel %vm1343_vm4, %v3797_v25, %v3806_v49 }
 0x120   : > { %v9509_v13 = vpop.f32.mrf.mxu1  ;;  %9732 = vmatmul.mubr.msk.bf16.vlgmr.msra.gmra.mxu1 %vm439_vm1, %v3789_v30  ;;  %v9524_v27 = vpop.f32.mrf.mxu0  ;;  %v3816_v53 = vsel %vm1343_vm4, %v3806_v49, %v3815_v52 }
 0x121   : > { %v1328_v9 = vadd.f32 %v9509_v13, %v11500_v47  ;;  %9758 = vmatpush3.bf16.msra.mxu1 %v4174_v48  ;;  %9735 = vmatprep.mubr.msk.bf16.mxu1 %vm439_vm1, %v3798_v3  ;;  %v11654_v60 = vadd.f32 %v1186_v19, %v1076_v20  ;;  %v11665_v19 = vcombine.low %v4267_v56, %v11428_v38  ;;  %v4274_v20 = vrot.slane %v11435_v11, 2 }
 0x122   : > { %v1280_v23 = vpop.f32.mrf.mxu1  ;;  %10149 = vmatprep.subr.msk.bf16.mxu1 %vm458_vm0, %v11646_v43  ;;  %v1435_v47 = vpop.f32.mrf.mxu0  ;;  %v4145_v56 = vrot.slane %v11468_v16, 2  ;;  %v4410_v11 = vrot.slane %v3773_v10, 2 }
 0x123   : > { %v1326_v30 = vadd.f32 %v1280_v23, %v11521_v0  ;;  %v11661_v59 = vadd.f32 %v9523_v7, %v1328_v9  ;;  %v11674_v7 = vcombine.low %v4138_v63, %v11445_v57  ;;  %v4273_v25 = vrot.slane %v11665_v19, 2 }
 0x124   : > { %v9510_v13 = vpop.f32.mrf.mxu1  ;;  %v9527_v3 = vpop.f32.mrf.mxu0  ;;  %9750 = vmatmul.mubr.msk.bf16.gmra.mxu0 %vm439_vm1, %v4016_v42 }
 0x125   : > { %v1329_v36 = vadd.f32 %v9510_v13, %v11535_v44  ;;  %v11669_v48 = vadd.f32 %v1432_v26, %v1326_v30  ;;  %9753 = vmatprep.mubr.msk.bf16.mxu0 %vm439_vm1, %v4025_v40  ;;  %v4144_v49 = vrot.slane %v11674_v7, 2  ;;  %v4275_v63 = vsel %vm3034_vm6, %v4273_v25, %v4274_v20 }
 0x126   : > { %v1283_v0 = vpop.f32.mrf.mxu1  ;;  %v1448_v44 = vpop.f32.mrf.mxu0  ;;  %v4149_v25 = vrot.slane %v11530_v2, 2 }
 0x127   : > { %v1327_v35 = vadd.f32 %v1283_v0, %v11547_v15  ;;  %v11678_v38 = vadd.f32 %v9524_v27, %v1329_v36  ;;  %v4146_v36 = vsel %vm3034_vm6, %v4144_v49, %v4145_v56 }
 0x128   : > { %v9513_v61 = vpop.f32.mrf.mxu1  ;;  %9736 = vmatmul.mubr.msk.bf16.gmra.mxu1 %vm439_vm1, %v3807_v18  ;;  %v9528_v9 = vpop.f32.mrf.mxu0 }
 0x129   : > { %v1332_v33 = vadd.f32 %v9513_v61, %v11563_v24  ;;  %9739 = vmatprep.mubr.msk.bf16.mxu1 %vm439_vm1, %v3816_v53  ;;  %v11685_v26 = vadd.f32 %v1435_v47, %v1327_v35 }
 0x12a   : > { %v1296_v15 = vpop.f32.mrf.mxu1  ;;  %v1451_v30 = vpop.f32.mrf.mxu0 }
 0x12b   : > { %v1330_v27 = vadd.f32 %v1296_v15, %v11582_v22  ;;  %v11690_v23 = vadd.f32 %v9527_v3, %v1332_v33  ;;  %v4276_v22 = vrot.slane %v11483_v17, 2 }
 0x12c   : > { %v9514_v42 = vpop.f32.mrf.mxu1  ;;  %v9531_v47 = vpop.f32.mrf.mxu0  ;;  %9754 = vmatmul.mubr.msk.bf16.gmra.mxu0 %vm439_vm1, %v4024_v12  ;;  %v4147_v12 = vrot.slane %v11503_v54, 2 }
 0x12d   : > { %v1333_v24 = vadd.f32 %v9514_v42, %v11599_v29  ;;  %v11694_v13 = vadd.f32 %v1448_v44, %v1330_v27  ;;  %9773 = vmatprep.mubr.msk.bf16.mxu0 %vm439_vm1, %v4275_v63  ;;  %v4278_v29 = vrot.slane %v11514_v4, 2  ;;  %v11724_v63 = vld [vmem:[%s13482_s4 + $0x70] sm:$0xf] }
 0x12e   : > { %v1299_v40 = vpop.f32.mrf.mxu1  ;;  %v1464_v0 = vpop.f32.mrf.mxu0 }
 0x12f   : > { %v1331_v18 = vadd.f32 %v1299_v40, %v11609_v55  ;;  %v11701_v3 = vadd.f32 %v9528_v9, %v1333_v24  ;;  %v4277_v9 = vsel %vm3034_vm6, %v4274_v20, %v4276_v22  ;;  %v4279_v27 = vsel %vm3034_vm6, %v4276_v22, %v4278_v29 }
 0x130   : > { %v9517_v53 = vpop.f32.mrf.mxu1  ;;  %9740 = vmatmul.mubr.msk.bf16.gmra.mxu1 %vm439_vm1, %v3815_v52  ;;  %v9532_v55 = vpop.f32.mrf.mxu0  ;;  %v4454_v24 = vsel %vm458_vm0, %v11646_v43, 0  ;;  %v4282_v40 = vrot.slane %v11576_v5, 2  ;;  %v4554_v43 = vshrl.u32 %v11665_v19, 16 }
 0x131   : > { %v1336_v35 = vadd.f32 %v9517_v53, %v11620_v58  ;;  %9759 = vmatprep.mubr.msk.bf16.mxu1 %vm439_vm1, %v4146_v36  ;;  %v11708_v44 = vadd.f32 %v1451_v30, %v1331_v18  ;;  %v4605_v58 = vsel %vm458_vm0, %v11635_v62, 0  ;;  %v4148_v30 = vsel %vm3034_vm6, %v4145_v56, %v4147_v12  ;;  %v11737_v36 = vld [vmem:[%s13482_s4 + $0x6c] sm:$0xf] }
 0x132   : > { %v1312_v61 = vpop.f32.mrf.mxu1  ;;  %v1467_v52 = vpop.f32.mrf.mxu0  ;;  %v4150_v62 = vsel %vm3034_vm6, %v4147_v12, %v4149_v25  ;;  %v4280_v56 = vrot.slane %v11561_v28, 2  ;;  %v4151_v53 = vrot.slane %v11580_v34, 2 }
 0x133   : > { %v1334_v33 = vadd.f32 %v1312_v61, %v11630_v50  ;;  %v11713_v15 = vadd.f32 %v9531_v47, %v1336_v35  ;;  %v4153_v35 = vrot.slane %v11593_v45, 2 }
 0x134   : > { %v9518_v49 = vpop.f32.mrf.mxu1  ;;  %v9551_v50 = vpop.f32.mrf.mxu0  ;;  %9774 = vmatmul.mubr.msk.bf16.vlgmr.msra.gmra.mxu0 %vm439_vm1, %v4277_v9  ;;  %v4281_v9 = vsel %vm3034_vm6, %v4278_v29, %v4280_v56  ;;  %v4152_v29 = vsel %vm3034_vm6, %v4149_v25, %v4151_v53  ;;  %v4566_v25 = vrot.slane %v3994_v51, 3 }
 0x135   : > { %v11719_v42 = vadd.f32 %v1464_v0, %v1334_v33  ;;  %9800 = vmatpush3.bf16.msra.mxu0 %v4605_v58  ;;  %9777 = vmatprep.mubr.msk.bf16.mxu0 %vm439_vm1, %v4279_v27  ;;  %v4403_v33 = vshrl.u32 %v11674_v7, 16  ;;  %v4283_v49 = vsel %vm3034_vm6, %v4280_v56, %v4282_v40 }
 0x136   : > { %v1315_v20 = vpop.f32.mrf.mxu1  ;;  %v1738_v18 = vpop.f32.mrf.mxu0  ;;  %10152 = vmatprep.subr.msk.bf16.mxu0 %vm458_vm0, %v11724_v63 }
 0x137   : > { %v1335_v47 = vadd.f32 %v1315_v20, %v11654_v60  ;;  %v4557_v60 = vshll.u32 %v11665_v19, 16  ;;  %v4406_v19 = vshll.u32 %v11674_v7, 16  ;;  %v4561_v7 = vrot.slane %v3982_v1, 2 }
 0x138   : > { %v9537_v22 = vpop.f32.mrf.mxu1  ;;  %9760 = vmatmul.mubr.msk.bf16.vlgmr.msra.gmra.mxu1 %vm439_vm1, %v4148_v30  ;;  %v9552_v55 = vpop.f32.mrf.mxu0  ;;  %v4556_v30 = vrot.slane %v4554_v43, 2  ;;  %v4411_v1 = vrot.slane %v3776_v14, 3 }
 0x139   : > { %v1633_v0 = vadd.f32 %v9537_v22, %v11661_v59  ;;  %9786 = vmatpush3.bf16.msra.mxu1 %v4454_v24  ;;  %9763 = vmatprep.mubr.msk.bf16.mxu1 %vm439_vm1, %v4150_v62  ;;  %v11748_v12 = vadd.f32 %v1467_v52, %v1335_v47  ;;  %v4559_v20 = vrot.slane %v4557_v60, 3  ;;  %v4562_v24 = vrot.slane %v3985_v37, 3 }
 0x13a   : > { %v1585_v61 = vpop.f32.mrf.mxu1  ;;  %10151 = vmatprep.subr.msk.bf16.mxu1 %vm458_vm0, %v11737_v36  ;;  %v1741_v52 = vpop.f32.mrf.mxu0  ;;  %v4154_v62 = vsel %vm3034_vm6, %v4151_v53, %v4153_v35  ;;  %v4405_v22 = vrot.slane %v4403_v33, 2  ;;  %v4408_v43 = vrot.slane %v4406_v19, 3  ;;  %v4412_v51 = vor.u32 %v4411_v1, %v4410_v11 }
 0x13b   : > { %v1631_v59 = vadd.f32 %v1585_v61, %v11669_v48  ;;  %v11759_v58 = vadd.f32 %v9551_v50, %v1633_v0  ;;  %v4560_v10 = vor.u32 %v4559_v20, %v4556_v30  ;;  %v4563_v53 = vor.u32 %v4562_v24, %v4561_v7  ;;  %v4547_v61 = vld [vmem:[%s10741_s18 + $0x30] sm:$0x7] }
 0x13c   : > { %v9538_v27 = vpop.f32.mrf.mxu1  ;;  %v9555_v47 = vpop.f32.mrf.mxu0  ;;  %9778 = vmatmul.mubr.msk.bf16.gmra.mxu0 %vm439_vm1, %v4281_v9  ;;  %v4409_v17 = vor.u32 %v4408_v43, %v4405_v22  ;;  %v4396_v9 = vld [vmem:[%s10751_s22 + $0x30] sm:$0x7]  ;;  %v8823_v20 = vcombine.low %v11550_v32, %v4547_v61  ;;  %v13507_v24 = vshll.u32 %v11503_v54, 16 }
 0x13d   : > { %v1634_v48 = vadd.f32 %v9538_v27, %v11678_v38  ;;  %v11770_v50 = vadd.f32 %v1738_v18, %v1631_v59  ;;  %9781 = vmatprep.mubr.msk.bf16.mxu0 %vm439_vm1, %v4283_v49  ;;  %v4565_v38 = vrot.slane %v3991_v46, 2  ;;  %v4564_v30 = vsel %vm3293_vm7, %v4560_v10, %v4563_v53 }
 0x13e   : > { %v1588_v56 = vpop.f32.mrf.mxu1  ;;  %v1754_v60 = vpop.f32.mrf.mxu0  ;;  %v4413_v4 = vsel %vm3293_vm7, %v4409_v17, %v4412_v51  ;;  %v4578_v11 = vshrl.u32 %v8823_v20, 16  ;;  %v4581_v1 = vshll.u32 %v8823_v20, 16 }
 0x13f   : > { %v1632_v37 = vadd.f32 %v1588_v56, %v11685_v26  ;;  %v11783_v18 = vadd.f32 %v9552_v55, %v1634_v48  ;;  %v4567_v19 = vor.u32 %v4566_v25, %v4565_v38  ;;  %v4415_v48 = vrot.slane %v13507_v24, 3  ;;  %v11864_v24 = vld [vmem:[%s13482_s4 + $0x74] sm:$0xf] }
 0x140   : > { %v9541_v0 = vpop.f32.mrf.mxu1  ;;  %9764 = vmatmul.mubr.msk.bf16.gmra.mxu1 %vm439_vm1, %v4152_v29  ;;  %v9556_v46 = vpop.f32.mrf.mxu0 }
 0x141   : > { %v1637_v14 = vadd.f32 %v9541_v0, %v11690_v23  ;;  %9767 = vmatprep.mubr.msk.bf16.mxu1 %vm439_vm1, %v4154_v62  ;;  %v11788_v26 = vadd.f32 %v1741_v52, %v1632_v37  ;;  %v4569_v23 = vrot.slane %v4000_v21, 2  ;;  %v4570_v52 = vrot.slane %v4003_v41, 3 }
 0x142   : > { %v1601_v33 = vpop.f32.mrf.mxu1  ;;  %v1757_v49 = vpop.f32.mrf.mxu0  ;;  %v13508_v41 = vshrl.u32 %v11530_v2, 16 }
 0x143   : > { %v1635_v55 = vadd.f32 %v1601_v33, %v11694_v13  ;;  %v11792_v59 = vadd.f32 %v9555_v47, %v1637_v14  ;;  %v4414_v13 = vrot.slane %v3782_v39, 2  ;;  %v11817_v39 = vcombine.low %v11566_v8, %v4396_v9 }
 0x144   : > { %v9542_v27 = vpop.f32.mrf.mxu1  ;;  %v9559_v62 = vpop.f32.mrf.mxu0  ;;  %9782 = vmatmul.mubr.msk.bf16.gmra.mxu0 %vm439_vm1, %v4282_v40  ;;  %v4418_v32 = vrot.slane %v13508_v41, 2  ;;  %v4571_v43 = vor.u32 %v4570_v52, %v4569_v23  ;;  %v4573_v14 = vrot.slane %v4009_v31, 2  ;;  %v4580_v9 = vrot.slane %v4578_v11, 2  ;;  %v11853_v23 = vld [vmem:[%s13482_s4 + $0x78] sm:$0xf] }
 0x145   : > { %v1638_v7 = vadd.f32 %v9542_v27, %v11701_v3  ;;  %v11806_v29 = vadd.f32 %v1754_v60, %v1635_v55  ;;  %v13509_v3 = vshll.u32 %v11530_v2, 16  ;;  %9801 = vmatprep.mubr.msk.bf16.mxu0 %vm439_vm1, %v4564_v30  ;;  %v4416_v8 = vor.u32 %v4415_v48, %v4414_v13  ;;  %v11873_v41 = vld [vmem:[%s10616_s19 + $0xc] sm:$0xf] }
 0x146   : > { %v1604_v21 = vpop.f32.mrf.mxu1  ;;  %v1770_v5 = vpop.f32.mrf.mxu0  ;;  %v4568_v60 = vsel %vm3293_vm7, %v4563_v53, %v4567_v19  ;;  %v4427_v10 = vshrl.u32 %v11817_v39, 16  ;;  %v4430_v45 = vshll.u32 %v11817_v39, 16  ;;  %v4901_v53 = vsel %vm458_vm0, %v11724_v63, 0 }
 0x147   : > { %v4419_v47 = vrot.slane %v13509_v3, 3  ;;  %v1636_v56 = vadd.f32 %v1604_v21, %v11708_v44  ;;  %v11821_v22 = vadd.f32 %v9556_v46, %v1638_v7  ;;  %v4572_v55 = vsel %vm3293_vm7, %v4567_v19, %v4571_v43  ;;  %v4827_v21 = vld [vmem:[%s10616_s19 + $0x8] sm:$0x8]  ;;  %v11879_v3 = vld [vmem:[%s10616_s19 + $0x14] sm:$0xf] }
 0x148   : > { %v9545_v40 = vpop.f32.mrf.mxu1  ;;  %9768 = vmatmul.mubr.msk.bf16.gmra.mxu1 %vm439_vm1, %v4153_v35  ;;  %v9560_v44 = vpop.f32.mrf.mxu0  ;;  %v4417_v27 = vsel %vm3293_vm7, %v4412_v51, %v4416_v8  ;;  %v13511_v31 = vshll.u32 %v11580_v34, 16  ;;  %v4734_v51 = vsel %vm458_vm0, %v11737_v36, 0  ;;  %v4429_v52 = vrot.slane %v4427_v10, 2 }
 0x149   : > { %v1641_v37 = vadd.f32 %v9545_v40, %v11713_v15  ;;  %9787 = vmatprep.mubr.msk.bf16.mxu1 %vm439_vm1, %v4413_v4  ;;  %v11828_v38 = vadd.f32 %v1757_v49, %v1636_v56  ;;  %v4420_v0 = vor.u32 %v4419_v47, %v4418_v32  ;;  %v13510_v15 = vshll.u32 %v11561_v28, 16  ;;  %v11876_v32 = vld [vmem:[%s10616_s19 + $0x10] sm:$0xf] }
 0x14a   : > { %v1617_v25 = vpop.f32.mrf.mxu1  ;;  %v1773_v33 = vpop.f32.mrf.mxu0  ;;  %v4583_v49 = vrot.slane %v4581_v1, 3  ;;  %v4423_v28 = vrot.slane %v13511_v31, 3  ;;  %v4432_v20 = vrot.slane %v4430_v45, 3  ;;  %v4698_v1 = vld [vmem:[%s10751_s22 + $0x4] sm:$0x8]  ;;  %v11896_v10 = vcombine.low %v11876_v32, %v11879_v3 }
 0x14b   : > { %v1639_v35 = vadd.f32 %v1617_v25, %v11719_v42  ;;  %v4574_v61 = vrot.slane %v13510_v15, 3  ;;  %v11838_v46 = vadd.f32 %v9559_v62, %v1641_v37  ;;  %v4422_v42 = vrot.slane %v3800_v6, 2 }
 0x14c   : > { %v9546_v17 = vpop.f32.mrf.mxu1  ;;  %v9579_v63 = vpop.f32.mrf.mxu0  ;;  %9802 = vmatmul.mubr.msk.bf16.vlgmr.msra.gmra.mxu0 %vm439_vm1, %v4568_v60  ;;  %v4421_v6 = vsel %vm3293_vm7, %v4416_v8, %v4420_v0  ;;  %v4584_v62 = vor.u32 %v4583_v49, %v4580_v9  ;;  %v4433_v40 = vor.u32 %v4432_v20, %v4429_v52  ;;  %v11892_v60 = vcombine.low %v4827_v21, %v11873_v41 }
 0x14d   : > { %v11848_v30 = vadd.f32 %v1770_v5, %v1639_v35  ;;  %9828 = vmatpush3.bf16.msra.mxu0 %v4901_v53  ;;  %9805 = vmatprep.mubr.msk.bf16.mxu0 %vm439_vm1, %v4572_v55  ;;  %v4575_v13 = vor.u32 %v4574_v61, %v4573_v14  ;;  %v4424_v4 = vor.u32 %v4423_v28, %v4422_v42  ;;  %v11908_v17 = vld [vmem:[%s10616_s19 + $0x18] sm:$0xf]  ;;  %v4872_v49 = vrot.slane %v11896_v10, 3 }
 0x14e   : > { %v1620_v19 = vpop.f32.mrf.mxu1  ;;  %v2144_v48 = vpop.f32.mrf.mxu0  ;;  %10154 = vmatprep.subr.msk.bf16.mxu0 %vm458_vm0, %v11853_v23  ;;  %v8831_v61 = vcombine.low %v4698_v1, %v11445_v57  ;;  %v4871_v9 = vrot.slane %v11892_v60, 3  ;;  %v11960_v1 = vld [vmem:[%s10616_s19 + $0x30] sm:$0xf] }
 0x14f   : > { %v1640_v7 = vadd.f32 %v1620_v19, %v11748_v12  ;;  %v4576_v11 = vsel %vm3293_vm7, %v4571_v43, %v4575_v13  ;;  %v4585_v25 = vsel %vm3293_vm7, %v4575_v13, %v4584_v62  ;;  %v4425_v43 = vsel %vm3293_vm7, %v4420_v0, %v4424_v4 }
 0x150   : > { %v9565_v36 = vpop.f32.mrf.mxu1  ;;  %9788 = vmatmul.mubr.msk.bf16.vlgmr.msra.gmra.mxu1 %vm439_vm1, %v4417_v27  ;;  %v9580_v56 = vpop.f32.mrf.mxu0  ;;  %v4434_v15 = vsel %vm3293_vm7, %v4424_v4, %v4433_v40  ;;  %v11924_v27 = vld [vmem:[%s10616_s19 + $0x24] sm:$0xf]  ;;  %v4704_v19 = vrot.slane %v8831_v61, 3 }
 0x151   : > { %v1989_v12 = vadd.f32 %v9565_v36, %v11759_v58  ;;  %9814 = vmatpush3.bf16.msra.mxu1 %v4734_v51  ;;  %9791 = vmatprep.mubr.msk.bf16.mxu1 %vm439_vm1, %v4421_v6  ;;  %v11881_v47 = vadd.f32 %v1773_v33, %v1640_v7  ;;  %v4705_v51 = vrot.slane %v11468_v16, 3  ;;  %v4873_v7 = vsel %vm3596_vm5, %v4871_v9, %v4872_v49 }
 0x152   : > { %v1941_v5 = vpop.f32.mrf.mxu1  ;;  %10153 = vmatprep.subr.msk.bf16.mxu1 %vm458_vm0, %v11864_v24  ;;  %v2147_v8 = vpop.f32.mrf.mxu0 }
 0x153   : > { %v1987_v58 = vadd.f32 %v1941_v5, %v11770_v50  ;;  %v11888_v37 = vadd.f32 %v9579_v63, %v1989_v12  ;;  %v4706_v12 = vsel %vm3596_vm5, %v4704_v19, %v4705_v51  ;;  %v11953_v5 = vld [vmem:[%s10616_s19 + $0x2c] sm:$0xf] }
 0x154   : > { %v9566_v44 = vpop.f32.mrf.mxu1  ;;  %v9583_v35 = vpop.f32.mrf.mxu0  ;;  %9806 = vmatmul.mubr.msk.bf16.gmra.mxu0 %vm439_vm1, %v4576_v11 }
 0x155   : > { %v1990_v50 = vadd.f32 %v9566_v44, %v11783_v18  ;;  %v11900_v45 = vadd.f32 %v2144_v48, %v1987_v58  ;;  %9809 = vmatprep.mubr.msk.bf16.mxu0 %vm439_vm1, %v4585_v25  ;;  %v11911_v18 = vld [vmem:[%s10616_s19 + $0x1c] sm:$0xf] }
 0x156   : > { %v1944_v14 = vpop.f32.mrf.mxu1  ;;  %v2160_v53 = vpop.f32.mrf.mxu0  ;;  %v11930_v63 = vcombine.low %v11908_v17, %v11911_v18 }
 0x157   : > { %v1988_v33 = vadd.f32 %v1944_v14, %v11788_v26  ;;  %v11913_v0 = vadd.f32 %v9580_v56, %v1990_v50  ;;  %v11921_v26 = vld [vmem:[%s10616_s19 + $0x20] sm:$0xf]  ;;  %v11950_v56 = vld [vmem:[%s10616_s19 + $0x28] sm:$0xf]  ;;  %v4709_v14 = vrot.slane %v11530_v2, 3 }
 0x158   : > { %v9569_v55 = vpop.f32.mrf.mxu1  ;;  %9792 = vmatmul.mubr.msk.bf16.gmra.mxu1 %vm439_vm1, %v4425_v43  ;;  %v9584_v31 = vpop.f32.mrf.mxu0  ;;  %v11939_v13 = vcombine.low %v11921_v26, %v11924_v27  ;;  %v4874_v21 = vrot.slane %v11930_v63, 3 }
 0x159   : > { %v1993_v57 = vadd.f32 %v9569_v55, %v11792_v59  ;;  %9795 = vmatprep.mubr.msk.bf16.mxu1 %vm439_vm1, %v4434_v15  ;;  %v11926_v42 = vadd.f32 %v2147_v8, %v1988_v33  ;;  %v4838_v8 = vld [vmem:[%s10616_s19 + $0x34] sm:$0x7]  ;;  %v11973_v15 = vcombine.low %v11950_v56, %v11953_v5 }
 0x15a   : > { %v1957_v28 = vpop.f32.mrf.mxu1  ;;  %v2163_v52 = vpop.f32.mrf.mxu0 }
 0x15b   : > { %v1991_v59 = vadd.f32 %v1957_v28, %v11806_v29  ;;  %v11934_v6 = vadd.f32 %v9583_v35, %v1993_v57  ;;  %v4875_v35 = vsel %vm3596_vm5, %v4872_v49, %v4874_v21  ;;  %v4878_v19 = vrot.slane %v11973_v15, 3 }
 0x15c   : > { %v9570_v20 = vpop.f32.mrf.mxu1  ;;  %v9587_v16 = vpop.f32.mrf.mxu0  ;;  %9810 = vmatmul.mubr.msk.bf16.gmra.mxu0 %vm439_vm1, %v4584_v62  ;;  %v4876_v62 = vrot.slane %v11939_v13, 3 }
 0x15d   : > { %v1994_v48 = vadd.f32 %v9570_v20, %v11821_v22  ;;  %v11942_v36 = vadd.f32 %v2160_v53, %v1991_v59  ;;  %9829 = vmatprep.mubr.msk.bf16.mxu0 %vm439_vm1, %v4873_v7  ;;  %v5240_v53 = vsel %vm458_vm0, %v11853_v23, 0  ;;  %v12001_v59 = vld [vmem:[%s13482_s4 + $0x7c] sm:$0xf]  ;;  %v5177_v7 = vshrl.u32 %v11896_v10, 16 }
 0x15e   : > { %v1960_v29 = vpop.f32.mrf.mxu1  ;;  %v2176_v58 = vpop.f32.mrf.mxu0  ;;  %v4877_v55 = vsel %vm3596_vm5, %v4874_v21, %v4876_v62 }
 0x15f   : > { %v1992_v4 = vadd.f32 %v1960_v29, %v11828_v38  ;;  %v11955_v22 = vadd.f32 %v9584_v31, %v1994_v48  ;;  %v4707_v38 = vrot.slane %v11503_v54, 3  ;;  %v5068_v31 = vsel %vm458_vm0, %v11864_v24, 0 }
 0x160   : > { %v9573_v11 = vpop.f32.mrf.mxu1  ;;  %9796 = vmatmul.mubr.msk.bf16.gmra.mxu1 %vm439_vm1, %v4433_v40  ;;  %v9588_v50 = vpop.f32.mrf.mxu0  ;;  %v5169_v24 = vshrl.u32 %v11892_v60, 16  ;;  %v5180_v48 = vshll.u32 %v11896_v10, 16  ;;  %v4711_v29 = vrot.slane %v11580_v34, 3  ;;  %v5186_v10 = vshrl.u32 %v11930_v63, 16  ;;  %v12025_v34 = vld [vmem:[%s10604_s10 + $0xc] sm:$0xf] }
 0x161   : > { %v1997_v44 = vadd.f32 %v9573_v11, %v11838_v46  ;;  %9815 = vmatprep.mubr.msk.bf16.mxu1 %vm439_vm1, %v4706_v12  ;;  %v11966_v25 = vadd.f32 %v2163_v52, %v1992_v4  ;;  %v8844_v46 = vcombine.low %v11960_v1, %v4838_v8  ;;  %v4708_v9 = vsel %vm3596_vm5, %v4705_v51, %v4707_v38 }
 0x162   : > { %v1973_v43 = vpop.f32.mrf.mxu1  ;;  %v2179_v33 = vpop.f32.mrf.mxu0  ;;  %v4710_v23 = vsel %vm3596_vm5, %v4707_v38, %v4709_v14  ;;  %v4713_v4 = vrot.slane %v11817_v39, 3  ;;  %v4879_v11 = vsel %vm3596_vm5, %v4876_v62, %v4878_v19  ;;  %v12031_v38 = vld [vmem:[%s10604_s10 + $0x14] sm:$0xf]  ;;  %v4712_v62 = vsel %vm3596_vm5, %v4709_v14, %v4711_v29 }
 0x163   : > { %v1995_v40 = vadd.f32 %v1973_v43, %v11848_v30  ;;  %v11976_v61 = vadd.f32 %v9587_v16, %v1997_v44  ;;  %v11987_v30 = vld [vmem:[%s13482_s4 + $0x80] sm:$0xf]  ;;  %v11996_v51 = vrot.slane %v8844_v46, 3  ;;  %v12028_v44 = vld [vmem:[%s10604_s10 + $0x10] sm:$0xf] }
 0x164   : > { %v9574_v54 = vpop.f32.mrf.mxu1  ;;  %v9607_v49 = vpop.f32.mrf.mxu0  ;;  %9830 = vmatmul.mubr.msk.bf16.vlgmr.msra.gmra.mxu0 %vm439_vm1, %v4875_v35 }
 0x165   : > { %v11982_v2 = vadd.f32 %v2176_v58, %v1995_v40  ;;  %9856 = vmatpush3.bf16.msra.mxu0 %v5240_v53  ;;  %9833 = vmatprep.mubr.msk.bf16.mxu0 %vm439_vm1, %v4877_v55  ;;  %v4994_v58 = vld [vmem:[%s10604_s10 + $0x8] sm:$0x8]  ;;  %v4881_v8 = vsel %vm3596_vm5, %v4878_v19, %v11996_v51  ;;  %v5171_v40 = vrot.slane %v5169_v24, 3  ;;  %v5182_v54 = vrot.slane %v5180_v48, 4 }
 0x166   : > { %v1976_v57 = vpop.f32.mrf.mxu1  ;;  %v2402_v52 = vpop.f32.mrf.mxu0  ;;  %10156 = vmatprep.subr.msk.bf16.mxu0 %vm458_vm0, %v11987_v30  ;;  %v5189_v53 = vshll.u32 %v11930_v63, 16  ;;  %v5188_v63 = vrot.slane %v5186_v10, 3  ;;  %v5195_v24 = vshrl.u32 %v11939_v13, 16  ;;  %v12069_v10 = vld [vmem:[%s10604_s10 + $0x1c] sm:$0xf] }
 0x167   : > { %v1996_v28 = vadd.f32 %v1976_v57, %v11881_v47  ;;  %v5172_v47 = vshll.u32 %v11892_v60, 16 }
 0x168   : > { %v9593_v20 = vpop.f32.mrf.mxu1  ;;  %9816 = vmatmul.mubr.msk.bf16.vlgmr.msra.gmra.mxu1 %vm439_vm1, %v4708_v9  ;;  %v9608_v60 = vpop.f32.mrf.mxu0 }
 0x169   : > { %v2321_v16 = vadd.f32 %v9593_v20, %v11888_v37  ;;  %9842 = vmatpush3.bf16.msra.mxu1 %v5068_v31  ;;  %9819 = vmatprep.mubr.msk.bf16.mxu1 %vm439_vm1, %v4710_v23  ;;  %v12013_v21 = vadd.f32 %v2179_v33, %v1996_v28  ;;  %v5174_v46 = vrot.slane %v5172_v47, 4  ;;  %v5179_v33 = vrot.slane %v5177_v7, 3 }
 0x16a   : > { %v2273_v12 = vpop.f32.mrf.mxu1  ;;  %10155 = vmatprep.subr.msk.bf16.mxu1 %vm458_vm0, %v12001_v59  ;;  %v2405_v43 = vpop.f32.mrf.mxu0  ;;  %v12045_v31 = vcombine.low %v4994_v58, %v12025_v34  ;;  %v5191_v7 = vrot.slane %v5189_v53, 4 }
 0x16b   : > { %v2319_v37 = vadd.f32 %v2273_v12, %v11900_v45  ;;  %v12033_v50 = vadd.f32 %v9607_v49, %v2321_v16  ;;  %v4714_v49 = vsel %vm3596_vm5, %v4711_v29, %v4713_v4  ;;  %v5183_v20 = vor.u32 %v5182_v54, %v5179_v33  ;;  %v12063_v16 = vld [vmem:[%s10616_s19 + $0x34] sm:$0xf]  ;;  %v12066_v12 = vld [vmem:[%s10604_s10 + $0x18] sm:$0xf] }
 0x16c   : > { %v9594_v35 = vpop.f32.mrf.mxu1  ;;  %v9611_v9 = vpop.f32.mrf.mxu0  ;;  %9834 = vmatmul.mubr.msk.bf16.gmra.mxu0 %vm439_vm1, %v4879_v11  ;;  %v5038_v58 = vrot.slane %v12045_v31, 3  ;;  %v12078_v11 = vld [vmem:[%s10604_s10 + $0x24] sm:$0xf]  ;;  %v8865_v54 = vcombine.low %v11960_v1, %v12063_v16 }
 0x16d   : > { %v2322_v45 = vadd.f32 %v9594_v35, %v11913_v0  ;;  %v12038_v55 = vadd.f32 %v2402_v52, %v2319_v37  ;;  %v12049_v0 = vcombine.low %v12028_v44, %v12031_v38  ;;  %9837 = vmatprep.mubr.msk.bf16.mxu0 %vm439_vm1, %v4881_v8  ;;  %v5175_v52 = vor.u32 %v5174_v46, %v5171_v40  ;;  %v12075_v37 = vld [vmem:[%s10604_s10 + $0x20] sm:$0xf] }
 0x16e   : > { %v2276_v57 = vpop.f32.mrf.mxu1  ;;  %v2418_v28 = vpop.f32.mrf.mxu0  ;;  %v5197_v46 = vrot.slane %v5195_v24, 3 }
 0x16f   : > { %v2320_v14 = vadd.f32 %v2276_v57, %v11926_v42  ;;  %v12053_v23 = vadd.f32 %v9608_v60, %v2322_v45  ;;  %v5198_v42 = vshll.u32 %v11939_v13, 16  ;;  %v5039_v13 = vrot.slane %v12049_v0, 3 }
 0x170   : > { %v9597_v19 = vpop.f32.mrf.mxu1  ;;  %9820 = vmatmul.mubr.msk.bf16.gmra.mxu1 %vm439_vm1, %v4712_v62  ;;  %v9612_v29 = vpop.f32.mrf.mxu0  ;;  %v5184_v40 = vsel %vm5167_vm8, %v5175_v52, %v5183_v20  ;;  %v5192_v57 = vor.u32 %v5191_v7, %v5188_v63 }
 0x171   : > { %v2325_v47 = vadd.f32 %v9597_v19, %v11934_v6  ;;  %9823 = vmatprep.mubr.msk.bf16.mxu1 %vm439_vm1, %v4714_v49  ;;  %v12060_v48 = vadd.f32 %v2405_v43, %v2320_v14  ;;  %v5200_v33 = vrot.slane %v5198_v42, 4  ;;  %v5040_v49 = vsel %vm3596_vm5, %v5038_v58, %v5039_v13 }
 0x172   : > { %v2289_v60 = vpop.f32.mrf.mxu1  ;;  %v2421_v43 = vpop.f32.mrf.mxu0  ;;  %v12097_v14 = vcombine.low %v12075_v37, %v12078_v11  ;;  %v5207_v19 = vshll.u32 %v11973_v15, 16  ;;  %v5213_v42 = vshrl.u32 %v8865_v54, 16 }
 0x173   : > { %v2323_v6 = vadd.f32 %v2289_v60, %v11942_v36  ;;  %v12080_v8 = vadd.f32 %v9611_v9, %v2325_v47  ;;  %v12088_v36 = vcombine.low %v12066_v12, %v12069_v10  ;;  %v5201_v24 = vor.u32 %v5200_v33, %v5197_v46 }
 0x174   : > { %v9598_v35 = vpop.f32.mrf.mxu1  ;;  %v9615_v53 = vpop.f32.mrf.mxu0  ;;  %9838 = vmatmul.mubr.msk.bf16.gmra.mxu0 %vm439_vm1, %v11996_v51  ;;  %v5216_v47 = vshll.u32 %v8865_v54, 16  ;;  %v5209_v33 = vrot.slane %v5207_v19, 4 }
 0x175   : > { %v2326_v45 = vadd.f32 %v9598_v35, %v11955_v22  ;;  %v12090_v62 = vadd.f32 %v2418_v28, %v2323_v6  ;;  %9857 = vmatprep.mubr.msk.bf16.mxu0 %vm439_vm1, %v5184_v40  ;;  %v5204_v28 = vshrl.u32 %v11973_v15, 16  ;;  %v5041_v7 = vrot.slane %v12088_v36, 3  ;;  %v12112_v15 = vld [vmem:[%s10604_s10 + $0x28] sm:$0xf]  ;;  %v12122_v35 = vld [vmem:[%s10604_s10 + $0x30] sm:$0xf] }
 0x176   : > { %v2292_v9 = vpop.f32.mrf.mxu1  ;;  %v2434_v51 = vpop.f32.mrf.mxu0  ;;  %v5193_v6 = vsel %vm5167_vm8, %v5183_v20, %v5192_v57  ;;  %v5005_v40 = vld [vmem:[%s10604_s10 + $0x34] sm:$0x7]  ;;  %v5218_v20 = vrot.slane %v5216_v47, 4  ;;  %v12153_v47 = vld [vmem:[%s13482_s4 + $0x84] sm:$0xf] }
 0x177   : > { %v2324_v22 = vadd.f32 %v2292_v9, %v11966_v25  ;;  %v12103_v52 = vadd.f32 %v9612_v29, %v2326_v45  ;;  %v12115_v29 = vld [vmem:[%s10604_s10 + $0x2c] sm:$0xf]  ;;  %v5206_v46 = vrot.slane %v5204_v28, 3 }
 0x178   : > { %v9601_v63 = vpop.f32.mrf.mxu1  ;;  %9824 = vmatmul.mubr.msk.bf16.gmra.mxu1 %vm439_vm1, %v4713_v4  ;;  %v9616_v58 = vpop.f32.mrf.mxu0  ;;  %v5043_v4 = vrot.slane %v12097_v14, 3 }
 0x179   : > { %v2329_v25 = vadd.f32 %v9601_v63, %v11976_v61  ;;  %9843 = vmatprep.mubr.msk.bf16.mxu1 %vm439_vm1, %v5040_v49  ;;  %v12117_v60 = vadd.f32 %v2421_v43, %v2324_v22  ;;  %v5531_v43 = vsel %vm458_vm0, %v11987_v30, 0  ;;  %v5202_v49 = vsel %vm5167_vm8, %v5192_v57, %v5201_v24 }
 0x17a   : > { %v2305_v39 = vpop.f32.mrf.mxu1  ;;  %v2437_v45 = vpop.f32.mrf.mxu0  ;;  %v5215_v22 = vrot.slane %v5213_v42, 3  ;;  %v5042_v63 = vsel %vm3596_vm5, %v5039_v13, %v5041_v7  ;;  %v12134_v58 = vcombine.low %v12112_v15, %v12115_v29  ;;  %v5411_v13 = vsel %vm458_vm0, %v12001_v59, 0 }
 0x17b   : > { %v2327_v61 = vadd.f32 %v2305_v39, %v11982_v2  ;;  %v12126_v54 = vadd.f32 %v9615_v53, %v2329_v25  ;;  %v8857_v2 = vcombine.low %v12122_v35, %v5005_v40  ;;  %v12142_v53 = vld [vmem:[%s13482_s4 + $0x88] sm:$0xf]  ;;  %v5044_v19 = vsel %vm3596_vm5, %v5041_v7, %v5043_v4 }
 0x17c   : > { %v9602_v9 = vpop.f32.mrf.mxu1  ;;  %v9635_v30 = vpop.f32.mrf.mxu0  ;;  %9858 = vmatmul.mubr.msk.bf16.vlgmr.msra.gmra.mxu0 %vm439_vm1, %v5193_v6  ;;  %v5219_v6 = vor.u32 %v5218_v20, %v5215_v22 }
 0x17d   : > { %v12137_v28 = vadd.f32 %v2434_v51, %v2327_v61  ;;  %9884 = vmatpush3.bf16.msra.mxu0 %v5531_v43  ;;  %9861 = vmatprep.mubr.msk.bf16.mxu0 %vm439_vm1, %v5202_v49  ;;  %v5210_v51 = vor.u32 %v5209_v33, %v5206_v46  ;;  %v12161_v7 = vrot.slane %v8857_v2, 3  ;;  %v5340_v33 = vshrl.u32 %v12045_v31, 16 }
 0x17e   : > { %v2308_v57 = vpop.f32.mrf.mxu1  ;;  %v2762_v25 = vpop.f32.mrf.mxu0  ;;  %10158 = vmatprep.subr.msk.bf16.mxu0 %vm458_vm0, %v12142_v53  ;;  %v5343_v9 = vshll.u32 %v12045_v31, 16  ;;  %v5348_v43 = vshrl.u32 %v12049_v0, 16  ;;  %v5351_v49 = vshll.u32 %v12049_v0, 16 }
 0x17f   : > { %v2328_v42 = vadd.f32 %v2308_v57, %v12013_v21  ;;  %v5045_v21 = vrot.slane %v12134_v58, 3  ;;  %v5211_v22 = vsel %vm5167_vm8, %v5201_v24, %v5210_v51  ;;  %v5220_v2 = vsel %vm5167_vm8, %v5210_v51, %v5219_v6 }
 0x180   : > { %v9621_v39 = vpop.f32.mrf.mxu1  ;;  %9844 = vmatmul.mubr.msk.bf16.vlgmr.msra.gmra.mxu1 %vm439_vm1, %v5042_v63  ;;  %v9636_v61 = vpop.f32.mrf.mxu0  ;;  %v5342_v24 = vrot.slane %v5340_v33, 3 }
 0x181   : > { %v2601_v59 = vadd.f32 %v9621_v39, %v12033_v50  ;;  %9870 = vmatpush3.bf16.msra.mxu1 %v5411_v13  ;;  %9847 = vmatprep.mubr.msk.bf16.mxu1 %vm439_vm1, %v5044_v19  ;;  %v12163_v40 = vadd.f32 %v2437_v45, %v2328_v42  ;;  %v5046_v31 = vsel %vm3596_vm5, %v5043_v4, %v5045_v21  ;;  %v5350_v42 = vrot.slane %v5348_v43, 3 }
 0x182   : > { %v2553_v46 = vpop.f32.mrf.mxu1  ;;  %10157 = vmatprep.subr.msk.bf16.mxu1 %vm458_vm0, %v12153_v47  ;;  %v2765_v45 = vpop.f32.mrf.mxu0  ;;  %v5048_v0 = vsel %vm3596_vm5, %v5045_v21, %v12161_v7  ;;  %v5353_v39 = vrot.slane %v5351_v49, 4  ;;  %v5360_v21 = vshll.u32 %v12088_v36, 16  ;;  %v5366_v49 = vshrl.u32 %v12097_v14, 16 }
 0x183   : > { %v2599_v50 = vadd.f32 %v2553_v46, %v12038_v55  ;;  %v12173_v20 = vadd.f32 %v9635_v30, %v2601_v59  ;;  %v5345_v30 = vrot.slane %v5343_v9, 4 }
 0x184   : > { %v9622_v63 = vpop.f32.mrf.mxu1  ;;  %v9639_v19 = vpop.f32.mrf.mxu0  ;;  %9862 = vmatmul.mubr.msk.bf16.gmra.mxu0 %vm439_vm1, %v5211_v22 }
 0x185   : > { %v2602_v57 = vadd.f32 %v9622_v63, %v12053_v23  ;;  %v12180_v13 = vadd.f32 %v2762_v25, %v2599_v50  ;;  %9865 = vmatprep.mubr.msk.bf16.mxu0 %vm439_vm1, %v5220_v2  ;;  %v5357_v25 = vshrl.u32 %v12088_v36, 16  ;;  %v5346_v43 = vor.u32 %v5345_v30, %v5342_v24 }
 0x186   : > { %v2556_v55 = vpop.f32.mrf.mxu1  ;;  %v2778_v4 = vpop.f32.mrf.mxu0  ;;  %v5369_v50 = vshll.u32 %v12097_v14, 16  ;;  %v8881_v63 = vcombine.low %v11873_v41, %v11876_v32  ;;  %v5368_v30 = vrot.slane %v5366_v49, 3 }
 0x187   : > { %v2600_v59 = vadd.f32 %v2556_v55, %v12060_v48  ;;  %v12185_v23 = vadd.f32 %v9636_v61, %v2602_v57  ;;  %v5354_v61 = vor.u32 %v5353_v39, %v5350_v42  ;;  %v5359_v57 = vrot.slane %v5357_v25, 3 }
 0x188   : > { %v9625_v51 = vpop.f32.mrf.mxu1  ;;  %9848 = vmatmul.mubr.msk.bf16.gmra.mxu1 %vm439_vm1, %v5046_v31  ;;  %v9640_v48 = vpop.f32.mrf.mxu0  ;;  %v5362_v31 = vrot.slane %v5360_v21, 4  ;;  %v5371_v41 = vrot.slane %v5369_v50, 4  ;;  %v8882_v25 = vcombine.low %v11879_v3, %v11908_v17 }
 0x189   : > { %v2605_v46 = vadd.f32 %v9625_v51, %v12080_v8  ;;  %9851 = vmatprep.mubr.msk.bf16.mxu1 %vm439_vm1, %v5048_v0  ;;  %v12192_v33 = vadd.f32 %v2765_v45, %v2600_v59  ;;  %v12202_v8 = vld [vmem:[%s10604_s10 + $0x34] sm:$0xf]  ;;  %v5378_v51 = vshll.u32 %v12134_v58, 16 }
 0x18a   : > { %v2569_v9 = vpop.f32.mrf.mxu1  ;;  %v2781_v2 = vpop.f32.mrf.mxu0  ;;  %v8873_v32 = vcombine.low %v12122_v35, %v12202_v8 }
 0x18b   : > { %v2603_v22 = vadd.f32 %v2569_v9, %v12090_v62  ;;  %v12199_v36 = vadd.f32 %v9639_v19, %v2605_v46  ;;  %v5355_v62 = vsel %vm5167_vm8, %v5346_v43, %v5354_v61 }
 0x18c   : > { %v9626_v45 = vpop.f32.mrf.mxu1  ;;  %v9643_v24 = vpop.f32.mrf.mxu0  ;;  %9866 = vmatmul.mubr.msk.bf16.gmra.mxu0 %vm439_vm1, %v5219_v6  ;;  %v5363_v6 = vor.u32 %v5362_v31, %v5359_v57  ;;  %v5384_v9 = vshrl.u32 %v8873_v32, 16 }
 0x18d   : > { %v2606_v0 = vadd.f32 %v9626_v45, %v12103_v52  ;;  %v12205_v55 = vadd.f32 %v2778_v4, %v2603_v22  ;;  %9885 = vmatprep.mubr.msk.bf16.mxu0 %vm439_vm1, %v8881_v63  ;;  %v5375_v4 = vshrl.u32 %v12134_v58, 16  ;;  %v5854_v58 = vsel %vm458_vm0, %v12142_v53, 0  ;;  %v10331_v63 = vld [vmem:[%s10616_s19 + $0xc] sm:$0xff]  }
 0x18e   : > { %v2572_v14 = vpop.f32.mrf.mxu1  ;;  %v2794_v52 = vpop.f32.mrf.mxu0  ;;  %v5364_v3 = vsel %vm5167_vm8, %v5354_v61, %v5363_v6  ;;  %v5651_v53 = vsel %vm458_vm0, %v12153_v47, 0  ;;  %v5386_v61 = vrot.slane %v5384_v9, 3  ;;  %v5791_v47 = vshll.u32 %v10331_v63, 16 }
 0x18f   : > { %v2604_v19 = vadd.f32 %v2572_v14, %v12117_v60  ;;  %v12213_v42 = vadd.f32 %v9640_v48, %v2606_v0  ;;  %v5372_v48 = vor.u32 %v5371_v41, %v5368_v30  ;;  %v5377_v17 = vrot.slane %v5375_v4, 3  ;;  %v12254_v30 = vld [vmem:[%s10616_s19 + $0x14] sm:$0xff]  }
 0x190   : > { %v9629_v39 = vpop.f32.mrf.mxu1  ;;  %9852 = vmatmul.mubr.msk.bf16.gmra.mxu1 %vm439_vm1, %v12161_v7  ;;  %v9644_v21 = vpop.f32.mrf.mxu0  ;;  %v5387_v7 = vshll.u32 %v8873_v32, 16  ;;  %v5796_v9 = vshll.u32 %v12254_v30, 16 }
 0x191   : > { %v2609_v59 = vadd.f32 %v9629_v39, %v12126_v54  ;;  %9871 = vmatprep.mubr.msk.bf16.mxu1 %vm439_vm1, %v5355_v62  ;;  %v12221_v60 = vadd.f32 %v2781_v2, %v2604_v19  ;;  %v8883_v54 = vcombine.low %v11911_v18, %v11921_v26  ;;  %v5380_v2 = vrot.slane %v5378_v51, 4 }
 0x192   : > { %v2585_v46 = vpop.f32.mrf.mxu1  ;;  %v2797_v50 = vpop.f32.mrf.mxu0  ;;  %v5373_v57 = vsel %vm5167_vm8, %v5363_v6, %v5372_v48  ;;  %v5389_v31 = vrot.slane %v5387_v7, 4  ;;  %v8884_v39 = vcombine.low %v11924_v27, %v11950_v56  ;;  %v5789_v21 = vshrl.u32 %v10331_v63, 16  ;;  %v10335_v63 = vld [vmem:[%s10616_s19 + $0x24] sm:$0xff]  }
 0x193   : > { %v2607_v43 = vadd.f32 %v2585_v46, %v12137_v28  ;;  %v12228_v49 = vadd.f32 %v9643_v24, %v2609_v59  ;;  %v12239_v28 = vld [vmem:[%s13482_s4 + $0x90] sm:$0xf]  ;;  %v12250_v24 = vld [vmem:[%s13482_s4 + $0x8c] sm:$0xf]  ;;  %v5381_v41 = vor.u32 %v5380_v2, %v5377_v17  ;;  %v5793_v46 = vrot.slane %v5791_v47, 1 }
 0x194   : > { %v9630_v22 = vpop.f32.mrf.mxu1  ;;  %v9663_v18 = vpop.f32.mrf.mxu0  ;;  %9886 = vmatmul.mubr.msk.bf16.vlgmr.msra.gmra.mxu0 %vm439_vm1, %v8882_v25  ;;  %v5390_v6 = vor.u32 %v5389_v31, %v5386_v61 }
 0x195   : > { %v12234_v45 = vadd.f32 %v2794_v52, %v2607_v43  ;;  %9912 = vmatpush3.bf16.msra.mxu0 %v5854_v58  ;;  %9889 = vmatprep.mubr.msk.bf16.mxu0 %vm439_vm1, %v8883_v54  ;;  %v5382_v56 = vsel %vm5167_vm8, %v5372_v48, %v5381_v41  ;;  %v5794_v48 = vor.u32 %v5793_v46, %v5789_v21  ;;  %v5798_v58 = vrot.slane %v5796_v9, 1 }
 0x196   : > { %v2588_v26 = vpop.f32.mrf.mxu1  ;;  %v3101_v14 = vpop.f32.mrf.mxu0  ;;  %10160 = vmatprep.subr.msk.bf16.mxu0 %vm458_vm0, %v12239_v28  ;;  %v5816_v9 = vshrl.u32 %v10335_v63, 16 }
 0x197   : > { %v2608_v0 = vadd.f32 %v2588_v26, %v12163_v40 }
 0x198   : > { %v9649_v62 = vpop.f32.mrf.mxu1  ;;  %9872 = vmatmul.mubr.msk.bf16.vlgmr.msra.gmra.mxu1 %vm439_vm1, %v5364_v3  ;;  %v9664_v19 = vpop.f32.mrf.mxu0 }
 0x199   : > { %v3019_v40 = vadd.f32 %v9649_v62, %v12173_v20  ;;  %9898 = vmatpush3.bf16.msra.mxu1 %v5651_v53  ;;  %9875 = vmatprep.mubr.msk.bf16.mxu1 %vm439_vm1, %v5373_v57  ;;  %v12260_v32 = vadd.f32 %v2797_v50, %v2608_v0  ;;  %v8885_v20 = vcombine.low %v11953_v5, %v11960_v1  ;;  %v10333_v1 = vld [vmem:[%s10616_s19 + $0x1c] sm:$0xff]   ;;  %v5800_v57 = vshrl.u32 %v12254_v30, 16 }
 0x19a   : > { %v2971_v52 = vpop.f32.mrf.mxu1  ;;  %10159 = vmatprep.subr.msk.bf16.mxu1 %vm458_vm0, %v12250_v24  ;;  %v3104_v51 = vpop.f32.mrf.mxu0  ;;  %v5391_v5 = vsel %vm5167_vm8, %v5381_v41, %v5390_v6  ;;  %v5804_v26 = vshll.u32 %v10333_v1, 16  ;;  %v5799_v0 = vsel %vm715_vm2, %v5794_v48, %v5798_v58  ;;  %v5812_v62 = vshll.u32 %v10335_v63, 16 }
 0x19b   : > { %v3017_v59 = vadd.f32 %v2971_v52, %v12180_v13  ;;  %v12269_v4 = vadd.f32 %v9663_v18, %v3019_v40 }
 0x19c   : > { %v9650_v25 = vpop.f32.mrf.mxu1  ;;  %v9667_v43 = vpop.f32.mrf.mxu0  ;;  %9890 = vmatmul.mubr.msk.bf16.gmra.mxu0 %vm439_vm1, %v8884_v39  ;;  %v5806_v30 = vrot.slane %v5804_v26, 1  ;;  %v5802_v39 = vor.u32 %v5800_v57, %v5798_v58  ;;  %v12332_v58 = vld [vmem:[%s13482_s4 + $0x98] sm:$0xf]  ;;  %v12353_v57 = vld [vmem:[%s10741_s18 + $0x14] sm:$0xf] }
 0x19d   : > { %v3020_v27 = vadd.f32 %v9650_v25, %v12185_v23  ;;  %v12274_v7 = vadd.f32 %v3101_v14, %v3017_v59  ;;  %9893 = vmatprep.mubr.msk.bf16.mxu0 %vm439_vm1, %v8885_v20  ;;  %v5808_v14 = vshrl.u32 %v10333_v1, 16  ;;  %v12306_v59 = vld [vmem:[%s10616_s19 + $0x34] sm:$0x1f]  }
 0x19e   : > { %v2974_v13 = vpop.f32.mrf.mxu1  ;;  %v3117_v22 = vpop.f32.mrf.mxu0 }
 0x19f   : > { %v3018_v54 = vadd.f32 %v2974_v13, %v12192_v33  ;;  %v12281_v50 = vadd.f32 %v9664_v19, %v3020_v27  ;;  %v8886_v33 = vcombine.low %v12063_v16, %v12063_v16  ;;  %v8894_v16 = vcombine.low %v12025_v34, %v12028_v44  ;;  %v10336_v19 = vld [vmem:[%s10616_s19 + $0x2c] sm:$0xff]  }
 0x1a0   : > { %v9653_v23 = vpop.f32.mrf.mxu1  ;;  %9876 = vmatmul.mubr.msk.bf16.gmra.mxu1 %vm439_vm1, %v5382_v56  ;;  %v9668_v2 = vpop.f32.mrf.mxu0  ;;  %v5810_v34 = vor.u32 %v5808_v14, %v5806_v30  ;;  %v5814_v44 = vrot.slane %v5812_v62, 1  ;;  %v5820_v27 = vshll.u32 %v10336_v19, 16  ;;  %v5828_v13 = vshll.u32 %v12306_v59, 16 }
 0x1a1   : > { %v3023_v3 = vadd.f32 %v9653_v23, %v12199_v36  ;;  %9879 = vmatprep.mubr.msk.bf16.mxu1 %vm439_vm1, %v5391_v5  ;;  %v12287_v17 = vadd.f32 %v3104_v51, %v3018_v54  ;;  %v6188_v54 = vsel %vm458_vm0, %v12239_v28, 0  ;;  %v5824_v23 = vshrl.u32 %v10336_v19, 16  ;;  %v12380_v19 = vld [vmem:[%s10751_s22 + $0x14] sm:$0xf] }
 0x1a2   : > { %v2987_v18 = vpop.f32.mrf.mxu1  ;;  %v3120_v31 = vpop.f32.mrf.mxu0  ;;  %v6021_v28 = vsel %vm458_vm0, %v12250_v24, 0  ;;  %v5818_v63 = vor.u32 %v5816_v9, %v5814_v44  ;;  %v5832_v9 = vshrl.u32 %v12306_v59, 16 }
 0x1a3   : > { %v3021_v53 = vadd.f32 %v2987_v18, %v12205_v55  ;;  %v12293_v61 = vadd.f32 %v9667_v43, %v3023_v3  ;;  %v5807_v43 = vsel %vm715_vm2, %v5802_v39, %v5806_v30  ;;  %v5822_v3 = vrot.slane %v5820_v27, 1  ;;  %v12343_v18 = vld [vmem:[%s13482_s4 + $0x94] sm:$0xf]  ;;  %v12377_v30 = vld [vmem:[%s10751_s22 + $0x10] sm:$0xf] }
 0x1a4   : > { %v9654_v36 = vpop.f32.mrf.mxu1  ;;  %v9671_v41 = vpop.f32.mrf.mxu0  ;;  %9894 = vmatmul.mubr.msk.bf16.gmra.mxu0 %vm439_vm1, %v8886_v33 }
 0x1a5   : > { %v3024_v47 = vadd.f32 %v9654_v36, %v12213_v42  ;;  %v12299_v40 = vadd.f32 %v3117_v22, %v3021_v53  ;;  %9913 = vmatprep.mubr.msk.bf16.mxu0 %vm439_vm1, %v5799_v0  ;;  %v5815_v22 = vsel %vm715_vm2, %v5810_v34, %v5814_v44  ;;  %v5826_v24 = vor.u32 %v5824_v23, %v5822_v3  ;;  %v12347_v53 = vld [vmem:[%s10741_s18 + $0xc] sm:$0xf] }
 0x1a6   : > { %v2990_v55 = vpop.f32.mrf.mxu1  ;;  %v3133_v42 = vpop.f32.mrf.mxu0  ;;  %v5823_v62 = vsel %vm715_vm2, %v5818_v63, %v5822_v3  ;;  %v8898_v44 = vcombine.low %v12115_v29, %v12122_v35  ;;  %v12407_v35 = vld [vmem:[%s10741_s18 + $0x1c] sm:$0xf] }
 0x1a7   : > { %v3022_v52 = vadd.f32 %v2990_v55, %v12221_v60  ;;  %v12308_v20 = vadd.f32 %v9668_v2, %v3024_v47  ;;  %v6114_v2 = vld [vmem:[%s10741_s18 + $0x8] sm:$0x8]  ;;  %v12374_v55 = vld [vmem:[%s10751_s22 + $0xc] sm:$0xf] }
 0x1a8   : > { %v9657_v51 = vpop.f32.mrf.mxu1  ;;  %9880 = vmatmul.mubr.msk.bf16.gmra.mxu1 %vm439_vm1, %v5390_v6  ;;  %v9672_v60 = vpop.f32.mrf.mxu0  ;;  %v8895_v6 = vcombine.low %v12031_v38, %v12066_v12  ;;  %v5947_v47 = vld [vmem:[%s10751_s22 + $0x8] sm:$0x8] }
 0x1a9   : > { %v3027_v25 = vadd.f32 %v9657_v51, %v12228_v49  ;;  %9899 = vmatprep.mubr.msk.bf16.mxu1 %vm439_vm1, %v8894_v16  ;;  %v12313_v21 = vadd.f32 %v3120_v31, %v3022_v52 }
 0x1aa   : > { %v3003_v46 = vpop.f32.mrf.mxu1  ;;  %v3136_v49 = vpop.f32.mrf.mxu0 }
 0x1ab   : > { %v3025_v56 = vadd.f32 %v3003_v46, %v12234_v45  ;;  %v12318_v5 = vadd.f32 %v9671_v41, %v3027_v25  ;;  %v8896_v45 = vcombine.low %v12069_v10, %v12075_v37  ;;  %v5830_v37 = vrot.slane %v5828_v13, 1 }
 0x1ac   : > { %v9658_v1 = vpop.f32.mrf.mxu1  ;;  %v9691_v38 = vpop.f32.mrf.mxu0  ;;  %9914 = vmatmul.mubr.msk.bf16.vlgmr.msra.gmra.mxu0 %vm439_vm1, %v5807_v43  ;;  %v12367_v41 = vcombine.low %v6114_v2, %v12347_v53  ;;  %v12449_v2 = vld [vmem:[%s10751_s22 + $0x24] sm:$0xf] }
 0x1ad   : > { %v12327_v48 = vadd.f32 %v3133_v42, %v3025_v56  ;;  %9940 = vmatpush3.bf16.msra.mxu0 %v6188_v54  ;;  %9917 = vmatprep.mubr.msk.bf16.mxu0 %vm439_vm1, %v5815_v22  ;;  %v5831_v51 = vsel %vm715_vm2, %v5826_v24, %v5830_v37  ;;  %v12412_v56 = vld [vmem:[%s10751_s22 + $0x18] sm:$0xf]  ;;  %v12424_v1 = vld [vmem:[%s10741_s18 + $0x24] sm:$0xf]  ;;  %13513 = vst [vmem:[#allocation9_spill] sm:$0xff] %v12449_v2 }
 0x1ae   : > { %v3006_v12 = vpop.f32.mrf.mxu1  ;;  %v3382_v33 = vpop.f32.mrf.mxu0  ;;  %10162 = vmatprep.subr.msk.bf16.mxu0 %vm458_vm0, %v12332_v58  ;;  %v6158_v27 = vrot.slane %v12367_v41, 3  ;;  %13512 = vst [vmem:[#allocation8_spill] sm:$0xff] %v12424_v1 }
 0x1af   : > { %v3026_v10 = vadd.f32 %v3006_v12, %v12260_v32  ;;  %v12350_v32 = vld [vmem:[%s10741_s18 + $0x10] sm:$0xf] }
 0x1b0   : > { %v9677_v26 = vpop.f32.mrf.mxu1  ;;  %9900 = vmatmul.mubr.msk.bf16.vlgmr.msra.gmra.mxu1 %vm439_vm1, %v8895_v6  ;;  %v9692_v0 = vpop.f32.mrf.mxu0 }
 0x1b1   : > { %v3278_v31 = vadd.f32 %v9677_v26, %v12269_v4  ;;  %9926 = vmatpush3.bf16.msra.mxu1 %v6021_v28  ;;  %9903 = vmatprep.mubr.msk.bf16.mxu1 %vm439_vm1, %v8896_v45  ;;  %v12359_v36 = vadd.f32 %v3136_v49, %v3026_v10  ;;  %v12371_v4 = vcombine.low %v12350_v32, %v12353_v57  ;;  %v12418_v49 = vld [vmem:[%s10751_s22 + $0x1c] sm:$0xf] }
 0x1b2   : > { %v3230_v14 = vpop.f32.mrf.mxu1  ;;  %10161 = vmatprep.subr.msk.bf16.mxu1 %vm458_vm0, %v12343_v18  ;;  %v3385_v39 = vpop.f32.mrf.mxu0 }
 0x1b3   : > { %v3276_v16 = vadd.f32 %v3230_v14, %v12274_v7  ;;  %v12382_v52 = vadd.f32 %v9691_v38, %v3278_v31  ;;  %v8897_v7 = vcombine.low %v12078_v11, %v12112_v15  ;;  %v12395_v11 = vld [vmem:[%s10741_s18 + $0x18] sm:$0xf]  ;;  %v12398_v15 = vcombine.low %v5947_v47, %v12374_v55  ;;  %v12458_v14 = vld [vmem:[%s10741_s18 + $0x28] sm:$0xf] }
 0x1b4   : > { %v9678_v42 = vpop.f32.mrf.mxu1  ;;  %v9695_v60 = vpop.f32.mrf.mxu0  ;;  %9918 = vmatmul.mubr.msk.bf16.gmra.mxu0 %vm439_vm1, %v5823_v62  ;;  %v6159_v59 = vrot.slane %v12371_v4, 3  ;;  %v5834_v38 = vor.u32 %v5832_v9, %v5830_v37  ;;  %v12432_v12 = vcombine.low %v12395_v11, %v12407_v35  ;;  %v12446_v37 = vld [vmem:[%s10751_s22 + $0x20] sm:$0xf]  ;;  %v8899_v31 = vcombine.low %v12202_v8, %v12202_v8  ;;  %13514 = vst [vmem:[#allocation10_spill] sm:$0xff] %v12458_v14  ;;  %v12461_v62 = vld [vmem:[%s10741_s18 + $0x2c] sm:$0xf] }
 0x1b5   : > { %v3279_v34 = vadd.f32 %v9678_v42, %v12281_v50  ;;  %v12390_v25 = vadd.f32 %v3382_v33, %v3276_v16  ;;  %v12402_v50 = vcombine.low %v12377_v30, %v12380_v19  ;;  %9921 = vmatprep.mubr.msk.bf16.mxu0 %vm439_vm1, %v5831_v51  ;;  %v5991_v28 = vrot.slane %v12398_v15, 3  ;;  %13515 = vst [vmem:[#allocation11_spill] sm:$0xff] %v12461_v62 }
 0x1b6   : > { %v3233_v46 = vpop.f32.mrf.mxu1  ;;  %v3398_v13 = vpop.f32.mrf.mxu0  ;;  %v6161_v42 = vrot.slane %v12432_v12, 3  ;;  %v12481_v9 = vcombine.low %v12458_v14, %v12461_v62 }
 0x1b7   : > { %v3277_v29 = vadd.f32 %v3233_v46, %v12287_v17  ;;  %v12414_v43 = vadd.f32 %v9692_v0, %v3279_v34  ;;  %v12421_v17 = vld [vmem:[%s10741_s18 + $0x20] sm:$0xf]  ;;  %v5992_v63 = vrot.slane %v12402_v50, 3 }
 0x1b8   : > { %v9681_v6 = vpop.f32.mrf.mxu1  ;;  %9904 = vmatmul.mubr.msk.bf16.gmra.mxu1 %vm439_vm1, %v8897_v7  ;;  %v9696_v23 = vpop.f32.mrf.mxu0  ;;  %v12443_v10 = vcombine.low %v12421_v17, %v12424_v1 }
 0x1b9   : > { %v3282_v54 = vadd.f32 %v9681_v6, %v12293_v61  ;;  %9907 = vmatprep.mubr.msk.bf16.mxu1 %vm439_vm1, %v8898_v44  ;;  %v12428_v22 = vadd.f32 %v3385_v39, %v3277_v29  ;;  %v12439_v61 = vcombine.low %v12412_v56, %v12418_v49  ;;  %v5993_v8 = vsel %vm3596_vm5, %v5991_v28, %v5992_v63  ;;  %v12484_v29 = vld [vmem:[%s10751_s22 + $0x28] sm:$0xf]  ;;  %v6125_v6 = vld [vmem:[%s10741_s18 + $0x34] sm:$0x7] }
 0x1ba   : > { %v3246_v45 = vpop.f32.mrf.mxu1  ;;  %v3401_v26 = vpop.f32.mrf.mxu0  ;;  %v6163_v34 = vrot.slane %v12443_v10, 3  ;;  %13516 = vst [vmem:[#allocation12_spill] sm:$0xff] %v12484_v29 }
 0x1bb   : > { %v3280_v3 = vadd.f32 %v3246_v45, %v12299_v40  ;;  %v12451_v33 = vadd.f32 %v9695_v60, %v3282_v54  ;;  %v6160_v40 = vsel %vm3596_vm5, %v6158_v27, %v6159_v59  ;;  %v5994_v51 = vrot.slane %v12439_v61, 3  ;;  %v12490_v27 = vld [vmem:[%s10741_s18 + $0x30] sm:$0xf]  ;;  %v5958_v45 = vld [vmem:[%s10751_s22 + $0x34] sm:$0x7] }
 0x1bc   : > { %v9682_v24 = vpop.f32.mrf.mxu1  ;;  %v9699_v16 = vpop.f32.mrf.mxu0  ;;  %9922 = vmatmul.mubr.msk.bf16.gmra.mxu0 %vm439_vm1, %v5834_v38 }
 0x1bd   : > { %v3283_v0 = vadd.f32 %v9682_v24, %v12308_v20  ;;  %v12463_v47 = vadd.f32 %v3398_v13, %v3280_v3  ;;  %v12470_v20 = vcombine.low %v12446_v37, %v12449_v2  ;;  %9941 = vmatprep.mubr.msk.bf16.mxu0 %vm439_vm1, %v6160_v40  ;;  %v6162_v3 = vsel %vm3596_vm5, %v6159_v59, %v6161_v42 }
 0x1be   : > { %v3249_v39 = vpop.f32.mrf.mxu1  ;;  %v3414_v60 = vpop.f32.mrf.mxu0  ;;  %v6530_v40 = vsel %vm458_vm0, %v12332_v58, 0  ;;  %v8938_v59 = vcombine.low %v12490_v27, %v6125_v6  ;;  %v6459_v58 = vshrl.u32 %v12367_v41, 16  ;;  %v6359_v6 = vsel %vm458_vm0, %v12343_v18, 0 }
 0x1bf   : > { %v3281_v7 = vadd.f32 %v3249_v39, %v12313_v21  ;;  %v12476_v44 = vadd.f32 %v9696_v23, %v3283_v0  ;;  %v12487_v21 = vld [vmem:[%s10751_s22 + $0x2c] sm:$0xf]  ;;  %v12498_v23 = vld [vmem:[%s10751_s22 + $0x30] sm:$0xf]  ;;  %v5996_v24 = vrot.slane %v12470_v20, 3  ;;  %v6288_v2 = vshrl.u32 %v12398_v15, 16 }
 0x1c0   : > { %v9685_v46 = vpop.f32.mrf.mxu1  ;;  %9908 = vmatmul.mubr.msk.bf16.gmra.mxu1 %vm439_vm1, %v8899_v31  ;;  %13517 = vst [vmem:[#allocation13_spill] sm:$0xff] %v12487_v21  ;;  %v9700_v38 = vpop.f32.mrf.mxu0 }
 0x1c1   : > { %v3286_v13 = vadd.f32 %v9685_v46, %v12318_v5  ;;  %9927 = vmatprep.mubr.msk.bf16.mxu1 %vm439_vm1, %v5993_v8  ;;  %v12495_v54 = vadd.f32 %v3401_v26, %v3281_v7  ;;  %v6164_v5 = vsel %vm3596_vm5, %v6161_v42, %v6163_v34  ;;  %v6165_v8 = vrot.slane %v12481_v9, 3  ;;  %v12524_v42 = vld [vmem:[%s13482_s4 + $0xa0] sm:$0xf] }
 0x1c2   : > { %v3262_v28 = vpop.f32.mrf.mxu1  ;;  %v3417_v26 = vpop.f32.mrf.mxu0  ;;  %v12512_v7 = vcombine.low %v12484_v29, %v12487_v21  ;;  %v8925_v46 = vcombine.low %v12498_v23, %v5958_v45  ;;  %v6470_v45 = vshll.u32 %v12371_v4, 16  ;;  %v6299_v29 = vshll.u32 %v12402_v50, 16 }
 0x1c3   : > { %v3284_v31 = vadd.f32 %v3262_v28, %v12327_v48  ;;  %v12507_v0 = vadd.f32 %v9699_v16, %v3286_v13  ;;  %v5995_v48 = vsel %vm3596_vm5, %v5992_v63, %v5994_v51  ;;  %v6462_v16 = vshll.u32 %v12367_v41, 16 }
 0x1c4   : > { %v9686_v39 = vpop.f32.mrf.mxu1  ;;  %v9719_v13 = vpop.f32.mrf.mxu0  ;;  %9942 = vmatmul.mubr.msk.bf16.vlgmr.msra.gmra.mxu0 %vm439_vm1, %v6162_v3  ;;  %v5997_v63 = vsel %vm3596_vm5, %v5994_v51, %v5996_v24  ;;  %v6467_v41 = vshrl.u32 %v12371_v4, 16  ;;  %v6166_v18 = vsel %vm3596_vm5, %v6163_v34, %v6165_v8  ;;  %v12542_v51 = vrot.slane %v8938_v59, 3 }
 0x1c5   : > { %v12517_v38 = vadd.f32 %v3414_v60, %v3284_v31  ;;  %9968 = vmatpush3.bf16.msra.mxu0 %v6530_v40  ;;  %9945 = vmatprep.mubr.msk.bf16.mxu0 %vm439_vm1, %v6164_v5  ;;  %v12537_v31 = vld [vmem:[%s13482_s4 + $0x9c] sm:$0xf]  ;;  %v12544_v40 = vrot.slane %v8925_v46, 3  ;;  %v6461_v5 = vrot.slane %v6459_v58, 3  ;;  %v6291_v59 = vshll.u32 %v12398_v15, 16 }
 0x1c6   : > { %v3265_v28 = vpop.f32.mrf.mxu1  ;;  %v3663_v3 = vpop.f32.mrf.mxu0  ;;  %10164 = vmatprep.subr.msk.bf16.mxu0 %vm458_vm0, %v12524_v42  ;;  %v6296_v46 = vshrl.u32 %v12402_v50, 16  ;;  %v6472_v58 = vrot.slane %v6470_v45, 4  ;;  %v6168_v15 = vsel %vm3596_vm5, %v6165_v8, %v12542_v51  ;;  %v6476_v50 = vshrl.u32 %v12432_v12, 16 }
 0x1c7   : > { %v3285_v60 = vadd.f32 %v3265_v28, %v12359_v36  ;;  %v5998_v36 = vrot.slane %v12512_v7, 3  ;;  %v6464_v28 = vrot.slane %v6462_v16, 4  ;;  %v6301_v8 = vrot.slane %v6299_v29, 4 }
 0x1c8   : > { %v9705_v39 = vpop.f32.mrf.mxu1  ;;  %9928 = vmatmul.mubr.msk.bf16.vlgmr.msra.gmra.mxu1 %vm439_vm1, %v5995_v48  ;;  %v9720_v48 = vpop.f32.mrf.mxu0  ;;  %v6488_v29 = vshll.u32 %v12443_v10, 16 }
 0x1c9   : > { %v3581_v4 = vadd.f32 %v9705_v39, %v12382_v52  ;;  %9954 = vmatpush3.bf16.msra.mxu1 %v6359_v6  ;;  %9931 = vmatprep.mubr.msk.bf16.mxu1 %vm439_vm1, %v5997_v63  ;;  %v12550_v21 = vadd.f32 %v3417_v26, %v3285_v60  ;;  %v6469_v6 = vrot.slane %v6467_v41, 3  ;;  %v5999_v60 = vsel %vm3596_vm5, %v5996_v24, %v5998_v36 }
 0x1ca   : > { %v3533_v34 = vpop.f32.mrf.mxu1  ;;  %10163 = vmatprep.subr.msk.bf16.mxu1 %vm458_vm0, %v12537_v31  ;;  %v3666_v26 = vpop.f32.mrf.mxu0  ;;  %v6001_v39 = vsel %vm3596_vm5, %v5998_v36, %v12544_v40  ;;  %v6465_v1 = vor.u32 %v6464_v28, %v6461_v5  ;;  %v6290_v24 = vrot.slane %v6288_v2, 3  ;;  %v6485_v2 = vshrl.u32 %v12443_v10, 16 }
 0x1cb   : > { %v3579_v52 = vadd.f32 %v3533_v34, %v12390_v25  ;;  %v12559_v16 = vadd.f32 %v9719_v13, %v3581_v4  ;;  %v6479_v25 = vshll.u32 %v12432_v12, 16  ;;  %v6293_v4 = vrot.slane %v6291_v59, 4 }
 0x1cc   : > { %v9706_v63 = vpop.f32.mrf.mxu1  ;;  %v9723_v13 = vpop.f32.mrf.mxu0  ;;  %9946 = vmatmul.mubr.msk.bf16.gmra.mxu0 %vm439_vm1, %v6166_v18  ;;  %v6298_v34 = vrot.slane %v6296_v46, 3  ;;  %v6473_v36 = vor.u32 %v6472_v58, %v6469_v6  ;;  %v6308_v18 = vshll.u32 %v12439_v61, 16  ;;  %v6478_v28 = vrot.slane %v6476_v50, 3 }
 0x1cd   : > { %v3582_v62 = vadd.f32 %v9706_v63, %v12414_v43  ;;  %v12569_v41 = vadd.f32 %v3663_v3, %v3579_v52  ;;  %9949 = vmatprep.mubr.msk.bf16.mxu0 %vm439_vm1, %v6168_v15  ;;  %v6305_v43 = vshrl.u32 %v12439_v61, 16  ;;  %v6481_v59 = vrot.slane %v6479_v25, 4 }
 0x1ce   : > { %v3536_v45 = vpop.f32.mrf.mxu1  ;;  %v3679_v12 = vpop.f32.mrf.mxu0  ;;  %v6294_v6 = vor.u32 %v6293_v4, %v6290_v24  ;;  %v6302_v58 = vor.u32 %v6301_v8, %v6298_v34  ;;  %v6314_v61 = vshrl.u32 %v12470_v20, 16  ;;  %v6317_v63 = vshll.u32 %v12470_v20, 16 }
 0x1cf   : > { %v3580_v14 = vadd.f32 %v3536_v45, %v12428_v22  ;;  %v12575_v5 = vadd.f32 %v9720_v48, %v3582_v62  ;;  %v12586_v62 = vld [vmem:[%s10741_s18 + $0x34] sm:$0xf]  ;;  %v6310_v50 = vrot.slane %v6308_v18, 4  ;;  %v6487_v25 = vrot.slane %v6485_v2, 3  ;;  %s9077_s18 = sshll.u32 %s10552_s9, 4 }
 0x1d0   : > { %v9709_v3 = vpop.f32.mrf.mxu1  ;;  %9932 = vmatmul.mubr.msk.bf16.gmra.mxu1 %vm439_vm1, %v5999_v60  ;;  %v9724_v48 = vpop.f32.mrf.mxu0  ;;  %v6307_v60 = vrot.slane %v6305_v43, 3  ;;  %v6490_v45 = vrot.slane %v6488_v29, 4  ;;  %v8954_v24 = vcombine.low %v12490_v27, %v12586_v62  ;;  %v6482_v20 = vor.u32 %v6481_v59, %v6478_v28  ;;  %s13404_s26 = scalar_lea.hbm %s13485_s7, %s9077_s18 }
 0x1d1   : > { %v3585_v22 = vadd.f32 %v9709_v3, %v12451_v33  ;;  %9935 = vmatprep.mubr.msk.bf16.mxu1 %vm439_vm1, %v6001_v39  ;;  %v12583_v46 = vadd.f32 %v3666_v26, %v3580_v14  ;;  %v6474_v33 = vsel %vm5167_vm8, %v6465_v1, %v6473_v36  ;;  %v12595_v39 = vld [vmem:[%s10751_s22 + $0x34] sm:$0xf]  ;;  %v6316_v8 = vrot.slane %v6314_v61, 3 }
 0x1d2   : > { %v3549_v52 = vpop.f32.mrf.mxu1  ;;  %v3682_v14 = vpop.f32.mrf.mxu0  ;;  %v6319_v43 = vrot.slane %v6317_v63, 4  ;;  %v8946_v3 = vcombine.low %v12498_v23, %v12595_v39  ;;  %v6491_v28 = vor.u32 %v6490_v45, %v6487_v25  ;;  %v6503_v59 = vshrl.u32 %v8954_v24, 16 }
 0x1d3   : > { %v3583_v10 = vadd.f32 %v3549_v52, %v12463_v47  ;;  %v12592_v15 = vadd.f32 %v9723_v13, %v3585_v22  ;;  %v6303_v13 = vsel %vm5167_vm8, %v6294_v6, %v6302_v58  ;;  %v6311_v22 = vor.u32 %v6310_v50, %v6307_v60 }
 0x1d4   : > { %v9710_v26 = vpop.f32.mrf.mxu1  ;;  %v9727_v47 = vpop.f32.mrf.mxu0  ;;  %9950 = vmatmul.mubr.msk.bf16.gmra.mxu0 %vm439_vm1, %v12542_v51  ;;  %v6506_v52 = vshll.u32 %v8954_v24, 16  ;;  %v6326_v61 = vshll.u32 %v12512_v7, 16  ;;  %v6335_v60 = vshll.u32 %v8946_v3, 16 }
 0x1d5   : > { %v3586_v4 = vadd.f32 %v9710_v26, %v12476_v44  ;;  %v12600_v34 = vadd.f32 %v3679_v12, %v3583_v10  ;;  %9969 = vmatprep.mubr.msk.bf16.mxu0 %vm439_vm1, %v6474_v33  ;;  %v6494_v44 = vshrl.u32 %v12481_v9, 16  ;;  %v6497_v12 = vshll.u32 %v12481_v9, 16 }
 0x1d6   : > { %v3552_v1 = vpop.f32.mrf.mxu1  ;;  %v3695_v29 = vpop.f32.mrf.mxu0  ;;  %v6483_v10 = vsel %vm5167_vm8, %v6473_v36, %v6482_v20  ;;  %v6320_v33 = vor.u32 %v6319_v43, %v6316_v8  ;;  %v6312_v36 = vsel %vm5167_vm8, %v6302_v58, %v6311_v22  ;;  %v6328_v8 = vrot.slane %v6326_v61, 4 }
 0x1d7   : > { %v3584_v18 = vadd.f32 %v3552_v1, %v12495_v54  ;;  %v12611_v2 = vadd.f32 %v9724_v48, %v3586_v4  ;;  %v6323_v54 = vshrl.u32 %v12512_v7, 16  ;;  %v6496_v50 = vrot.slane %v6494_v44, 3 }
 0x1d8   : > { %v9713_v51 = vpop.f32.mrf.mxu1  ;;  %9936 = vmatmul.mubr.msk.bf16.gmra.mxu1 %vm439_vm1, %v12544_v40  ;;  %v9728_v48 = vpop.f32.mrf.mxu0  ;;  %v6332_v40 = vshrl.u32 %v8946_v3, 16  ;;  %v6499_v25 = vrot.slane %v6497_v12, 4  ;;  %v6770_v7 = vsel %vm458_vm0, %v12524_v42, 0  ;;  %v6505_v4 = vrot.slane %v6503_v59, 3 }
 0x1d9   : > { %v3589_v6 = vadd.f32 %v9713_v51, %v12507_v0  ;;  %9955 = vmatprep.mubr.msk.bf16.mxu1 %vm439_vm1, %v6303_v13  ;;  %v12619_v9 = vadd.f32 %v3682_v14, %v3584_v18  ;;  %v6492_v14 = vsel %vm5167_vm8, %v6482_v20, %v6491_v28  ;;  %v6508_v1 = vrot.slane %v6506_v52, 4 }
 0x1da   : > { %v3565_v63 = vpop.f32.mrf.mxu1  ;;  %v3698_v45 = vpop.f32.mrf.mxu0  ;;  %v6325_v13 = vrot.slane %v6323_v54, 3  ;;  %v6650_v42 = vsel %vm458_vm0, %v12537_v31, 0  ;;  %v6321_v20 = vsel %vm5167_vm8, %v6311_v22, %v6320_v33  ;;  %v6334_v18 = vrot.slane %v6332_v40, 3 }
 0x1db   : > { %v3587_v26 = vadd.f32 %v3565_v63, %v12517_v38  ;;  %v12623_v0 = vadd.f32 %v9727_v47, %v3589_v6  ;;  %v12634_v38 = vld [vmem:[%s13482_s4 + $0xa8] sm:$0xf]  ;;  %v6337_v58 = vrot.slane %v6335_v60, 4  ;;  %v6500_v12 = vor.u32 %v6499_v25, %v6496_v50 }
 0x1dc   : > { %v9714_v24 = vpop.f32.mrf.mxu1  ;;  %v9747_v47 = vpop.f32.mrf.mxu0  ;;  %9970 = vmatmul.mubr.msk.bf16.vlgmr.msra.gmra.mxu0 %vm439_vm1, %v6483_v10  ;;  %v6509_v31 = vor.u32 %v6508_v1, %v6505_v4 }
 0x1dd   : > { %v12629_v43 = vadd.f32 %v3695_v29, %v3587_v26  ;;  %9996 = vmatpush3.bf16.msra.mxu0 %v6770_v7  ;;  %9973 = vmatprep.mubr.msk.bf16.mxu0 %vm439_vm1, %v6492_v14  ;;  %v12645_v29 = vld [vmem:[%s13482_s4 + $0xa4] sm:$0xf]  ;;  %v6338_v61 = vor.u32 %v6337_v58, %v6334_v18  ;;  %v6501_v63 = vsel %vm5167_vm8, %v6491_v28, %v6500_v12 }
 0x1de   : > { %v3568_v3 = vpop.f32.mrf.mxu1  ;;  %v4081_v51 = vpop.f32.mrf.mxu0  ;;  %10166 = vmatprep.subr.msk.bf16.mxu0 %vm458_vm0, %v12634_v38  ;;  %v6510_v60 = vsel %vm5167_vm8, %v6500_v12, %v6509_v31  ;;  %v12698_v12 = vld [vmem:[%s10616_s19 + $0x14] sm:$0xf] }
 0x1df   : > { %v3588_v44 = vadd.f32 %v3568_v3, %v12550_v21  ;;  %v6329_v21 = vor.u32 %v6328_v8, %v6325_v13 }
 0x1e0   : > { %v9733_v59 = vpop.f32.mrf.mxu1  ;;  %9956 = vmatmul.mubr.msk.bf16.vlgmr.msra.gmra.mxu1 %vm439_vm1, %v6312_v36  ;;  %v9748_v6 = vpop.f32.mrf.mxu0 }
 0x1e1   : > { %v3920_v22 = vadd.f32 %v9733_v59, %v12559_v16  ;;  %9982 = vmatpush3.bf16.msra.mxu1 %v6650_v42  ;;  %9959 = vmatprep.mubr.msk.bf16.mxu1 %vm439_vm1, %v6321_v20  ;;  %v12652_v52 = vadd.f32 %v3698_v45, %v3588_v44  ;;  %v6330_v50 = vsel %vm5167_vm8, %v6320_v33, %v6329_v21 }
 0x1e2   : > { %v3872_v54 = vpop.f32.mrf.mxu1  ;;  %10165 = vmatprep.subr.msk.bf16.mxu1 %vm458_vm0, %v12645_v29  ;;  %v4084_v40 = vpop.f32.mrf.mxu0 }
 0x1e3   : > { %v3918_v48 = vadd.f32 %v3872_v54, %v12569_v41  ;;  %v12658_v10 = vadd.f32 %v9747_v47, %v3920_v22  ;;  %v6339_v41 = vsel %vm5167_vm8, %v6329_v21, %v6338_v61  ;;  %v8977_v22 = vcombine.low %v12407_v35, %v12421_v17  ;;  %v12719_v35 = vld [vmem:[%s13482_s4 + $0xb0] sm:$0xf] }
 0x1e4   : > { %v9734_v16 = vpop.f32.mrf.mxu1  ;;  %v9751_v45 = vpop.f32.mrf.mxu0  ;;  %9974 = vmatmul.mubr.msk.bf16.gmra.mxu0 %vm439_vm1, %v6501_v63 }
 0x1e5   : > { %v3921_v26 = vadd.f32 %v9734_v16, %v12575_v5  ;;  %v12663_v25 = vadd.f32 %v4081_v51, %v3918_v48  ;;  %9977 = vmatprep.mubr.msk.bf16.mxu0 %vm439_vm1, %v6510_v60 }
 0x1e6   : > { %v3875_v24 = vpop.f32.mrf.mxu1  ;;  %v4097_v14 = vpop.f32.mrf.mxu0 }
 0x1e7   : > { %v3919_v28 = vadd.f32 %v3875_v24, %v12583_v46  ;;  %v12669_v7 = vadd.f32 %v9748_v6, %v3921_v26  ;;  %v8975_v46 = vcombine.low %v12347_v53, %v12350_v32 }
 0x1e8   : > { %v9737_v4 = vpop.f32.mrf.mxu1  ;;  %9960 = vmatmul.mubr.msk.bf16.gmra.mxu1 %vm439_vm1, %v6330_v50  ;;  %v9752_v1 = vpop.f32.mrf.mxu0  ;;  %v13518_v50 = vld [vmem:[#allocation10_spill] sm:$0xff] }
 0x1e9   : > { %v3924_v5 = vadd.f32 %v9737_v4, %v12592_v15  ;;  %9963 = vmatprep.mubr.msk.bf16.mxu1 %vm439_vm1, %v6339_v41  ;;  %v12674_v33 = vadd.f32 %v4084_v40, %v3919_v28  ;;  %v8962_v15 = vcombine.low %v12374_v55, %v12377_v30  ;;  %v7066_v30 = vld [vmem:[%s10616_s19 + $0x10] sm:$0xf]  ;;  %v12734_v40 = vld [vmem:[%s10616_s19 + $0x18] sm:$0xff]  }
 0x1ea   : > { %v3888_v36 = vpop.f32.mrf.mxu1  ;;  %v4100_v47 = vpop.f32.mrf.mxu0  ;;  %v12745_v41 = vld [vmem:[%s10751_s22 + $0x14] sm:$0xff]  }
 0x1eb   : > { %v3922_v13 = vadd.f32 %v3888_v36, %v12600_v34  ;;  %v12679_v8 = vadd.f32 %v9751_v45, %v3924_v5  ;;  %v13519_v45 = vld [vmem:[#allocation8_spill] sm:$0xff] }
 0x1ec   : > { %v9738_v3 = vpop.f32.mrf.mxu1  ;;  %v9755_v18 = vpop.f32.mrf.mxu0  ;;  %9978 = vmatmul.mubr.msk.bf16.gmra.mxu0 %vm439_vm1, %v6509_v31  ;;  %v8978_v24 = vcombine.low %v13519_v45, %v13518_v50 }
 0x1ed   : > { %v3925_v42 = vadd.f32 %v9738_v3, %v12611_v2  ;;  %v12684_v20 = vadd.f32 %v4097_v14, %v3922_v13  ;;  %9997 = vmatprep.mubr.msk.bf16.mxu0 %vm439_vm1, %v8975_v46  ;;  %v13521_v13 = vld [vmem:[#allocation12_spill] sm:$0xff]  ;;  %v13522_v46 = vld [vmem:[#allocation9_spill] sm:$0xff] }
 0x1ee   : > { %v3891_v34 = vpop.f32.mrf.mxu1  ;;  %v4113_v32 = vpop.f32.mrf.mxu0 }
 0x1ef   : > { %v3923_v58 = vadd.f32 %v3891_v34, %v12619_v9  ;;  %v12689_v53 = vadd.f32 %v9752_v1, %v3925_v42  ;;  %v8976_v9 = vcombine.low %v12353_v57, %v12395_v11  ;;  %v9001_v57 = vcombine.low %v7066_v30, %v12698_v12  ;;  %v13523_v34 = vld [vmem:[#allocation13_spill] sm:$0xff] }
 0x1f0   : > { %v9741_v44 = vpop.f32.mrf.mxu1  ;;  %9964 = vmatmul.mubr.msk.bf16.gmra.mxu1 %vm439_vm1, %v6338_v61  ;;  %v9756_v51 = vpop.f32.mrf.mxu0  ;;  %v7176_v61 = vsel %vm458_vm0, %v12634_v38, 0  ;;  %v8964_v11 = vcombine.low %v12418_v49, %v12446_v37  ;;  %v10371_v38 = vld [vmem:[%s10751_s22 + $0xc] sm:$0xff]  }
 0x1f1   : > { %v3928_v2 = vadd.f32 %v9741_v44, %v12623_v0  ;;  %9983 = vmatprep.mubr.msk.bf16.mxu1 %vm439_vm1, %v8962_v15  ;;  %v12694_v55 = vadd.f32 %v4100_v47, %v3923_v58  ;;  %v8963_v0 = vcombine.low %v12380_v19, %v12412_v56  ;;  %v6973_v56 = vsel %vm458_vm0, %v12645_v29, 0  ;;  %v12730_v49 = vld [vmem:[%s13482_s4 + $0xac] sm:$0xf]  ;;  %v12764_v44 = vld [vmem:[%s10616_s19 + $0x20] sm:$0xff]  }
 0x1f2   : > { %v3904_v59 = vpop.f32.mrf.mxu1  ;;  %v4116_v6 = vpop.f32.mrf.mxu0  ;;  %v7113_v16 = vshll.u32 %v9001_v57, 16  ;;  %v6910_v28 = vshll.u32 %v10371_v38, 16  ;;  %v8965_v47 = vcombine.low %v13522_v46, %v13521_v13  ;;  %v7111_v3 = vshrl.u32 %v9001_v57, 16 }
 0x1f3   : > { %v3926_v31 = vadd.f32 %v3904_v59, %v12629_v43  ;;  %v12705_v21 = vadd.f32 %v9755_v18, %v3928_v2  ;;  %v7118_v15 = vshll.u32 %v12734_v40, 16  ;;  %v6908_v2 = vshrl.u32 %v10371_v38, 16 }
 0x1f4   : > { %v9742_v54 = vpop.f32.mrf.mxu1  ;;  %v9775_v17 = vpop.f32.mrf.mxu0  ;;  %9998 = vmatmul.mubr.msk.bf16.vlgmr.msra.gmra.mxu0 %vm439_vm1, %v8976_v9  ;;  %v7115_v42 = vrot.slane %v7113_v16, 1  ;;  %v6912_v30 = vrot.slane %v6910_v28, 1  ;;  %v6915_v9 = vshll.u32 %v12745_v41, 16  ;;  %v7130_v50 = vshrl.u32 %v12764_v44, 16 }
 0x1f5   : > { %v12714_v43 = vadd.f32 %v4113_v32, %v3926_v31  ;;  %10024 = vmatpush3.bf16.msra.mxu0 %v7176_v61  ;;  %10001 = vmatprep.mubr.msk.bf16.mxu0 %vm439_vm1, %v8977_v22 }
 0x1f6   : > { %v3907_v19 = vpop.f32.mrf.mxu1  ;;  %v4339_v37 = vpop.f32.mrf.mxu0  ;;  %10168 = vmatprep.subr.msk.bf16.mxu0 %vm458_vm0, %v12719_v35  ;;  %v7116_v22 = vor.u32 %v7115_v42, %v7111_v3  ;;  %v6917_v38 = vrot.slane %v6915_v9, 1 }
 0x1f7   : > { %v3927_v48 = vadd.f32 %v3907_v19, %v12652_v52  ;;  %v7126_v19 = vshll.u32 %v12764_v44, 16 }
 0x1f8   : > { %v9761_v63 = vpop.f32.mrf.mxu1  ;;  %9984 = vmatmul.mubr.msk.bf16.vlgmr.msra.gmra.mxu1 %vm439_vm1, %v8963_v0  ;;  %v9776_v60 = vpop.f32.mrf.mxu0  ;;  %v7120_v0 = vrot.slane %v7118_v15, 1 }
 0x1f9   : > { %v4258_v29 = vadd.f32 %v9761_v63, %v12658_v10  ;;  %10010 = vmatpush3.bf16.msra.mxu1 %v6973_v56  ;;  %9987 = vmatprep.mubr.msk.bf16.mxu1 %vm439_vm1, %v8964_v11  ;;  %v12740_v52 = vadd.f32 %v4116_v6, %v3927_v48  ;;  %v13520_v10 = vld [vmem:[#allocation11_spill] sm:$0xff]  ;;  %v12778_v6 = vld [vmem:[%s10616_s19 + $0x28] sm:$0xff]   ;;  %v6913_v56 = vor.u32 %v6912_v30, %v6908_v2 }
 0x1fa   : > { %v4210_v26 = vpop.f32.mrf.mxu1  ;;  %10167 = vmatprep.subr.msk.bf16.mxu1 %vm458_vm0, %v12730_v49  ;;  %v8979_v4 = vcombine.low %v13520_v10, %v12490_v27  ;;  %v4342_v1 = vpop.f32.mrf.mxu0  ;;  %v12789_v48 = vld [vmem:[%s10751_s22 + $0x24] sm:$0xff]   ;;  %v7134_v45 = vshll.u32 %v12778_v6, 16  ;;  %v7077_v10 = vld [vmem:[%s10616_s19 + $0x3c] sm:$0x1] }
 0x1fb   : > { %v4256_v14 = vadd.f32 %v4210_v26, %v12663_v25  ;;  %v12752_v5 = vadd.f32 %v9775_v17, %v4258_v29  ;;  %v8966_v25 = vcombine.low %v13523_v34, %v12498_v23  ;;  %v8980_v17 = vcombine.low %v12586_v62, %v12586_v62 }
 0x1fc   : > { %v9762_v36 = vpop.f32.mrf.mxu1  ;;  %v9779_v27 = vpop.f32.mrf.mxu0  ;;  %10002 = vmatmul.mubr.msk.bf16.gmra.mxu0 %vm439_vm1, %v8978_v24  ;;  %v8967_v62 = vcombine.low %v12595_v39, %v12595_v39  ;;  %v7121_v26 = vsel %vm715_vm2, %v7116_v22, %v7120_v0  ;;  %v6931_v13 = vshll.u32 %v12789_v48, 16 }
 0x1fd   : > { %v4259_v18 = vadd.f32 %v9762_v36, %v12669_v7  ;;  %v12760_v58 = vadd.f32 %v4339_v37, %v4256_v14  ;;  %10005 = vmatprep.mubr.msk.bf16.mxu0 %vm439_vm1, %v8979_v4  ;;  %v12770_v7 = vld [vmem:[%s10751_s22 + $0x1c] sm:$0xff]   ;;  %v6919_v37 = vshrl.u32 %v12745_v41, 16  ;;  %v12805_v41 = vld [vmem:[%s10616_s19 + $0x30] sm:$0xff]   ;;  %v12810_v14 = vld [vmem:[%s10616_s19 + $0x38] sm:$0xf] }
 0x1fe   : > { %v4213_v32 = vpop.f32.mrf.mxu1  ;;  %v4355_v59 = vpop.f32.mrf.mxu0  ;;  %v6923_v63 = vshll.u32 %v12770_v7, 16  ;;  %v6927_v36 = vshrl.u32 %v12770_v7, 16  ;;  %v7142_v30 = vshll.u32 %v12805_v41, 16 }
 0x1ff   : > { %v4257_v51 = vadd.f32 %v4213_v32, %v12674_v33  ;;  %v12772_v23 = vadd.f32 %v9776_v60, %v4259_v18  ;;  %v7122_v33 = vshrl.u32 %v12734_v40, 16  ;;  %v10377_v32 = vld [vmem:[%s10751_s22 + $0x2c] sm:$0xff]  }
 0x200   : > { %v9765_v31 = vpop.f32.mrf.mxu1  ;;  %9988 = vmatmul.mubr.msk.bf16.gmra.mxu1 %vm439_vm1, %v8965_v47  ;;  %v9780_v57 = vpop.f32.mrf.mxu0  ;;  %v6921_v47 = vor.u32 %v6919_v37, %v6917_v38  ;;  %v6925_v3 = vrot.slane %v6923_v63, 1 }
 0x201   : > { %v4262_v54 = vadd.f32 %v9765_v31, %v12679_v8  ;;  %9991 = vmatprep.mubr.msk.bf16.mxu1 %vm439_vm1, %v8966_v25  ;;  %v12783_v61 = vadd.f32 %v4342_v1, %v4257_v51  ;;  %v7128_v1 = vrot.slane %v7126_v19, 1  ;;  %v7138_v31 = vshrl.u32 %v12778_v6, 16 }
 0x202   : > { %v4226_v11 = vpop.f32.mrf.mxu1  ;;  %v4358_v29 = vpop.f32.mrf.mxu0  ;;  %v6929_v22 = vor.u32 %v6927_v36, %v6925_v3 }
 0x203   : > { %v4260_v8 = vadd.f32 %v4226_v11, %v12684_v20  ;;  %v12794_v16 = vadd.f32 %v9779_v27, %v4262_v54  ;;  %v7124_v20 = vor.u32 %v7122_v33, %v7120_v0  ;;  %v7132_v25 = vor.u32 %v7130_v50, %v7128_v1  ;;  %v12840_v54 = vld [vmem:[%s10751_s22 + $0x34] sm:$0x1f]  }
 0x204   : > { %v9766_v60 = vpop.f32.mrf.mxu1  ;;  %v9783_v4 = vpop.f32.mrf.mxu0  ;;  %10006 = vmatmul.mubr.msk.bf16.gmra.mxu0 %vm439_vm1, %v8980_v17  ;;  %v7136_v27 = vrot.slane %v7134_v45, 1  ;;  %v6933_v0 = vrot.slane %v6931_v13, 1  ;;  %v7508_v11 = vsel %vm458_vm0, %v12719_v35, 0  ;;  %v7144_v35 = vrot.slane %v7142_v30, 1  ;;  %v12880_v13 = vld [vmem:[%s13482_s4 + $0xb4] sm:$0xf] }
 0x205   : > { %v4263_v24 = vadd.f32 %v9766_v60, %v12689_v53  ;;  %v12807_v28 = vadd.f32 %v4355_v59, %v4260_v8  ;;  %v6918_v53 = vsel %vm715_vm2, %v6913_v56, %v6917_v38  ;;  %10025 = vmatprep.mubr.msk.bf16.mxu0 %vm439_vm1, %v7121_v26  ;;  %v7129_v59 = vsel %vm715_vm2, %v7124_v20, %v7128_v1  ;;  %v7269_v56 = vld [vmem:[%s10604_s10 + $0x10] sm:$0xf]  ;;  %v12850_v38 = vld [vmem:[%s10604_s10 + $0x14] sm:$0xf]  ;;  %v12865_v20 = vld [vmem:[%s13482_s4 + $0xb8] sm:$0xf] }
 0x206   : > { %v4229_v39 = vpop.f32.mrf.mxu1  ;;  %v4371_v18 = vpop.f32.mrf.mxu0  ;;  %v7137_v63 = vsel %vm715_vm2, %v7132_v25, %v7136_v27  ;;  %v7146_v60 = vshrl.u32 %v12805_v41, 16  ;;  %v6935_v26 = vshrl.u32 %v12789_v48, 16  ;;  %v6943_v1 = vshrl.u32 %v10377_v32, 16 }
 0x207   : > { %v4261_v46 = vadd.f32 %v4229_v39, %v12694_v55  ;;  %v12821_v42 = vadd.f32 %v9780_v57, %v4263_v24  ;;  %v12830_v55 = vcombine.low %v12810_v14, %v7077_v10  ;;  %v6934_v39 = vsel %vm715_vm2, %v6929_v22, %v6933_v0 }
 0x208   : > { %v9769_v34 = vpop.f32.mrf.mxu1  ;;  %9992 = vmatmul.mubr.msk.bf16.gmra.mxu1 %vm439_vm1, %v8967_v62  ;;  %v9784_v51 = vpop.f32.mrf.mxu0  ;;  %v7140_v36 = vor.u32 %v7138_v31, %v7136_v27  ;;  %v6937_v27 = vor.u32 %v6935_v26, %v6933_v0 }
 0x209   : > { %v4266_v2 = vadd.f32 %v9769_v34, %v12705_v21  ;;  %10011 = vmatprep.mubr.msk.bf16.mxu1 %vm439_vm1, %v6918_v53  ;;  %v12835_v9 = vadd.f32 %v4358_v29, %v4261_v46  ;;  %v6926_v21 = vsel %vm715_vm2, %v6921_v47, %v6925_v3  ;;  %v6939_v29 = vshll.u32 %v10377_v32, 16  ;;  %v8161_v34 = vld [vmem:[%s13483_s5] sm:$0xff]  ;;  %v7472_v32 = vld [vmem:[%s10616_s19 + $0x10] sm:$0xe] }
 0x20a   : > { %v4242_v7 = vpop.f32.mrf.mxu1  ;;  %v4374_v8 = vpop.f32.mrf.mxu0  ;;  %v7150_v62 = vshll.u32 %v12830_v55, 16  ;;  %v12871_v53 = vcombine.low %v7269_v56, %v12850_v38  ;;  %v7145_v0 = vsel %vm715_vm2, %v7140_v36, %v7144_v35 }
 0x20b   : > { %v4264_v57 = vadd.f32 %v4242_v7, %v12714_v43  ;;  %v12846_v17 = vadd.f32 %v9783_v4, %v4266_v2  ;;  %v7379_v43 = vsel %vm458_vm0, %v12730_v49, 0  ;;  %v6947_v49 = vshll.u32 %v12840_v54, 16 }
 0x20c   : > { %v9770_v37 = vpop.f32.mrf.mxu1  ;;  %v9803_v10 = vpop.f32.mrf.mxu0  ;;  %10026 = vmatmul.mubr.msk.bf16.vlgmr.msra.gmra.mxu0 %vm439_vm1, %v7129_v59  ;;  %v6941_v3 = vrot.slane %v6939_v29, 1  ;;  %v12907_v29 = vcombine.low %v7472_v32, %v12698_v12 }
 0x20d   : > { %v12860_v24 = vadd.f32 %v4371_v18, %v4264_v57  ;;  %10052 = vmatpush3.bf16.msra.mxu0 %v7508_v11  ;;  %10029 = vmatprep.mubr.msk.bf16.mxu0 %vm439_vm1, %v7137_v63  ;;  %v7152_v18 = vrot.slane %v7150_v62, 1  ;;  %v6949_v22 = vrot.slane %v6947_v49, 1  ;;  %v12896_v57 = vld [vmem:[%s10604_s10 + $0x18] sm:$0xff]   ;;  %v10483_v11 = vmov 0   ;;  %v8162_v62 = vld [vmem:[%s13483_s5 + $0x8] sm:$0xff] }
 0x20e   : > { %v4245_v4 = vpop.f32.mrf.mxu1  ;;  %v4641_v46 = vpop.f32.mrf.mxu0  ;;  %10170 = vmatprep.subr.msk.bf16.mxu0 %vm458_vm0, %v12865_v20  ;;  %v6945_v59 = vor.u32 %v6943_v1, %v6941_v3  ;;  %10220 = vset.pattern.permute.xlu0 %v10483_v11  ;;  %v7314_v1 = vshrl.u32 %v12871_v53, 16 }
 0x20f   : > { %v4265_v48 = vadd.f32 %v4245_v4, %v12740_v52  ;;  %v7148_v52 = vor.u32 %v7146_v60, %v7144_v35  ;;  %8174 = vperm.xlu0 %10220, %v8161_v34   ;;  %10221 = vset.pattern.permute.xlu1 %v10483_v11  ;;  %v7154_v35 = vshrl.u32 %v12830_v55, 16  ;;  %v12930_v34 = vld [vmem:[%s10604_s10 + $0x20] sm:$0xff]   ;;  %v12945_v11 = vld [vmem:[%s10604_s10 + $0x28] sm:$0xff]  }
 0x210   : > { %v9789_v47 = vpop.f32.mrf.mxu1  ;;  %10012 = vmatmul.mubr.msk.bf16.vlgmr.msra.gmra.mxu1 %vm439_vm1, %v6926_v21  ;;  %v9804_v51 = vpop.f32.mrf.mxu0  ;;  %v7316_v21 = vshll.u32 %v12871_v53, 16  ;;  %v7479_v53 = vrot.slane %v12734_v40, 1 }
 0x211   : > { %v4538_v25 = vadd.f32 %v9789_v47, %v12752_v5  ;;  %10038 = vmatpush3.bf16.msra.mxu1 %v7379_v43  ;;  %10015 = vmatprep.mubr.msk.bf16.mxu1 %vm439_vm1, %v6934_v39  ;;  %v12893_v2 = vadd.f32 %v4374_v8, %v4265_v48  ;;  %v7153_v63 = vsel %vm715_vm2, %v7148_v52, %v7152_v18  ;;  %v7321_v48 = vshll.u32 %v12896_v57, 16 }
 0x212   : > { %v4490_v7 = vpop.f32.mrf.mxu1  ;;  %10169 = vmatprep.subr.msk.bf16.mxu1 %vm458_vm0, %v12880_v13  ;;  %v4644_v8 = vpop.f32.mrf.mxu0  ;;  %v6950_v39 = vsel %vm715_vm2, %v6945_v59, %v6949_v22  ;;  %v7318_v49 = vrot.slane %v7316_v21, 1  ;;  %v7478_v52 = vrot.slane %v12907_v29, 1 }
 0x213   : > { %v4536_v5 = vadd.f32 %v4490_v7, %v12760_v58  ;;  %v12903_v56 = vadd.f32 %v9803_v10, %v4538_v25  ;;  %v6942_v58 = vsel %vm715_vm2, %v6937_v27, %v6941_v3  ;;  %8179 = vperm.xlu0 %10220, %v8162_v62   ;;  %v6951_v3 = vshrl.u32 %v12840_v54, 16  ;;  %v8165_v25 = vld [vmem:[%s13483_s5 + $0x20] sm:$0xff] }
 0x214   : > { %v9790_v37 = vpop.f32.mrf.mxu1  ;;  %v9807_v10 = vpop.f32.mrf.mxu0  ;;  %10030 = vmatmul.mubr.msk.bf16.gmra.mxu0 %vm439_vm1, %v7145_v0  ;;  %v7156_v7 = vor.u32 %v7154_v35, %v7152_v18  ;;  %v7319_v59 = vor.u32 %v7318_v49, %v7314_v1  ;;  %v7323_v21 = vrot.slane %v7321_v48, 1  ;;  %v7329_v62 = vshll.u32 %v12930_v34, 16  ;;  %v8164_v18 = vld [vmem:[%s13483_s5 + $0x18] sm:$0xff] }
 0x215   : > { %v4539_v43 = vadd.f32 %v9790_v37, %v12772_v23  ;;  %v12915_v26 = vadd.f32 %v4641_v46, %v4536_v5  ;;  %10033 = vmatprep.mubr.msk.bf16.mxu0 %vm439_vm1, %v7153_v63  ;;  %v6953_v63 = vor.u32 %v6951_v3, %v6949_v22  ;;  %v13499_v1 = vshll.u32 %v12945_v11, 16 }
 0x216   : > { %v4493_v4 = vpop.f32.mrf.mxu1  ;;  %v4657_v46 = vpop.f32.mrf.mxu0 }
 0x217   : > { %v4537_v23 = vadd.f32 %v4493_v4, %v12783_v61  ;;  %v12923_v36 = vadd.f32 %v9804_v51, %v4539_v43  ;;  %v8163_v61 = vld [vmem:[%s13483_s5 + $0x10] sm:$0xff]  ;;  %8194 = vperm.xlu0 %10220, %v8165_v25   ;;  %v7324_v4 = vsel %vm715_vm2, %v7319_v59, %v7323_v21  ;;  %v7483_v25 = vrot.slane %v12778_v6, 1 }
 0x218   : > { %v9793_v47 = vpop.f32.mrf.mxu1  ;;  %10016 = vmatmul.mubr.msk.bf16.gmra.mxu1 %vm439_vm1, %v6942_v58  ;;  %8184 = vperm.xlu1 %10221, %v8163_v61   ;;  %v9808_v54 = vpop.f32.mrf.mxu0  ;;  %v8167_v43 = vld [vmem:[%s13483_s5 + $0x30] sm:$0xff]  ;;  %v7325_v58 = vshrl.u32 %v12896_v57, 16  ;;  %v7331_v61 = vrot.slane %v7329_v62, 1 }
 0x219   : > { %v4542_v27 = vadd.f32 %v9793_v47, %v12794_v16  ;;  %10019 = vmatprep.mubr.msk.bf16.mxu1 %vm439_vm1, %v6950_v39  ;;  %v12940_v32 = vadd.f32 %v4644_v8, %v4537_v23  ;;  %v7480_v8 = vsel %vm1084_vm3, %v7478_v52, %v7479_v53  ;;  %v7333_v39 = vshrl.u32 %v12930_v34, 16  ;;  %v7280_v47 = vld [vmem:[%s10604_s10 + $0x3c] sm:$0x1] }
 0x21a   : > { %v4506_v51 = vpop.f32.mrf.mxu1  ;;  %v4660_v16 = vpop.f32.mrf.mxu0 }
 0x21b   : > { %v4540_v5 = vadd.f32 %v4506_v51, %v12807_v28  ;;  %v12948_v0 = vadd.f32 %v9807_v10, %v4542_v27  ;;  %8204 = vperm.xlu0 %10220, %v8167_v43   ;;  %v8166_v27 = vld [vmem:[%s13483_s5 + $0x28] sm:$0xff] }
 0x21c   : > { %v9794_v37 = vpop.f32.mrf.mxu1  ;;  %8189 = vperm.xlu1 %10221, %v8164_v18   ;;  %v9811_v22 = vpop.f32.mrf.mxu0  ;;  %10034 = vmatmul.mubr.msk.bf16.gmra.mxu0 %vm439_vm1, %v7156_v7  ;;  %v7327_v7 = vor.u32 %v7325_v58, %v7323_v21 }
 0x21d   : > { %v4543_v28 = vadd.f32 %v9794_v37, %v12821_v42  ;;  %v12960_v35 = vadd.f32 %v4657_v46, %v4540_v5  ;;  %10053 = vmatprep.mubr.msk.bf16.mxu0 %vm439_vm1, %v7480_v8  ;;  %v7481_v42 = vrot.slane %v12764_v44, 1  ;;  %v12972_v46 = vld [vmem:[%s10604_s10 + $0x38] sm:$0xf]  ;;  %v7339_v8 = vrot.slane %v13499_v1, 1 }
 0x21e   : > { %v4509_v10 = vpop.f32.mrf.mxu1  ;;  %v4673_v3 = vpop.f32.mrf.mxu0  ;;  %v12999_v18 = vcombine.low %v12972_v46, %v7280_v47 }
 0x21f   : > { %v4541_v49 = vadd.f32 %v4509_v10, %v12835_v9  ;;  %v12969_v23 = vadd.f32 %v9808_v54, %v4543_v28  ;;  %v12980_v9 = vld [vmem:[%s10604_s10 + $0x30] sm:$0xff]   ;;  %v8169_v54 = vld [vmem:[%s13483_s5 + $0x40] sm:$0xff]  ;;  %v7482_v21 = vsel %vm1084_vm3, %v7479_v53, %v7481_v42  ;;  %v7788_v10 = vsel %vm458_vm0, %v12865_v20, 0 }
 0x220   : > { %v9797_v52 = vpop.f32.mrf.mxu1  ;;  %10020 = vmatmul.mubr.msk.bf16.gmra.mxu1 %vm439_vm1, %v6953_v63  ;;  %8199 = vperm.xlu1 %10221, %v8166_v27   ;;  %v9812_v5 = vpop.f32.mrf.mxu0  ;;  %v7335_v63 = vor.u32 %v7333_v39, %v7331_v61  ;;  %v7332_v53 = vsel %vm715_vm2, %v7327_v7, %v7331_v61  ;;  %v13021_v20 = vld [vmem:[%s13482_s4 + $0xc0] sm:$0xf]  ;;  %v7637_v27 = vsel %vm458_vm0, %v12880_v13, 0  ;;  %v13500_v61 = vshrl.u32 %v12980_v9, 16  ;;  %v8171_v13 = vld [vmem:[%s13483_s5 + $0x50] sm:$0xff] }
 0x221   : > { %v4546_v51 = vadd.f32 %v9797_v52, %v12846_v17  ;;  %10039 = vmatprep.mubr.msk.bf16.mxu1 %vm439_vm1, %v7324_v4  ;;  %v12992_v59 = vadd.f32 %v4660_v16, %v4541_v49  ;;  %8214 = vperm.xlu0 %10220, %v8169_v54   ;;  %v7484_v4 = vsel %vm1084_vm3, %v7481_v42, %v7483_v25  ;;  %v13498_v49 = vshll.u32 %v12980_v9, 16 }
 0x222   : > { %v4522_v37 = vpop.f32.mrf.mxu1  ;;  %v4676_v16 = vpop.f32.mrf.mxu0  ;;  %v7340_v54 = vsel %vm715_vm2, %v7335_v63, %v7339_v8  ;;  %v7485_v7 = vrot.slane %v12805_v41, 1  ;;  %v7487_v5 = vrot.slane %v12830_v55, 1 }
 0x223   : > { %v4544_v17 = vadd.f32 %v4522_v37, %v12860_v24  ;;  %v13003_v43 = vadd.f32 %v9811_v22, %v4546_v51  ;;  %v8168_v24 = vld [vmem:[%s13483_s5 + $0x38] sm:$0xff]  ;;  %v13501_v22 = vshrl.u32 %v12945_v11, 16 }
 0x224   : > { %v9798_v28 = vpop.f32.mrf.mxu1  ;;  %8209 = vperm.xlu1 %10221, %v8168_v24   ;;  %v9831_v52 = vpop.f32.mrf.mxu0  ;;  %10054 = vmatmul.mubr.msk.bf16.vlgmr.msra.gmra.mxu0 %vm439_vm1, %v7482_v21  ;;  %v13036_v37 = vld [vmem:[%s13482_s4 + $0xbc] sm:$0xf]  ;;  %v7737_v21 = vshrl.u32 %v12907_v29, 16 }
 0x225   : > { %v13016_v47 = vadd.f32 %v4673_v3, %v4544_v17  ;;  %v7353_v3 = vshll.u32 %v12999_v18, 16  ;;  %10080 = vmatpush3.bf16.msra.mxu0 %v7788_v10  ;;  %10057 = vmatprep.mubr.msk.bf16.mxu0 %vm439_vm1, %v7484_v4  ;;  %v7740_v28 = vshll.u32 %v12907_v29, 16  ;;  %v8170_v10 = vld [vmem:[%s13483_s5 + $0x48] sm:$0xff]  ;;  %v7343_v24 = vor.u32 %v13501_v22, %v7339_v8 }
 0x226   : > { %v4525_v42 = vpop.f32.mrf.mxu1  ;;  %v4937_v63 = vpop.f32.mrf.mxu0  ;;  %10172 = vmatprep.subr.msk.bf16.mxu0 %vm458_vm0, %v13021_v20  ;;  %8224 = vperm.xlu0 %10220, %v8171_v13   ;;  %v7486_v8 = vsel %vm1084_vm3, %v7483_v25, %v7485_v7  ;;  %v7744_v13 = vrot.slane %v7122_v33, 1 }
 0x227   : > { %v4545_v51 = vadd.f32 %v4525_v42, %v12893_v2  ;;  %v7347_v2 = vrot.slane %v13498_v49, 1  ;;  %v7355_v1 = vrot.slane %v7353_v3, 1 }
 0x228   : > { %v9817_v17 = vpop.f32.mrf.mxu1  ;;  %10040 = vmatmul.mubr.msk.bf16.vlgmr.msra.gmra.mxu1 %vm439_vm1, %v7332_v53  ;;  %v9832_v42 = vpop.f32.mrf.mxu0  ;;  %8219 = vperm.xlu1 %10221, %v8170_v10  }
 0x229   : > { %v4818_v4 = vadd.f32 %v9817_v17, %v12903_v56  ;;  %10066 = vmatpush3.bf16.msra.mxu1 %v7637_v27  ;;  %10043 = vmatprep.mubr.msk.bf16.mxu1 %vm439_vm1, %v7340_v54  ;;  %v13055_v53 = vadd.f32 %v4676_v16, %v4545_v51  ;;  %v7351_v49 = vor.u32 %v13500_v61, %v7347_v2  ;;  %v7601_v27 = vld [vmem:[%s10604_s10 + $0x10] sm:$0xe]  ;;  %v7739_v17 = vrot.slane %v7737_v21, 1 }
 0x22a   : > { %v4770_v29 = vpop.f32.mrf.mxu1  ;;  %10171 = vmatprep.subr.msk.bf16.mxu1 %vm458_vm0, %v13036_v37  ;;  %v7488_v16 = vsel %vm1084_vm3, %v7485_v7, %v7487_v5  ;;  %v4940_v51 = vpop.f32.mrf.mxu0  ;;  %v7742_v61 = vrot.slane %v7740_v28, 2  ;;  %v13082_v28 = vcombine.low %v7601_v27, %v12850_v38 }
 0x22b   : > { %v4816_v56 = vadd.f32 %v4770_v29, %v12915_v26  ;;  %v13069_v54 = vadd.f32 %v9831_v52, %v4818_v4  ;;  %v7745_v26 = vrot.slane %v7118_v15, 2  ;;  %v7348_v29 = vsel %vm715_vm2, %v7343_v24, %v7347_v2 }
 0x22c   : > { %v9818_v3 = vpop.f32.mrf.mxu1  ;;  %v9835_v7 = vpop.f32.mrf.mxu0  ;;  %10058 = vmatmul.mubr.msk.bf16.gmra.mxu0 %vm439_vm1, %v7486_v8  ;;  %v7356_v21 = vsel %vm715_vm2, %v7351_v49, %v7355_v1  ;;  %v7357_v15 = vshrl.u32 %v12999_v18, 16  ;;  %v7743_v10 = vor.u32 %v7742_v61, %v7739_v17  ;;  %v7730_v49 = vld [vmem:[%s10616_s19 + $0x3c] sm:$0x3]  ;;  %v7749_v61 = vrot.slane %v7126_v19, 2 }
 0x22d   : > { %v4819_v25 = vadd.f32 %v9818_v3, %v12923_v36  ;;  %v13077_v22 = vadd.f32 %v4937_v63, %v4816_v56  ;;  %10061 = vmatprep.mubr.msk.bf16.mxu0 %vm439_vm1, %v7488_v16  ;;  %v7746_v4 = vor.u32 %v7745_v26, %v7744_v13  ;;  %v7608_v16 = vrot.slane %v12896_v57, 1 }
 0x22e   : > { %v4773_v52 = vpop.f32.mrf.mxu1  ;;  %v4953_v63 = vpop.f32.mrf.mxu0  ;;  %v7753_v26 = vrot.slane %v7134_v45, 2 }
 0x22f   : > { %v4817_v33 = vadd.f32 %v4773_v52, %v12940_v32  ;;  %v13087_v36 = vadd.f32 %v9832_v42, %v4819_v25  ;;  %v7748_v32 = vrot.slane %v7130_v50, 1  ;;  %v7607_v42 = vrot.slane %v13082_v28, 1 }
 0x230   : > { %v9821_v2 = vpop.f32.mrf.mxu1  ;;  %10044 = vmatmul.mubr.msk.bf16.gmra.mxu1 %vm439_vm1, %v7348_v29  ;;  %v9836_v56 = vpop.f32.mrf.mxu0  ;;  %v7747_v13 = vsel %vm1343_vm4, %v7743_v10, %v7746_v4  ;;  %v7752_v50 = vrot.slane %v7138_v31, 1  ;;  %v13110_v25 = vcombine.low %v12810_v14, %v7730_v49 }
 0x231   : > { %v4822_v24 = vadd.f32 %v9821_v2, %v12948_v0  ;;  %10047 = vmatprep.mubr.msk.bf16.mxu1 %vm439_vm1, %v7356_v21  ;;  %v13092_v38 = vadd.f32 %v4940_v51, %v4817_v33  ;;  %v7359_v0 = vor.u32 %v7357_v15, %v7355_v1  ;;  %v7750_v52 = vor.u32 %v7749_v61, %v7748_v32 }
 0x232   : > { %v4786_v8 = vpop.f32.mrf.mxu1  ;;  %v4956_v51 = vpop.f32.mrf.mxu0  ;;  %v7761_v33 = vshrl.u32 %v13110_v25, 16  ;;  %v7764_v55 = vshll.u32 %v13110_v25, 16  ;;  %v7610_v15 = vrot.slane %v12930_v34, 1  ;;  %v8068_v61 = vsel %vm458_vm0, %v13021_v20, 0 }
 0x233   : > { %v4820_v27 = vadd.f32 %v4786_v8, %v12960_v35  ;;  %v13102_v3 = vadd.f32 %v9835_v7, %v4822_v24  ;;  %v7609_v7 = vsel %vm1084_vm3, %v7607_v42, %v7608_v16  ;;  %v7612_v24 = vrot.slane %v12945_v11, 1 }
 0x234   : > { %v9822_v17 = vpop.f32.mrf.mxu1  ;;  %v9839_v35 = vpop.f32.mrf.mxu0  ;;  %10062 = vmatmul.mubr.msk.bf16.gmra.mxu0 %vm439_vm1, %v7487_v5  ;;  %v7751_v32 = vsel %vm1343_vm4, %v7746_v4, %v7750_v52 }
 0x235   : > { %v4823_v19 = vadd.f32 %v9822_v17, %v12969_v23  ;;  %v13113_v29 = vadd.f32 %v4953_v63, %v4820_v27  ;;  %10081 = vmatprep.mubr.msk.bf16.mxu0 %vm439_vm1, %v7747_v13  ;;  %v7754_v23 = vor.u32 %v7753_v26, %v7752_v50  ;;  %v7756_v63 = vrot.slane %v7146_v60, 1 }
 0x236   : > { %v4789_v1 = vpop.f32.mrf.mxu1  ;;  %v4969_v14 = vpop.f32.mrf.mxu0  ;;  %v7763_v27 = vrot.slane %v7761_v33, 1  ;;  %v7613_v13 = vsel %vm1084_vm3, %v7610_v15, %v7612_v24 }
 0x237   : > { %v4821_v31 = vadd.f32 %v4789_v1, %v12992_v59  ;;  %v13121_v45 = vadd.f32 %v9836_v56, %v4823_v19  ;;  %v7755_v60 = vsel %vm1343_vm4, %v7750_v52, %v7754_v23  ;;  %v7616_v1 = vrot.slane %v12999_v18, 1 }
 0x238   : > { %v9825_v21 = vpop.f32.mrf.mxu1  ;;  %10048 = vmatmul.mubr.msk.bf16.gmra.mxu1 %vm439_vm1, %v7359_v0  ;;  %v9840_v2 = vpop.f32.mrf.mxu0  ;;  %v7766_v0 = vrot.slane %v7764_v55, 2 }
 0x239   : > { %v4826_v5 = vadd.f32 %v9825_v21, %v13003_v43  ;;  %10067 = vmatprep.mubr.msk.bf16.mxu1 %vm439_vm1, %v7609_v7  ;;  %v13129_v59 = vadd.f32 %v4956_v51, %v4821_v31  ;;  %v7757_v43 = vrot.slane %v7142_v30, 2  ;;  %v7611_v51 = vsel %vm1084_vm3, %v7608_v16, %v7610_v15  ;;  %v8032_v7 = vld [vmem:[%s10616_s19 + $0x10] sm:$0xc]  ;;  %s8370_s19 = scalar_lea.sflag [#allocation3], %s13394_s12 }
 0x23a   : > { %v4802_v10 = vpop.f32.mrf.mxu1  ;;  %v4972_v8 = vpop.f32.mrf.mxu0  ;;  %v7939_v30 = vsel %vm458_vm0, %v13036_v37, 0  ;;  %v7767_v19 = vor.u32 %v7766_v0, %v7763_v27  ;;  %v7614_v37 = vrot.slane %v12980_v9, 1  ;;  %v7891_v21 = vshll.u32 %v13082_v28, 16 }
 0x23b   : > { %v4824_v49 = vadd.f32 %v4802_v10, %v13016_v47  ;;  %v13138_v56 = vadd.f32 %v9839_v35, %v4826_v5  ;;  %v7758_v50 = vor.u32 %v7757_v43, %v7756_v63  ;;  %v9059_v2 = vcombine.low %v8032_v7, %v12698_v12 }
 0x23c   : > { %v9826_v42 = vpop.f32.mrf.mxu1  ;;  %v9859_v47 = vpop.f32.mrf.mxu0  ;;  %10082 = vmatmul.mubr.msk.bf16.vlgmr.msra.gmra.mxu0 %vm439_vm1, %v7751_v32  ;;  %v7896_v12 = vrot.slane %v7321_v48, 2  ;;  %v8039_v0 = vrot.slane %v12734_v40, 2  ;;  %v7899_v40 = vrot.slane %v7333_v39, 1 }
 0x23d   : > { %v13144_v17 = vadd.f32 %v4969_v14, %v4824_v49  ;;  %10108 = vmatpush3.bf16.msra.mxu0 %v8068_v61  ;;  %10085 = vmatprep.mubr.msk.bf16.mxu0 %vm439_vm1, %v7755_v60  ;;  %v7888_v14 = vshrl.u32 %v13082_v28, 16  ;;  %v7768_v63 = vsel %vm1343_vm4, %v7758_v50, %v7767_v19  ;;  %v7615_v49 = vsel %vm1084_vm3, %v7612_v24, %v7614_v37 }
 0x23e   : > { %v4805_v4 = vpop.f32.mrf.mxu1  ;;  %v5276_v26 = vpop.f32.mrf.mxu0  ;;  %v7617_v28 = vsel %vm1084_vm3, %v7614_v37, %v7616_v1  ;;  %v7895_v42 = vrot.slane %v7325_v58, 1  ;;  %v8038_v27 = vrot.slane %v9059_v2, 2 }
 0x23f   : > { %v4825_v20 = vadd.f32 %v4805_v4, %v13055_v53  ;;  %v7890_v43 = vrot.slane %v7888_v14, 1  ;;  %v13525_v14 = vshll.u32 %v12945_v11, 16 }
 0x240   : > { %v9845_v16 = vpop.f32.mrf.mxu1  ;;  %10068 = vmatmul.mubr.msk.bf16.vlgmr.msra.gmra.mxu1 %vm439_vm1, %v7611_v51  ;;  %v9860_v52 = vpop.f32.mrf.mxu0 }
 0x241   : > { %v5152_v35 = vadd.f32 %v9845_v16, %v13069_v54  ;;  %10094 = vmatpush3.bf16.msra.mxu1 %v7939_v30  ;;  %10071 = vmatprep.mubr.msk.bf16.mxu1 %vm439_vm1, %v7613_v13  ;;  %v13158_v53 = vadd.f32 %v4972_v8, %v4825_v20  ;;  %v7759_v54 = vsel %vm1343_vm4, %v7754_v23, %v7758_v50  ;;  %v7893_v8 = vrot.slane %v7891_v21, 2  ;;  %v7881_v13 = vld [vmem:[%s10604_s10 + $0x3c] sm:$0x3]  ;;  %s10174_s10 = smul.u32 44, %s10593_s23  ;;  %s13412_s23 = scalar_lea.hbm %s13486_s8, %s9077_s18 }
 0x242   : > { %v5104_v31 = vpop.f32.mrf.mxu1  ;;  %v5279_v5 = vpop.f32.mrf.mxu0  ;;  %v7904_v21 = vrot.slane %v13525_v14, 2  ;;  %v9051_v39 = vcombine.low %v12972_v46, %v7881_v13 }
 0x243   : > { %v5150_v33 = vadd.f32 %v5104_v31, %v13077_v22  ;;  %v13164_v55 = vadd.f32 %v9859_v47, %v5152_v35  ;;  %v7897_v47 = vor.u32 %v7896_v12, %v7895_v42  ;;  %s13335_s22 = scalar_lea.vmem %s13484_s6, %s10174_s10 }
 0x244   : > { %v9846_v15 = vpop.f32.mrf.mxu1  ;;  %v9863_v22 = vpop.f32.mrf.mxu0  ;;  %10086 = vmatmul.mubr.msk.bf16.gmra.mxu0 %vm439_vm1, %v7759_v54  ;;  %v8043_v54 = vrot.slane %v12778_v6, 2  ;;  %v7915_v2 = vshll.u32 %v9051_v39, 16 }
 0x245   : > { %v5153_v10 = vadd.f32 %v9846_v15, %v13087_v36  ;;  %v13173_v32 = vadd.f32 %v5276_v26, %v5150_v33  ;;  %10089 = vmatprep.mubr.msk.bf16.mxu0 %vm439_vm1, %v7768_v63  ;;  %v8040_v26 = vsel %vm3034_vm6, %v8038_v27, %v8039_v0  ;;  %v7912_v63 = vshrl.u32 %v9051_v39, 16 }
 0x246   : > { %v5107_v23 = vpop.f32.mrf.mxu1  ;;  %v5292_v61 = vpop.f32.mrf.mxu0 }
 0x247   : > { %v5151_v36 = vadd.f32 %v5107_v23, %v13092_v38  ;;  %v13182_v24 = vadd.f32 %v9860_v52, %v5153_v10  ;;  %v7894_v38 = vor.u32 %v7893_v8, %v7890_v43  ;;  %v13524_v52 = vshrl.u32 %v12945_v11, 16 }
 0x248   : > { %v9849_v60 = vpop.f32.mrf.mxu1  ;;  %10072 = vmatmul.mubr.msk.bf16.gmra.mxu1 %vm439_vm1, %v7615_v49  ;;  %v9864_v48 = vpop.f32.mrf.mxu0  ;;  %v13527_v43 = vshll.u32 %v12980_v9, 16 }
 0x249   : > { %v5156_v51 = vadd.f32 %v9849_v60, %v13102_v3  ;;  %10075 = vmatprep.mubr.msk.bf16.mxu1 %vm439_vm1, %v7617_v28  ;;  %v13188_v57 = vadd.f32 %v5279_v5, %v5151_v36  ;;  %v7900_v3 = vrot.slane %v7329_v62, 2  ;;  %v7898_v7 = vsel %vm1343_vm4, %v7894_v38, %v7897_v47 }
 0x24a   : > { %v5120_v58 = vpop.f32.mrf.mxu1  ;;  %v5295_v20 = vpop.f32.mrf.mxu0  ;;  %v7903_v31 = vrot.slane %v13524_v52, 1  ;;  %v8041_v62 = vrot.slane %v12764_v44, 2  ;;  %v7908_v8 = vrot.slane %v13527_v43, 2  ;;  %v7917_v60 = vrot.slane %v7915_v2, 2 }
 0x24b   : > { %v5154_v4 = vadd.f32 %v5120_v58, %v13113_v29  ;;  %v13191_v30 = vadd.f32 %v9863_v22, %v5156_v51  ;;  %v7901_v11 = vor.u32 %v7900_v3, %v7899_v40 }
 0x24c   : > { %v9850_v50 = vpop.f32.mrf.mxu1  ;;  %v9867_v37 = vpop.f32.mrf.mxu0  ;;  %10090 = vmatmul.mubr.msk.bf16.gmra.mxu0 %vm439_vm1, %v7767_v19  ;;  %v7905_v44 = vor.u32 %v7904_v21, %v7903_v31  ;;  %v8042_v18 = vsel %vm3034_vm6, %v8039_v0, %v8041_v62  ;;  %v8044_v28 = vsel %vm3034_vm6, %v8041_v62, %v8043_v54  ;;  %v8045_v0 = vrot.slane %v12805_v41, 2 }
 0x24d   : > { %v5157_v16 = vadd.f32 %v9850_v50, %v13121_v45  ;;  %v13200_v35 = vadd.f32 %v5292_v61, %v5154_v4  ;;  %10109 = vmatprep.mubr.msk.bf16.mxu0 %vm439_vm1, %v8040_v26  ;;  %v7902_v23 = vsel %vm1343_vm4, %v7897_v47, %v7901_v11  ;;  %v7914_v61 = vrot.slane %v7912_v63, 1 }
 0x24e   : > { %v5123_v29 = vpop.f32.mrf.mxu1  ;;  %v5308_v19 = vpop.f32.mrf.mxu0  ;;  %v7906_v36 = vsel %vm1343_vm4, %v7901_v11, %v7905_v44  ;;  %v8046_v50 = vsel %vm3034_vm6, %v8043_v54, %v8045_v0 }
 0x24f   : > { %v5155_v34 = vadd.f32 %v5123_v29, %v13129_v59  ;;  %v13212_v45 = vadd.f32 %v9864_v48, %v5157_v16 }
 0x250   : > { %v9853_v33 = vpop.f32.mrf.mxu1  ;;  %10076 = vmatmul.mubr.msk.bf16.gmra.mxu1 %vm439_vm1, %v7616_v1  ;;  %v9868_v59 = vpop.f32.mrf.mxu0 }
 0x251   : > { %v5160_v5 = vadd.f32 %v9853_v33, %v13138_v56  ;;  %10095 = vmatprep.mubr.msk.bf16.mxu1 %vm439_vm1, %v7898_v7  ;;  %v13220_v46 = vadd.f32 %v5295_v20, %v5155_v34  ;;  %v13526_v56 = vshrl.u32 %v12980_v9, 16  ;;  %v8047_v9 = vrot.slane %v13110_v25, 2 }
 0x252   : > { %v5136_v15 = vpop.f32.mrf.mxu1  ;;  %v5311_v1 = vpop.f32.mrf.mxu0  ;;  %v7918_v20 = vor.u32 %v7917_v60, %v7914_v61 }
 0x253   : > { %v5158_v10 = vadd.f32 %v5136_v15, %v13144_v17  ;;  %v13224_v49 = vadd.f32 %v9867_v37, %v5160_v5  ;;  %v7907_v22 = vrot.slane %v13526_v56, 1  ;;  %v8048_v3 = vsel %vm3034_vm6, %v8045_v0, %v8047_v9 }
 0x254   : > { %v9854_v6 = vpop.f32.mrf.mxu1  ;;  %v9887_v12 = vpop.f32.mrf.mxu0  ;;  %10110 = vmatmul.mubr.msk.bf16.vlgmr.msra.gmra.mxu0 %vm439_vm1, %v8042_v18 }
 0x255   : > { %v13232_v42 = vadd.f32 %v5308_v19, %v5158_v10  ;;  %10113 = vmatprep.mubr.msk.bf16.mxu0 %vm439_vm1, %v8044_v28  ;;  %v7909_v38 = vor.u32 %v7908_v8, %v7907_v22 }
 0x256   : > { %v5139_v17 = vpop.f32.mrf.mxu1  ;;  %v5567_v51 = vpop.f32.mrf.mxu0 }
 0x257   : > { %v5159_v27 = vadd.f32 %v5139_v17, %v13158_v53  ;;  %v7919_v7 = vsel %vm1343_vm4, %v7909_v38, %v7918_v20 }
 0x258   : > { %v9873_v48 = vpop.f32.mrf.mxu1  ;;  %10096 = vmatmul.mubr.msk.bf16.vlgmr.msra.gmra.mxu1 %vm439_vm1, %v7902_v23  ;;  %v9888_v4 = vpop.f32.mrf.mxu0 }
 0x259   : > { %v5495_v58 = vadd.f32 %v9873_v48, %v13164_v55  ;;  %10099 = vmatprep.mubr.msk.bf16.mxu1 %vm439_vm1, %v7906_v36  ;;  %v5331_v47 = vadd.f32 %v5311_v1, %v5159_v27  ;;  %v7910_v55 = vsel %vm1343_vm4, %v7905_v44, %v7909_v38 }
 0x25a   : > { %v5447_v13 = vpop.f32.mrf.mxu1  ;;  %v5570_v26 = vpop.f32.mrf.mxu0 }
 0x25b   : > { %v5493_v53 = vadd.f32 %v5447_v13, %v13173_v32  ;;  %v5615_v41 = vadd.f32 %v9887_v12, %v5495_v58 }
 0x25c   : > { %v9874_v40 = vpop.f32.mrf.mxu1  ;;  %v9891_v37 = vpop.f32.mrf.mxu0  ;;  %10114 = vmatmul.mubr.msk.bf16.gmra.mxu0 %vm439_vm1, %v8046_v50 }
 0x25d   : > { %v5496_v25 = vadd.f32 %v9874_v40, %v13182_v24  ;;  %v5613_v16 = vadd.f32 %v5567_v51, %v5493_v53  ;;  %10117 = vmatprep.mubr.msk.bf16.mxu0 %vm439_vm1, %v8048_v3 }
 0x25e   : > { %v5450_v29 = vpop.f32.mrf.mxu1  ;;  %v5583_v31 = vpop.f32.mrf.mxu0 }
 0x25f   : > { %v5494_v32 = vadd.f32 %v5450_v29, %v13188_v57  ;;  %v5616_v52 = vadd.f32 %v9888_v4, %v5496_v25 }
 0x260   : > { %v9877_v14 = vpop.f32.mrf.mxu1  ;;  %10100 = vmatmul.mubr.msk.bf16.gmra.mxu1 %vm439_vm1, %v7910_v55  ;;  %v9892_v39 = vpop.f32.mrf.mxu0 }
 0x261   : > { %v5499_v24 = vadd.f32 %v9877_v14, %v13191_v30  ;;  %10103 = vmatprep.mubr.msk.bf16.mxu1 %vm439_vm1, %v7919_v7  ;;  %v5614_v21 = vadd.f32 %v5570_v26, %v5494_v32 }
 0x262   : > { %v5463_v34 = vpop.f32.mrf.mxu1  ;;  %v5586_v33 = vpop.f32.mrf.mxu0 }
 0x263   : > { %v5497_v62 = vadd.f32 %v5463_v34, %v13200_v35  ;;  %v5619_v19 = vadd.f32 %v9891_v37, %v5499_v24 }
 0x264   : > { %v9878_v54 = vpop.f32.mrf.mxu1  ;;  %v9895_v5 = vpop.f32.mrf.mxu0  ;;  %10118 = vmatmul.mubr.msk.bf16.gmra.mxu0 %vm439_vm1, %v8047_v9 }
 0x265   : > { %v5500_v57 = vadd.f32 %v9878_v54, %v13212_v45  ;;  %v5617_v11 = vadd.f32 %v5583_v31, %v5497_v62 }
 0x266   : > { %v5466_v59 = vpop.f32.mrf.mxu1  ;;  %v5599_v44 = vpop.f32.mrf.mxu0 }
 0x267   : > { %v5498_v15 = vadd.f32 %v5466_v59, %v13220_v46  ;;  %v5620_v30 = vadd.f32 %v9892_v39, %v5500_v57 }
 0x268   : > { %v9881_v63 = vpop.f32.mrf.mxu1  ;;  %10104 = vmatmul.mubr.msk.bf16.gmra.mxu1 %vm439_vm1, %v7918_v20  ;;  %v9896_v10 = vpop.f32.mrf.mxu0 }
 0x269   : > { %v5503_v2 = vadd.f32 %v9881_v63, %v13224_v49  ;;  %v5618_v35 = vadd.f32 %v5586_v33, %v5498_v15 }
 0x26a   : > { %v5479_v18 = vpop.f32.mrf.mxu1  ;;  %v5602_v6 = vpop.f32.mrf.mxu0 }
 0x26b   : > { %v5501_v1 = vadd.f32 %v5479_v18, %v13232_v42  ;;  %v5623_v45 = vadd.f32 %v9895_v5, %v5503_v2 }
 0x26c   : > { %v9882_v28 = vpop.f32.mrf.mxu1  ;;  %v9915_v22 = vpop.f32.mrf.mxu0 }
 0x26d   : > { %v5621_v56 = vadd.f32 %v5599_v44, %v5501_v1 }
 0x26e   : > { %v5482_v23 = vpop.f32.mrf.mxu1  ;;  %v5890_v46 = vpop.f32.mrf.mxu0 }
 0x26f   : > { %v5502_v43 = vadd.f32 %v5482_v23, %v5331_v47 }
 0x270   : > { %v9901_v8 = vpop.f32.mrf.mxu1  ;;  %v9916_v36 = vpop.f32.mrf.mxu0 }
 0x271   : > { %v5735_v12 = vadd.f32 %v9901_v8, %v5615_v41  ;;  %v5622_v17 = vadd.f32 %v5602_v6, %v5502_v43 }
 0x272   : > { %v5687_v61 = vpop.f32.mrf.mxu1  ;;  %v5893_v27 = vpop.f32.mrf.mxu0 }
 0x273   : > { %v5733_v60 = vadd.f32 %v5687_v61, %v5613_v16  ;;  %v5938_v49 = vadd.f32 %v9915_v22, %v5735_v12 }
 0x274   : > { %v9902_v0 = vpop.f32.mrf.mxu1  ;;  %v9919_v42 = vpop.f32.mrf.mxu0 }
 0x275   : > { %v5736_v51 = vadd.f32 %v9902_v0, %v5616_v52  ;;  %v5936_v48 = vadd.f32 %v5890_v46, %v5733_v60 }
 0x276   : > { %v5690_v9 = vpop.f32.mrf.mxu1  ;;  %v5906_v4 = vpop.f32.mrf.mxu0 }
 0x277   : > { %v5734_v58 = vadd.f32 %v5690_v9, %v5614_v21  ;;  %v5939_v38 = vadd.f32 %v9916_v36, %v5736_v51 }
 0x278   : > { %v9905_v13 = vpop.f32.mrf.mxu1  ;;  %v9920_v53 = vpop.f32.mrf.mxu0 }
 0x279   : > { %v5739_v20 = vadd.f32 %v9905_v13, %v5619_v19  ;;  %v5937_v47 = vadd.f32 %v5893_v27, %v5734_v58 }
 0x27a   : > { %v5703_v50 = vpop.f32.mrf.mxu1  ;;  %v5909_v40 = vpop.f32.mrf.mxu0 }
 0x27b   : > { %v5737_v41 = vadd.f32 %v5703_v50, %v5617_v11  ;;  %v5942_v26 = vadd.f32 %v9919_v42, %v5739_v20 }
 0x27c   : > { %v9906_v3 = vpop.f32.mrf.mxu1  ;;  %v9923_v16 = vpop.f32.mrf.mxu0 }
 0x27d   : > { %v5740_v25 = vadd.f32 %v9906_v3, %v5620_v30  ;;  %v5940_v55 = vadd.f32 %v5906_v4, %v5737_v41 }
 0x27e   : > { %v5706_v37 = vpop.f32.mrf.mxu1  ;;  %v5922_v32 = vpop.f32.mrf.mxu0 }
 0x27f   : > { %v5738_v29 = vadd.f32 %v5706_v37, %v5618_v35  ;;  %v5943_v7 = vadd.f32 %v9920_v53, %v5740_v25 }
 0x280   : > { %v9909_v52 = vpop.f32.mrf.mxu1  ;;  %v9924_v24 = vpop.f32.mrf.mxu0 }
 0x281   : > { %v5743_v31 = vadd.f32 %v9909_v52, %v5623_v45  ;;  %v5941_v14 = vadd.f32 %v5909_v40, %v5738_v29 }
 0x282   : > { %v5719_v21 = vpop.f32.mrf.mxu1  ;;  %v5925_v62 = vpop.f32.mrf.mxu0 }
 0x283   : > { %v5741_v39 = vadd.f32 %v5719_v21, %v5621_v56  ;;  %v5946_v34 = vadd.f32 %v9923_v16, %v5743_v31 }
 0x284   : > { %v9910_v19 = vpop.f32.mrf.mxu1  ;;  %v9943_v54 = vpop.f32.mrf.mxu0 }
 0x285   : > { %v5944_v33 = vadd.f32 %v5922_v32, %v5741_v39 }
 0x286   : > { %v5722_v57 = vpop.f32.mrf.mxu1  ;;  %v6224_v5 = vpop.f32.mrf.mxu0 }
 0x287   : > { %v5742_v11 = vadd.f32 %v5722_v57, %v5622_v17 }
 0x288   : > { %v9929_v59 = vpop.f32.mrf.mxu1  ;;  %v9944_v44 = vpop.f32.mrf.mxu0 }
 0x289   : > { %v6105_v15 = vadd.f32 %v9929_v59, %v5938_v49  ;;  %v5945_v30 = vadd.f32 %v5925_v62, %v5742_v11 }
 0x28a   : > { %v6057_v63 = vpop.f32.mrf.mxu1  ;;  %v6227_v10 = vpop.f32.mrf.mxu0 }
 0x28b   : > { %v6103_v2 = vadd.f32 %v6057_v63, %v5936_v48  ;;  %v6272_v35 = vadd.f32 %v9943_v54, %v6105_v15 }
 0x28c   : > { %v9930_v18 = vpop.f32.mrf.mxu1  ;;  %v9947_v6 = vpop.f32.mrf.mxu0 }
 0x28d   : > { %v6106_v1 = vadd.f32 %v9930_v18, %v5939_v38  ;;  %v6270_v45 = vadd.f32 %v6224_v5, %v6103_v2 }
 0x28e   : > { %v6060_v28 = vpop.f32.mrf.mxu1  ;;  %v6240_v23 = vpop.f32.mrf.mxu0 }
 0x28f   : > { %v6104_v56 = vadd.f32 %v6060_v28, %v5937_v47  ;;  %v6273_v22 = vadd.f32 %v9944_v44, %v6106_v1 }
 0x290   : > { %v9933_v43 = vpop.f32.mrf.mxu1  ;;  %v9948_v12 = vpop.f32.mrf.mxu0 }
 0x291   : > { %v6109_v46 = vadd.f32 %v9933_v43, %v5942_v26  ;;  %v6271_v8 = vadd.f32 %v6227_v10, %v6104_v56 }
 0x292   : > { %v6073_v17 = vpop.f32.mrf.mxu1  ;;  %v6243_v60 = vpop.f32.mrf.mxu0 }
 0x293   : > { %v6107_v36 = vadd.f32 %v6073_v17, %v5940_v55  ;;  %v6276_v61 = vadd.f32 %v9947_v6, %v6109_v46 }
 0x294   : > { %v9934_v49 = vpop.f32.mrf.mxu1  ;;  %v9951_v51 = vpop.f32.mrf.mxu0 }
 0x295   : > { %v6110_v27 = vadd.f32 %v9934_v49, %v5943_v7  ;;  %v6274_v0 = vadd.f32 %v6240_v23, %v6107_v36 }
 0x296   : > { %v6076_v48 = vpop.f32.mrf.mxu1  ;;  %v6256_v58 = vpop.f32.mrf.mxu0 }
 0x297   : > { %v6108_v42 = vadd.f32 %v6076_v48, %v5941_v14  ;;  %v6277_v9 = vadd.f32 %v9948_v12, %v6110_v27 }
 0x298   : > { %v9937_v38 = vpop.f32.mrf.mxu1  ;;  %v9952_v20 = vpop.f32.mrf.mxu0 }
 0x299   : > { %v6113_v4 = vadd.f32 %v9937_v38, %v5946_v34  ;;  %v6275_v13 = vadd.f32 %v6243_v60, %v6108_v42 }
 0x29a   : > { %v6089_v47 = vpop.f32.mrf.mxu1  ;;  %v6259_v41 = vpop.f32.mrf.mxu0 }
 0x29b   : > { %v6111_v53 = vadd.f32 %v6089_v47, %v5944_v33  ;;  %v6280_v50 = vadd.f32 %v9951_v51, %v6113_v4 }
 0x29c   : > { %v9938_v26 = vpop.f32.mrf.mxu1  ;;  %v9971_v3 = vpop.f32.mrf.mxu0 }
 0x29d   : > { %v6278_v40 = vadd.f32 %v6256_v58, %v6111_v53 }
 0x29e   : > { %v6092_v25 = vpop.f32.mrf.mxu1  ;;  %v6566_v16 = vpop.f32.mrf.mxu0 }
 0x29f   : > { %v6112_v55 = vadd.f32 %v6092_v25, %v5945_v30 }
 0x2a0   : > { %v9957_v37 = vpop.f32.mrf.mxu1  ;;  %v9972_v32 = vpop.f32.mrf.mxu0 }
 0x2a1   : > { %v6443_v29 = vadd.f32 %v9957_v37, %v6272_v35  ;;  %v6279_v7 = vadd.f32 %v6259_v41, %v6112_v55 }
 0x2a2   : > { %v6395_v52 = vpop.f32.mrf.mxu1  ;;  %v6569_v24 = vpop.f32.mrf.mxu0 }
 0x2a3   : > { %v6441_v31 = vadd.f32 %v6395_v52, %v6270_v45  ;;  %v6614_v14 = vadd.f32 %v9971_v3, %v6443_v29 }
 0x2a4   : > { %v9958_v21 = vpop.f32.mrf.mxu1  ;;  %v9975_v62 = vpop.f32.mrf.mxu0 }
 0x2a5   : > { %v6444_v39 = vadd.f32 %v9958_v21, %v6273_v22  ;;  %v6612_v34 = vadd.f32 %v6566_v16, %v6441_v31 }
 0x2a6   : > { %v6398_v19 = vpop.f32.mrf.mxu1  ;;  %v6582_v57 = vpop.f32.mrf.mxu0 }
 0x2a7   : > { %v6442_v33 = vadd.f32 %v6398_v19, %v6271_v8  ;;  %v6615_v54 = vadd.f32 %v9972_v32, %v6444_v39 }
 0x2a8   : > { %v9961_v11 = vpop.f32.mrf.mxu1  ;;  %v9976_v15 = vpop.f32.mrf.mxu0 }
 0x2a9   : > { %v6447_v5 = vadd.f32 %v9961_v11, %v6276_v61  ;;  %v6613_v59 = vadd.f32 %v6569_v24, %v6442_v33 }
 0x2aa   : > { %v6411_v30 = vpop.f32.mrf.mxu1  ;;  %v6585_v2 = vpop.f32.mrf.mxu0 }
 0x2ab   : > { %v6445_v44 = vadd.f32 %v6411_v30, %v6274_v0  ;;  %v6618_v63 = vadd.f32 %v9975_v62, %v6447_v5 }
 0x2ac   : > { %v9962_v35 = vpop.f32.mrf.mxu1  ;;  %v9979_v1 = vpop.f32.mrf.mxu0 }
 0x2ad   : > { %v6448_v10 = vadd.f32 %v9962_v35, %v6277_v9  ;;  %v6616_v18 = vadd.f32 %v6582_v57, %v6445_v44 }
 0x2ae   : > { %v6414_v45 = vpop.f32.mrf.mxu1  ;;  %v6598_v56 = vpop.f32.mrf.mxu0 }
 0x2af   : > { %v6446_v6 = vadd.f32 %v6414_v45, %v6275_v13  ;;  %v6619_v28 = vadd.f32 %v9976_v15, %v6448_v10 }
 0x2b0   : > { %v9965_v22 = vpop.f32.mrf.mxu1  ;;  %v9980_v46 = vpop.f32.mrf.mxu0 }
 0x2b1   : > { %v6451_v23 = vadd.f32 %v9965_v22, %v6280_v50  ;;  %v6617_v43 = vadd.f32 %v6585_v2, %v6446_v6 }
 0x2b2   : > { %v6427_v8 = vpop.f32.mrf.mxu1  ;;  %v6601_v36 = vpop.f32.mrf.mxu0 }
 0x2b3   : > { %v6449_v12 = vadd.f32 %v6427_v8, %v6278_v40  ;;  %v6622_v17 = vadd.f32 %v9979_v1, %v6451_v23 }
 0x2b4   : > { %v9966_v61 = vpop.f32.mrf.mxu1  ;;  %v9999_v49 = vpop.f32.mrf.mxu0 }
 0x2b5   : > { %v6620_v60 = vadd.f32 %v6598_v56, %v6449_v12 }
 0x2b6   : > { %v6430_v27 = vpop.f32.mrf.mxu1  ;;  %v6806_v51 = vpop.f32.mrf.mxu0 }
 0x2b7   : > { %v6450_v0 = vadd.f32 %v6430_v27, %v6279_v7 }
 0x2b8   : > { %v9985_v48 = vpop.f32.mrf.mxu1  ;;  %v10000_v58 = vpop.f32.mrf.mxu0 }
 0x2b9   : > { %v6734_v42 = vadd.f32 %v9985_v48, %v6614_v14  ;;  %v6621_v9 = vadd.f32 %v6601_v36, %v6450_v0 }
 0x2ba   : > { %v6686_v38 = vpop.f32.mrf.mxu1  ;;  %v6809_v20 = vpop.f32.mrf.mxu0 }
 0x2bb   : > { %v6732_v4 = vadd.f32 %v6686_v38, %v6612_v34  ;;  %v6854_v13 = vadd.f32 %v9999_v49, %v6734_v42 }
 0x2bc   : > { %v9986_v47 = vpop.f32.mrf.mxu1  ;;  %v10003_v41 = vpop.f32.mrf.mxu0 }
 0x2bd   : > { %v6735_v53 = vadd.f32 %v9986_v47, %v6615_v54  ;;  %v6852_v50 = vadd.f32 %v6806_v51, %v6732_v4 }
 0x2be   : > { %v6689_v26 = vpop.f32.mrf.mxu1  ;;  %v6822_v25 = vpop.f32.mrf.mxu0 }
 0x2bf   : > { %v6733_v40 = vadd.f32 %v6689_v26, %v6613_v59  ;;  %v6855_v3 = vadd.f32 %v10000_v58, %v6735_v53 }
 0x2c0   : > { %v9989_v55 = vpop.f32.mrf.mxu1  ;;  %v10004_v29 = vpop.f32.mrf.mxu0 }
 0x2c1   : > { %v6738_v16 = vadd.f32 %v9989_v55, %v6618_v63  ;;  %v6853_v37 = vadd.f32 %v6809_v20, %v6733_v40 }
 0x2c2   : > { %v6702_v7 = vpop.f32.mrf.mxu1  ;;  %v6825_v31 = vpop.f32.mrf.mxu0 }
 0x2c3   : > { %v6736_v32 = vadd.f32 %v6702_v7, %v6616_v18  ;;  %v6858_v52 = vadd.f32 %v10003_v41, %v6738_v16 }
 0x2c4   : > { %v9990_v14 = vpop.f32.mrf.mxu1  ;;  %v10007_v39 = vpop.f32.mrf.mxu0 }
 0x2c5   : > { %v6739_v24 = vadd.f32 %v9990_v14, %v6619_v28  ;;  %v6856_v21 = vadd.f32 %v6822_v25, %v6736_v32 }
 0x2c6   : > { %v6705_v34 = vpop.f32.mrf.mxu1  ;;  %v6838_v33 = vpop.f32.mrf.mxu0 }
 0x2c7   : > { %v6737_v62 = vadd.f32 %v6705_v34, %v6617_v43  ;;  %v6859_v19 = vadd.f32 %v10004_v29, %v6739_v24 }
 0x2c8   : > { %v9993_v54 = vpop.f32.mrf.mxu1  ;;  %v10008_v5 = vpop.f32.mrf.mxu0 }
 0x2c9   : > { %v6742_v57 = vadd.f32 %v9993_v54, %v6622_v17  ;;  %v6857_v11 = vadd.f32 %v6825_v31, %v6737_v62 }
 0x2ca   : > { %v6718_v59 = vpop.f32.mrf.mxu1  ;;  %v6841_v44 = vpop.f32.mrf.mxu0 }
 0x2cb   : > { %v6740_v15 = vadd.f32 %v6718_v59, %v6620_v60  ;;  %v6862_v30 = vadd.f32 %v10007_v39, %v6742_v57 }
 0x2cc   : > { %v9994_v63 = vpop.f32.mrf.mxu1  ;;  %v10027_v35 = vpop.f32.mrf.mxu0 }
 0x2cd   : > { %v6860_v2 = vadd.f32 %v6838_v33, %v6740_v15 }
 0x2ce   : > { %v6721_v10 = vpop.f32.mrf.mxu1  ;;  %v7212_v1 = vpop.f32.mrf.mxu0 }
 0x2cf   : > { %v6741_v18 = vadd.f32 %v6721_v10, %v6621_v9 }
 0x2d0   : > { %v10013_v45 = vpop.f32.mrf.mxu1  ;;  %v10028_v56 = vpop.f32.mrf.mxu0 }
 0x2d1   : > { %v7057_v6 = vadd.f32 %v10013_v45, %v6854_v13  ;;  %v6861_v28 = vadd.f32 %v6841_v44, %v6741_v18 }
 0x2d2   : > { %v7009_v22 = vpop.f32.mrf.mxu1  ;;  %v7215_v46 = vpop.f32.mrf.mxu0 }
 0x2d3   : > { %v7055_v23 = vadd.f32 %v7009_v22, %v6852_v50  ;;  %v13262_v43 = vadd.f32 %v10027_v35, %v7057_v6 }
 0x2d4   : > { %v10014_v8 = vpop.f32.mrf.mxu1  ;;  %v10031_v36 = vpop.f32.mrf.mxu0 }
 0x2d5   : > { %v7058_v12 = vadd.f32 %v10014_v8, %v6855_v3  ;;  %v13264_v17 = vadd.f32 %v7212_v1, %v7055_v23 }
 0x2d6   : > { %v7012_v61 = vpop.f32.mrf.mxu1  ;;  %v7228_v27 = vpop.f32.mrf.mxu0 }
 0x2d7   : > { %v7056_v60 = vadd.f32 %v7012_v61, %v6853_v37  ;;  %v13266_v49 = vadd.f32 %v10028_v56, %v7058_v12 }
 0x2d8   : > { %v10017_v0 = vpop.f32.mrf.mxu1  ;;  %v10032_v42 = vpop.f32.mrf.mxu0 }
 0x2d9   : > { %v7061_v51 = vadd.f32 %v10017_v0, %v6858_v52  ;;  %v13268_v48 = vadd.f32 %v7215_v46, %v7056_v60 }
 0x2da   : > { %v7025_v9 = vpop.f32.mrf.mxu1  ;;  %v7231_v4 = vpop.f32.mrf.mxu0 }
 0x2db   : > { %v7059_v58 = vadd.f32 %v7025_v9, %v6856_v21  ;;  %v13270_v38 = vadd.f32 %v10031_v36, %v7061_v51 }
 0x2dc   : > { %v10018_v13 = vpop.f32.mrf.mxu1  ;;  %v10035_v53 = vpop.f32.mrf.mxu0 }
 0x2dd   : > { %v7062_v20 = vadd.f32 %v10018_v13, %v6859_v19  ;;  %v13272_v47 = vadd.f32 %v7228_v27, %v7059_v58 }
 0x2de   : > { %v7028_v50 = vpop.f32.mrf.mxu1  ;;  %v7244_v40 = vpop.f32.mrf.mxu0 }
 0x2df   : > { %v7060_v41 = vadd.f32 %v7028_v50, %v6857_v11  ;;  %v13274_v26 = vadd.f32 %v10032_v42, %v7062_v20 }
 0x2e0   : > { %v10021_v3 = vpop.f32.mrf.mxu1  ;;  %v10036_v16 = vpop.f32.mrf.mxu0 }
 0x2e1   : > { %v7065_v25 = vadd.f32 %v10021_v3, %v6862_v30  ;;  %v13276_v55 = vadd.f32 %v7231_v4, %v7060_v41 }
 0x2e2   : > { %v7041_v37 = vpop.f32.mrf.mxu1  ;;  %v7247_v32 = vpop.f32.mrf.mxu0 }
 0x2e3   : > { %v7063_v29 = vadd.f32 %v7041_v37, %v6860_v2  ;;  %v13278_v7 = vadd.f32 %v10035_v53, %v7065_v25 }
 0x2e4   : > { %v10022_v52 = vpop.f32.mrf.mxu1  ;;  %v10055_v14 = vpop.f32.mrf.mxu0 }
 0x2e5   : > { %v13280_v31 = vadd.f32 %v7244_v40, %v7063_v29 }
 0x2e6   : > { %v7044_v24 = vpop.f32.mrf.mxu1  ;;  %v7544_v39 = vpop.f32.mrf.mxu0 }
 0x2e7   : > { %v7064_v21 = vadd.f32 %v7044_v24, %v6861_v28  ;;  %v8175_v24 = vpop.permute.xlu0 %8174 }
 0x2e8   : > { %v10041_v34 = vpop.f32.mrf.mxu1  ;;  %v10056_v19 = vpop.f32.mrf.mxu0 }
 0x2e9   : > { %v13282_v62 = vadd.f32 %v7247_v32, %v7064_v21  ;;  %v7463_v20 = vadd.f32 %v10041_v34, %v13262_v43 }
 0x2ea   : > { %v7415_v33 = vpop.f32.mrf.mxu1  ;;  %v13284_v54 = vpop.f32.mrf.mxu0 }
 0x2eb   : > { %v7461_v41 = vadd.f32 %v7415_v33, %v13264_v17  ;;  %v7592_v16 = vadd.f32 %v10055_v14, %v7463_v20 }
 0x2ec   : > { %v10042_v57 = vpop.f32.mrf.mxu1  ;;  %v10059_v11 = vpop.f32.mrf.mxu0 }
 0x2ed   : > { %v7464_v25 = vadd.f32 %v10042_v57, %v13266_v49  ;;  %v7590_v52 = vadd.f32 %v7544_v39, %v7461_v41 }
 0x2ee   : > { %v7418_v5 = vpop.f32.mrf.mxu1  ;;  %v13286_v59 = vpop.f32.mrf.mxu0 }
 0x2ef   : > { %v7462_v21 = vadd.f32 %v7418_v5, %v13268_v48  ;;  %v7593_v49 = vadd.f32 %v10056_v19, %v7464_v25  ;;  %v8185_v48 = vpop.permute.xlu1 %8184  ;;  %v8180_v19 = vpop.permute.xlu0 %8179 }
 0x2f0   : > { %v10045_v15 = vpop.f32.mrf.mxu1  ;;  %v13288_v30 = vpop.f32.mrf.mxu0 }
 0x2f1   : > { %v7467_v43 = vadd.f32 %v10045_v15, %v13270_v38  ;;  %v7591_v15 = vadd.f32 %v13284_v54, %v7462_v21 }
 0x2f2   : > { %v7431_v44 = vpop.f32.mrf.mxu1  ;;  %v13290_v63 = vpop.f32.mrf.mxu0 }
 0x2f3   : > { %v7465_v17 = vadd.f32 %v7431_v44, %v13272_v47  ;;  %v7596_v41 = vadd.f32 %v10059_v11, %v7467_v43 }
 0x2f4   : > { %v10046_v2 = vpop.f32.mrf.mxu1  ;;  %v13292_v35 = vpop.f32.mrf.mxu0 }
 0x2f5   : > { %v7468_v33 = vadd.f32 %v10046_v2, %v13274_v26  ;;  %v7594_v26 = vadd.f32 %v13286_v59, %v7465_v17 }
 0x2f6   : > { %v7434_v10 = vpop.f32.mrf.mxu1  ;;  %v13294_v18 = vpop.f32.mrf.mxu0 }
 0x2f7   : > { %v7466_v14 = vadd.f32 %v7434_v10, %v13276_v55  ;;  %v7597_v55 = vadd.f32 %v13288_v30, %v7468_v33 }
 0x2f8   : > { %v10049_v1 = vpop.f32.mrf.mxu1  ;;  %v10064_v45 = vpop.f32.mrf.mxu0 }
 0x2f9   : > { %v7471_v57 = vadd.f32 %v10049_v1, %v13278_v7  ;;  %v7595_v1 = vadd.f32 %v13290_v63, %v7466_v14 }
 0x2fa   : > { %v7447_v6 = vpop.f32.mrf.mxu1  ;;  %v13296_v28 = vpop.f32.mrf.mxu0 }
 0x2fb   : > { %v7469_v38 = vadd.f32 %v7447_v6, %v13280_v31  ;;  %v7600_v31 = vadd.f32 %v13292_v35, %v7471_v57 }
 0x2fc   : > { %v10050_v56 = vpop.f32.mrf.mxu1  ;;  %v10083_v22 = vpop.f32.mrf.mxu0 }
 0x2fd   : > { %v7598_v30 = vadd.f32 %v13294_v18, %v7469_v38 }
 0x2fe   : > { %v7450_v23 = vpop.f32.mrf.mxu1  ;;  %v7824_v46 = vpop.f32.mrf.mxu0 }
 0x2ff   : > { %v7470_v2 = vadd.f32 %v7450_v23, %v13282_v62  ;;  %v8190_v23 = vpop.permute.xlu1 %8189 }
 0x300   : > { %v10069_v8 = vpop.f32.mrf.mxu1  ;;  %v10084_v12 = vpop.f32.mrf.mxu0 }
 0x301   : > { %v7721_v32 = vadd.f32 %v10069_v8, %v7592_v16 }
 0x302   : > { %v7673_v36 = vpop.f32.mrf.mxu1  ;;  %v13298_v61 = vpop.f32.mrf.mxu0 }
 0x303   : > { %v7719_v56 = vadd.f32 %v7673_v36, %v7590_v52  ;;  %v7872_v5 = vadd.f32 %v10083_v22, %v7721_v32  ;;  %v8195_v32 = vpop.permute.xlu0 %8194 }
 0x304   : > { %v10070_v60 = vpop.f32.mrf.mxu1  ;;  %v13300_v27 = vpop.f32.mrf.mxu0 }
 0x305   : > { %v7722_v20 = vadd.f32 %v10070_v60, %v7593_v49  ;;  %v7870_v44 = vadd.f32 %v7824_v46, %v7719_v56 }
 0x306   : > { %v7676_v0 = vpop.f32.mrf.mxu1  ;;  %v13302_v51 = vpop.f32.mrf.mxu0 }
 0x307   : > { %v7720_v10 = vadd.f32 %v7676_v0, %v7591_v15  ;;  %v7873_v60 = vadd.f32 %v10084_v12, %v7722_v20  ;;  %v7599_v12 = vadd.f32 %v13296_v28, %v7470_v2 }
 0x308   : > { %v10073_v42 = vpop.f32.mrf.mxu1  ;;  %v13304_v9 = vpop.f32.mrf.mxu0 }
 0x309   : > { %v7725_v6 = vadd.f32 %v10073_v42, %v7596_v41  ;;  %v7871_v18 = vadd.f32 %v13298_v61, %v7720_v10 }
 0x30a   : > { %v7689_v58 = vpop.f32.mrf.mxu1  ;;  %v13306_v4 = vpop.f32.mrf.mxu0 }
 0x30b   : > { %v7723_v25 = vadd.f32 %v7689_v58, %v7594_v26 }
 0x30c   : > { %v10074_v13 = vpop.f32.mrf.mxu1  ;;  %v13309_v53 = vpop.f32.mrf.mxu0 }
 0x30d   : > { %v7726_v59 = vadd.f32 %v10074_v13, %v7597_v55  ;;  %v7874_v49 = vadd.f32 %v13302_v51, %v7723_v25  ;;  %v8205_v55 = vpop.permute.xlu0 %8204 }
 0x30e   : > { %v7692_v50 = vpop.f32.mrf.mxu1  ;;  %v13312_v40 = vpop.f32.mrf.mxu0 }
 0x30f   : > { %v7877_v61 = vadd.f32 %v13304_v9, %v7726_v59 }
 0x310   : > { %v10077_v3 = vpop.f32.mrf.mxu1  ;;  %v10092_v37 = vpop.f32.mrf.mxu0 }
 0x311   : > { %v7724_v37 = vadd.f32 %v7692_v50, %v7595_v1  ;;  %v7729_v35 = vadd.f32 %v10077_v3, %v7600_v31  ;;  %v7876_v3 = vadd.f32 %v13300_v27, %v7725_v6 }
 0x312   : > { %v7705_v29 = vpop.f32.mrf.mxu1  ;;  %v13317_v34 = vpop.f32.mrf.mxu0 }
 0x313   : > { %v7727_v52 = vadd.f32 %v7705_v29, %v7598_v30  ;;  %v7875_v29 = vadd.f32 %v13306_v4, %v7724_v37 }
 0x314   : > { %v10078_v45 = vpop.f32.mrf.mxu1  ;;  %v10111_v39 = vpop.f32.mrf.mxu0 }
 0x315   : > { %v7878_v41 = vadd.f32 %v13312_v40, %v7727_v52 }
 0x316   : > { %v7708_v8 = vpop.f32.mrf.mxu1  ;;  %v8104_v16 = vpop.f32.mrf.mxu0 }
 0x317   : > { %v7728_v45 = vadd.f32 %v7708_v8, %v7599_v12 }
 0x318   : > { %v10097_v47 = vpop.f32.mrf.mxu1  ;;  %v10112_v54 = vpop.f32.mrf.mxu0 }
 0x319   : > { %v8023_v7 = vadd.f32 %v10097_v47, %v7872_v5  ;;  %v8200_v5 = vpop.permute.xlu1 %8199  ;;  %v13353_v26 = vadd.f32 %v13317_v34, %v7728_v45 }
 0x31a   : > { %v7975_v11 = vpop.f32.mrf.mxu1  ;;  %v8107_v62 = vpop.f32.mrf.mxu0 }
 0x31b   : > { %v8152_v22 = vadd.f32 %v10111_v39, %v8023_v7  ;;  %v8021_v36 = vadd.f32 %v7975_v11, %v7870_v44 }
 0x31c   : > { %v10098_v63 = vpop.f32.mrf.mxu1  ;;  %v10115_v13 = vpop.f32.mrf.mxu0 }
 0x31d   : > { %v9083_v46 = vpack.c.bf16 %v8152_v22, %v8152_v22  ;;  %v8150_v0 = vadd.f32 %v8104_v16, %v8021_v36  ;;  %v8024_v42 = vadd.f32 %v10098_v63, %v7873_v60  ;;  %v8229_v58 = vmul.f32 %v8185_v48, %v8152_v22 }
 0x31e   : > { %v7978_v50 = vpop.f32.mrf.mxu1  ;;  %v8120_v56 = vpop.f32.mrf.mxu0 }
 0x31f   : > { %8355 = vst.msk [vmem:[%s13335_s22 + $0x8] sm:$0xf] %vm8352_vm9, %v9083_v46  ;;  %v8227_v21 = vmul.f32 %v8175_v24, %v8150_v0  ;;  %v9081_v43 = vpack.c.bf16 %v8150_v0, %v8150_v0  ;;  %v8153_v17 = vadd.f32 %v10112_v54, %v8024_v42  ;;  %v8022_v33 = vadd.f32 %v7978_v50, %v7871_v18 }
 0x320   : > { %v10101_v28 = vpop.f32.mrf.mxu1  ;;  %v7880_v24 = vadd.f32 %v13309_v53, %v7729_v35  ;;  %v8270_v57 = vmul.f32 %v8229_v58, %v8229_v58  ;;  %v10116_v20 = vpop.f32.mrf.mxu0  ;;  %v8242_v16 = vsel %vm8238_vm10, %v8229_v58, 0.0 }
 0x321   : > { %8353 = vst.msk [vmem:[%s13335_s22] sm:$0xf] %vm8352_vm9, %v9081_v43  ;;  %v8027_v14 = vadd.f32 %v10101_v28, %v7876_v3  ;;  %v8230_v39 = vmul.f32 %v8190_v23, %v8153_v17  ;;  %v9084_v27 = vpack.c.bf16 %v8153_v17, %v8153_v17  ;;  %v8151_v8 = vadd.f32 %v8107_v62, %v8022_v33  ;;  %v8210_v23 = vpop.permute.xlu1 %8209 }
 0x322   : > { %v7991_v48 = vpop.f32.mrf.mxu1  ;;  %v8268_v38 = vmul.f32 %v8227_v21, %v8227_v21  ;;  %v8123_v53 = vpop.f32.mrf.mxu0  ;;  %v8282_v40 = vsel %vm8238_vm10, %v8270_v57, 0.0  ;;  %v8239_v1 = vsel %vm8238_vm10, %v8227_v21, 0.0 }
 0x323   : > { %v8156_v15 = vadd.f32 %v10115_v13, %v8027_v14  ;;  %v8025_v51 = vadd.f32 %v7991_v48, %v7874_v49  ;;  %8356 = vst.msk [vmem:[%s13335_s22 + $0xc] sm:$0xf] %vm8352_vm9, %v9084_v27  ;;  %v8228_v9 = vmul.f32 %v8180_v19, %v8151_v8  ;;  %v9082_v4 = vpack.c.bf16 %v8151_v8, %v8151_v8 }
 0x324   : > { %v10102_v47 = vpop.f32.mrf.mxu1  ;;  %v8271_v7 = vmul.f32 %v8230_v39, %v8230_v39  ;;  %v10119_v19 = vpop.f32.mrf.mxu0  ;;  %v8279_v34 = vsel %vm8238_vm10, %v8268_v38, 0.0  ;;  %v8244_v63 = vsel %vm8238_vm10, %v8230_v39, 0.0 }
 0x325   : > { %v9087_v44 = vpack.c.bf16 %v8156_v15, %v8156_v15  ;;  %v8154_v2 = vadd.f32 %v8120_v56, %v8025_v51  ;;  %v8028_v10 = vadd.f32 %v10102_v47, %v7877_v61  ;;  %v8240_v31 = vsel %vm8238_vm10, %v8228_v9, 0.0  ;;  %8354 = vst.msk [vmem:[%s13335_s22 + $0x4] sm:$0xf] %vm8352_vm9, %v9082_v4 }
 0x326   : > { %v8269_v54 = vmul.f32 %v8228_v9, %v8228_v9  ;;  %v7994_v11 = vpop.f32.mrf.mxu1  ;;  %v8241_v6 = vadd.f32 %v8240_v31, %v8239_v1  ;;  %v8233_v22 = vmul.f32 %v8205_v55, %v8156_v15  ;;  %v8136_v30 = vpop.f32.mrf.mxu0  ;;  %v8284_v35 = vsel %vm8238_vm10, %v8271_v7, 0.0 }
 0x327   : > { %8359 = vst.msk [vmem:[%s13335_s22 + $0x18] sm:$0xf] %vm8352_vm9, %v9087_v44  ;;  %v8231_v36 = vmul.f32 %v8195_v32, %v8154_v2  ;;  %v9085_v25 = vpack.c.bf16 %v8154_v2, %v8154_v2  ;;  %v8157_v59 = vadd.f32 %v10116_v20, %v8028_v10  ;;  %v8026_v37 = vadd.f32 %v7994_v11, %v7875_v29  ;;  %v8215_v32 = vpop.permute.xlu0 %8214 }
 0x328   : > { %v8280_v60 = vsel %vm8238_vm10, %v8269_v54, 0.0  ;;  %v10105_v62 = vpop.f32.mrf.mxu1  ;;  %v8243_v46 = vadd.f32 %v8242_v16, %v8241_v6  ;;  %v10120_v18 = vpop.f32.mrf.mxu0  ;;  %v8250_v45 = vsel %vm8238_vm10, %v8233_v22, 0.0  ;;  %v8274_v17 = vmul.f32 %v8233_v22, %v8233_v22 }
 0x329   : > { %v8281_v0 = vadd.f32 %v8280_v60, %v8279_v34  ;;  %v8272_v42 = vmul.f32 %v8231_v36, %v8231_v36  ;;  %8357 = vst.msk [vmem:[%s13335_s22 + $0x10] sm:$0xf] %vm8352_vm9, %v9085_v25  ;;  %v8234_v12 = vmul.f32 %v8210_v23, %v8157_v59  ;;  %v9088_v58 = vpack.c.bf16 %v8157_v59, %v8157_v59 }
 0x32a   : > { %v8155_v13 = vadd.f32 %v8123_v53, %v8026_v37  ;;  %v8007_v50 = vpop.f32.mrf.mxu1  ;;  %v8245_v21 = vadd.f32 %v8244_v63, %v8243_v46  ;;  %v8031_v43 = vadd.f32 %v10105_v62, %v7880_v24  ;;  %v8246_v33 = vsel %vm8238_vm10, %v8231_v36, 0.0  ;;  %v8139_v55 = vpop.f32.mrf.mxu0 }
 0x32b   : > { %v8283_v52 = vadd.f32 %v8282_v40, %v8281_v0  ;;  %v8029_v3 = vadd.f32 %v8007_v50, %v7878_v41  ;;  %8360 = vst.msk [vmem:[%s13335_s22 + $0x1c] sm:$0xf] %vm8352_vm9, %v9088_v58  ;;  %v8286_v57 = vsel %vm8238_vm10, %v8272_v42, 0.0  ;;  %v8275_v48 = vmul.f32 %v8234_v12, %v8234_v12  ;;  %v8225_v9 = vpop.permute.xlu0 %8224  ;;  %v8220_v40 = vpop.permute.xlu1 %8219 }
 0x32c   : > { %v8232_v56 = vmul.f32 %v8200_v5, %v8155_v13  ;;  %v10106_v28 = vpop.f32.mrf.mxu1  ;;  %v8247_v49 = vadd.f32 %v8246_v33, %v8245_v21  ;;  %v9086_v61 = vpack.c.bf16 %v8155_v13, %v8155_v13  ;;  %v8160_v29 = vadd.f32 %v10119_v19, %v8031_v43 }
 0x32d   : > { %v8285_v14 = vadd.f32 %v8284_v35, %v8283_v52  ;;  %v8158_v27 = vadd.f32 %v8136_v30, %v8029_v3  ;;  %v8290_v4 = vsel %vm8238_vm10, %v8274_v17, 0.0  ;;  %v8252_v7 = vsel %vm8238_vm10, %v8234_v12, 0.0 }
 0x32e   : > { %v8248_v39 = vsel %vm8238_vm10, %v8232_v56, 0.0  ;;  %v8273_v24 = vmul.f32 %v8232_v56, %v8232_v56  ;;  %v8010_v8 = vpop.f32.mrf.mxu1  ;;  %8358 = vst.msk [vmem:[%s13335_s22 + $0x14] sm:$0xf] %vm8352_vm9, %v9086_v61  ;;  %v9091_v5 = vpack.c.bf16 %v8160_v29, %v8160_v29  ;;  %v8237_v44 = vmul.f32 %v8225_v9, %v8160_v29 }
 0x32f   : > { %v8287_v20 = vadd.f32 %v8286_v57, %v8285_v14  ;;  %v8249_v38 = vadd.f32 %v8248_v39, %v8247_v49  ;;  %v8235_v51 = vmul.f32 %v8215_v32, %v8158_v27  ;;  %v9089_v41 = vpack.c.bf16 %v8158_v27, %v8158_v27 }
 0x330   : > { %v8288_v15 = vsel %vm8238_vm10, %v8273_v24, 0.0  ;;  %v8030_v16 = vadd.f32 %v8010_v8, %v13353_v26  ;;  %8363 = vst.msk [vmem:[%s13335_s22 + $0x28] sm:$0xf] %vm8352_vm9, %v9091_v5  ;;  %v8292_v26 = vsel %vm8238_vm10, %v8275_v48, 0.0  ;;  %v8278_v22 = vmul.f32 %v8237_v44, %v8237_v44 }
 0x331   : > { %v8251_v53 = vadd.f32 %v8250_v45, %v8249_v38  ;;  %v8289_v47 = vadd.f32 %v8288_v15, %v8287_v20  ;;  %v8276_v2 = vmul.f32 %v8235_v51, %v8235_v51  ;;  %8361 = vst.msk [vmem:[%s13335_s22 + $0x20] sm:$0xf] %vm8352_vm9, %v9089_v41  ;;  %v8254_v54 = vsel %vm8238_vm10, %v8235_v51, 0.0 }
 0x332   : > { %v8159_v10 = vadd.f32 %v8139_v55, %v8030_v16  ;;  %v8258_v30 = vsel %vm8238_vm10, %v8237_v44, 0.0  ;;  %v8298_v23 = vsel %vm8238_vm10, %v8278_v22, 0.0 }
 0x333   : > { %v8291_v1 = vadd.f32 %v8290_v4, %v8289_v47  ;;  %v8253_v31 = vadd.f32 %v8252_v7, %v8251_v53  ;;  %v8294_v36 = vsel %vm8238_vm10, %v8276_v2, 0.0 }
 0x334   : > { %v8236_v19 = vmul.f32 %v8220_v40, %v8159_v10  ;;  %v9090_v11 = vpack.c.bf16 %v8159_v10, %v8159_v10 }
 0x335   : > { %v8255_v34 = vadd.f32 %v8254_v54, %v8253_v31  ;;  %v8293_v6 = vadd.f32 %v8292_v26, %v8291_v1 }
 0x336   : > { %v8256_v60 = vsel %vm8238_vm10, %v8236_v19, 0.0  ;;  %v8277_v25 = vmul.f32 %v8236_v19, %v8236_v19  ;;  %8362 = vst.msk [vmem:[%s13335_s22 + $0x24] sm:$0xf] %vm8352_vm9, %v9090_v11  ;;  %s10391_s22 = scalar_lea.vmem %s13406_s17, 16 }
 0x337   : > { %v8295_v59 = vadd.f32 %v8294_v36, %v8293_v6  ;;  %v8257_v37 = vadd.f32 %v8256_v60, %v8255_v34  ;;  %p10392_p11 = scmp.ne.s32.totalorder %s13406_s17, %s10391_s22  ;;  %p10399_p1 = scmp.lt.s32.totalorder %s10397_s20, %s10391_s22 }
 0x338   : > { %v8296_v62 = vsel %vm8238_vm10, %v8277_v25, 0.0 }
 0x339   : > { %v8259_v63 = vadd.f32 %v8258_v30, %v8257_v37  ;;  %v8297_v35 = vadd.f32 %v8296_v62, %v8295_v59  ;;  %p10393_p12 = pnand %p10392_p11, %p10569_p5  ;;  %p10400_p2 = por %p10399_p1, %p10398_p0 }
 0x33b   : > { %v8260_v46 = vrot.slane %v8259_v63, 4  ;;  %v8299_v0 = vadd.f32 %v8298_v23, %v8297_v35  ;;  %p10394_p13 = pneg %p10393_p12 }
 0x33d   : > { %v8261_v42 = vadd.f32 %v8260_v46, %v8259_v63  ;;  %v8300_v12 = vrot.slane %v8299_v0, 4  ;;  %p10401_p3 = pnand %p10400_p2, %p10394_p13 }
 0x33f   : > { %v8262_v58 = vrot.slane %v8261_v42, 2  ;;  %v8301_v13 = vadd.f32 %v8300_v12, %v8299_v0 }
 0x341   : > { %v8263_v18 = vadd.f32 %v8262_v58, %v8261_v42  ;;  %v8302_v50 = vrot.slane %v8301_v13, 2 }
 0x343   : > { %v8264_v32 = vrot.slane %v8263_v18, 1  ;;  %v8303_v52 = vadd.f32 %v8302_v50, %v8301_v13 }
 0x345   : > { %v8265_v21 = vadd.f32 %v8264_v32, %v8263_v18  ;;  %v8304_v43 = vrot.slane %v8303_v52, 1 }
 0x347   : > { %8267 = vst.msk [vmem:[%s353_s13] sm:$0x1] %vm8266_vm11, %v8265_v21  ;;  %v8305_v3 = vadd.f32 %v8304_v43, %v8303_v52 }
 0x348   : > { %10404 = shalt.err (!%p10401_p3)
}
 0x349   : > { %s10405_s18 = scalar_lea.hbm %s13404_s26, 16  ;;  %s10409_s10 = scalar_lea.hbm %s13485_s7, 32 }
 0x34a   : > { %p10406_p4 = scmp.ne.s32.totalorder %s13404_s26, %s10405_s18  ;;  %p10410_p9 = scmp.lt.s32.totalorder %s13404_s26, %s13485_s7 }
 0x34b   : > { %p10411_p10 = scmp.lt.s32.totalorder %s10409_s10, %s10405_s18 }
 0x34c   : > { %p10407_p7 = pnand %p10406_p4, %p10569_p5 }
 0x34d   : > { %p10412_p11 = por %p10411_p10, %p10410_p9 }
 0x34e   : > { %p10408_p8 = pneg %p10407_p7 }
 0x350   : > { %p10413_p12 = pnand %p10412_p11, %p10408_p8 }
 0x352   : > { %10416 = shalt.err (!%p10413_p12)
}
 0x353   : > { %10175 = dma.vmem_to_hbm [thread:$0]  (%p10569_p5), %s13406_s17, 16, %s13404_s26, %s8370_s19  }
 0x354   : > { %s13528_s20 = scalar_lea.vmem [#allocation4], %s13394_s12  ;;  %s8374_s0 = scalar_lea.sflag [#allocation5], %s13394_s12 }
 0x355   : > { %8306 = vst.msk [vmem:[%s13528_s20] sm:$0x1] %vm8266_vm11, %v8305_v3  ;;  %s10417_s22 = scalar_lea.vmem %s13414_s21, 16  ;;  %s10485_s25 = smov [#allocation4]  }
 0x356   : > { %p10418_p13 = scmp.ne.s32.totalorder %s13414_s21, %s10417_s22  ;;  %s10421_s18 = sshll.u32 %s10485_s25, 4  ;;  %s10422_s18 = int_to_ptr.vmem [resolvable:$false] %s10421_s18 }
 0x357   : > { %s10423_s13 = scalar_lea.vmem %s10422_s18, 32  ;;  %p10424_p2 = scmp.lt.s32.totalorder %s13414_s21, %s10422_s18 }
 0x358   : > { %p10419_p0 = pnand %p10418_p13, %p10569_p5  ;;  %p10425_p3 = scmp.lt.s32.totalorder %s10423_s13, %s10417_s22 }
 0x35a   : > { %p10420_p1 = pneg %p10419_p0  ;;  %p10426_p4 = por %p10425_p3, %p10424_p2 }
 0x35c   : > { %p10427_p7 = pnand %p10426_p4, %p10420_p1 }
 0x35e   : > { %10430 = shalt.err (!%p10427_p7)
}
 0x35f   : > { %s10431_s17 = scalar_lea.hbm %s13412_s23, 16  ;;  %s10435_s19 = scalar_lea.hbm %s13486_s8, 32 }
 0x360   : > { %p10432_p8 = scmp.ne.s32.totalorder %s13412_s23, %s10431_s17  ;;  %p10436_p11 = scmp.lt.s32.totalorder %s13412_s23, %s13486_s8 }
 0x361   : > { %p10437_p12 = scmp.lt.s32.totalorder %s10435_s19, %s10431_s17 }
 0x362   : > { %p10433_p9 = pnand %p10432_p8, %p10569_p5 }
 0x363   : > { %p10438_p13 = por %p10437_p12, %p10436_p11 }
 0x364   : > { %p10434_p10 = pneg %p10433_p9 }
 0x366   : > { %p10439_p0 = pnand %p10438_p13, %p10434_p10 }
 0x368   : > { %10442 = shalt.err (!%p10439_p0)
}
 0x369   : > { %10176 = dma.vmem_to_hbm [thread:$0]  (%p10569_p5), %s13414_s21, 16, %s13412_s23, %s8374_s0  }
 0x36a PF: > { %p10186_p1 = scmp.ge.s32.totalorder %s10481_s30, 2  ;;  %s8422_s24 = sand.u32 1, %s10469_s27  }
 0x36b   : > { %s8423_s20 = scalar_lea.sflag [#allocation3], %s8422_s24 }
 0x36c   : > { %p10180_p2 = pnand %p10186_p1, %p10573_p6 }
 0x36e   : > { %p10181_p3 = pneg %p10180_p2 }
 0x370   : > { %10460 = dma.done.wait (%p10181_p3), %s8423_s20, 16  }
 0x371   : > { %10462 = vsyncadd (%p10181_p3), %s8423_s20, 4294967280  ;;  %s8431_s22 = scalar_lea.sflag [#allocation5], %s8422_s24 }
 0x372   : > { %10464 = dma.done.wait (%p10181_p3), %s8431_s22, 16  }
 0x373   : > { %10466 = vsyncadd (%p10181_p3), %s8431_s22, 4294967280  ;;  %p22_p5 = scmp.ge.s32.totalorder %s10556_s11, 4   ;;  %s13529_s27 = smov %s10473_s28 }
 0x374   : > { %s13530_s28 = smov %s10477_s29  ;;  %s13531_s29 = smov %s10567_s14 }
 0x375   : > { %s13532_s30 = smov %s10556_s11  ;;  %24 = sbr.rel (!%p22_p5) target bundleno = 7 (0x7), region = 165 }
 0x37a   :  { %8435 = vsyncpa [#allocation3], 1 }
 0x37b   :  { %8437 = vsyncpa [#allocation3 + $0x1], 1 }
 0x37c   :  { %8438 = vsyncpa [#allocation5], 1 }
 0x37d   :  { %8440 = vsyncpa [#allocation5 + $0x1], 1 }

</bundles_post_ra>
